<compile_context>
chip_gen: v6e
topology: v6e:2x2x1
jax: 0.10.0
libtpu: 0.0.40
codegen_flags: <defaults>
</compile_context>

<pallas_src>
import jax
import jax.numpy as jnp
from jax.experimental import pallas as pl
from jax.experimental.pallas import tpu as pltpu

IN_FEATURES = 12288   # 3 * 64 * 64
H1 = 128
H2 = 256
OUT = 96
OUT_PAD = 128         # lane-dense output slab; sliced back to 96 in the wrapper
NEG_SLOPE = 0.01      # F.leaky_relu default


def _leaky_relu(x):
    return jnp.where(x > 0, x, NEG_SLOPE * x)


def mlp_kernel(x_ref, w1_ref, b1_ref, w2_ref, b2_ref, w3_ref, b3_ref, o_ref):
    # Layer 1: cast the f32 x tile to bf16 in-kernel (VPU cast hides under the
    # DMA); bf16 x bf16 -> f32 accumulate on the MXU.
    x = x_ref[...].astype(jnp.bfloat16)
    h = jnp.dot(x, w1_ref[...], preferred_element_type=jnp.float32) + b1_ref[...]
    h = _leaky_relu(h)
    # Layer 2: (tm, 128) @ (128, 256), bf16 single-pass MXU, f32 accumulate.
    h = jnp.dot(h.astype(jnp.bfloat16), w2_ref[...],
                preferred_element_type=jnp.float32) + b2_ref[...]
    h = _leaky_relu(h)
    # Classifier (columns padded 96 -> 128): (tm, 256) @ (256, 128).
    o = jnp.dot(h.astype(jnp.bfloat16), w3_ref[...],
                preferred_element_type=jnp.float32) + b3_ref[...]
    o_ref[...] = o.astype(o_ref.dtype)


def prepare_params(params):
    """One-time preprocessing: bf16 weights, classifier padded to 128 columns."""
    return {
        "w1": params["w1"].astype(jnp.bfloat16),
        "b1": params["b1"].astype(jnp.float32),
        "w2": params["w2"].astype(jnp.bfloat16),
        "b2": params["b2"].astype(jnp.float32),
        "w3": jnp.pad(params["w3"], ((0, 0), (0, OUT_PAD - OUT))).astype(jnp.bfloat16),
        "b3": jnp.pad(params["b3"], ((0, 0), (0, OUT_PAD - OUT))).astype(jnp.float32),
    }


def _pick_tm(B):
    # Multiple of 8; ensure >= 2 batch tiles once B >= 128 so v7x megacore
    # sharding of the "parallel" batch axis has work for both TensorCores.
    if B >= 256:
        return 128
    if B >= 128:
        return 64
    return max(8, -(-B // 8) * 8)


def nn6_forward(x_nchw, prepped):
    """x_nchw: (B, 3, 64, 64) float32.  prepped: output of prepare_params()."""
    B = x_nchw.shape[0]
    x_flat = x_nchw.reshape(B, -1)          # nn.Flatten semantics (row-major C,H,W)
    assert x_flat.shape[1] == IN_FEATURES

    tm = _pick_tm(B)
    B_pad = -(-B // tm) * tm
    if B_pad != B:
        x_flat = jnp.pad(x_flat, ((0, B_pad - B), (0, 0)))
    nb = B_pad // tm

    out_pad = pl.pallas_call(
        mlp_kernel,
        out_shape=jax.ShapeDtypeStruct((B_pad, OUT_PAD), jnp.float32),
        grid_spec=pltpu.PrefetchScalarGridSpec(
            num_scalar_prefetch=0,
            grid=(nb,),                                          # batch tiles only
            in_specs=[
                pl.BlockSpec((tm, IN_FEATURES), lambda i: (i, 0)),   # x tile (f32, streamed)
                pl.BlockSpec((IN_FEATURES, H1), lambda i: (0, 0)),   # W1 bf16 (VMEM-resident)
                pl.BlockSpec((1, H1), lambda i: (0, 0)),             # b1 (resident)
                pl.BlockSpec((H1, H2), lambda i: (0, 0)),            # W2 (resident)
                pl.BlockSpec((1, H2), lambda i: (0, 0)),             # b2 (resident)
                pl.BlockSpec((H2, OUT_PAD), lambda i: (0, 0)),       # W3 padded (resident)
                pl.BlockSpec((1, OUT_PAD), lambda i: (0, 0)),        # b3 padded (resident)
            ],
            out_specs=pl.BlockSpec((tm, OUT_PAD), lambda i: (i, 0)),
        ),
        compiler_params=pltpu.CompilerParams(
            dimension_semantics=("parallel",),
            vmem_limit_bytes=32 << 20,      # ~18 MiB used @ tm=128; safe on v7x too
        ),
    )(x_flat, prepped["w1"], prepped["b1"], prepped["w2"], prepped["b2"],
      prepped["w3"], prepped["b3"])

    return out_pad[:B, :OUT]


def init_params(key):
    """Deterministic init matching torch.nn.Linear's U(-1/sqrt(fan_in), +)."""
    ks = jax.random.split(key, 6)

    def lin(kw, kb, fan_in, fan_out):
        bound = 1.0 / jnp.sqrt(jnp.float32(fan_in))
        w = jax.random.uniform(kw, (fan_in, fan_out), jnp.float32, -bound, bound)
        b = jax.random.uniform(kb, (1, fan_out), jnp.float32, -bound, bound)
        return w, b

    w1, b1 = lin(ks[0], ks[1], IN_FEATURES, H1)
    w2, b2 = lin(ks[2], ks[3], H1, H2)
    w3, b3 = lin(ks[4], ks[5], H2, OUT)
    return {"w1": w1, "b1": b1, "w2": w2, "b2": b2, "w3": w3, "b3": b3}


def reference_forward(x_nchw, params):
    """Pure-JAX reference mirroring the kernel's bf16-operand / f32-accumulate math."""
    x = x_nchw.reshape(x_nchw.shape[0], -1).astype(jnp.bfloat16)
    w1 = params["w1"].astype(jnp.bfloat16)
    w2 = params["w2"].astype(jnp.bfloat16)
    w3 = params["w3"].astype(jnp.bfloat16)
    h = jnp.dot(x, w1, preferred_element_type=jnp.float32) + params["b1"]
    h = jnp.where(h > 0, h, NEG_SLOPE * h)
    h = jnp.dot(h.astype(jnp.bfloat16), w2,
                preferred_element_type=jnp.float32) + params["b2"]
    h = jnp.where(h > 0, h, NEG_SLOPE * h)
    return jnp.dot(h.astype(jnp.bfloat16), w3,
                   preferred_element_type=jnp.float32) + params["b3"]


if __name__ == "__main__":
    key = jax.random.PRNGKey(0)
    k_x, k_p = jax.random.split(key)

    B = 2
    x = jax.random.normal(k_x, (B, 3, 64, 64), jnp.float32)  # NCHW, 3*64*64 = 12288
    params = init_params(k_p)
    prepped = prepare_params(params)          # one-time weight cast/pad

    out = nn6_forward(x, prepped)
    out = jax.block_until_ready(out)
    assert out.shape == (B, OUT), out.shape

    ref = jax.block_until_ready(reference_forward(x, params))
    assert jnp.allclose(out, ref, atol=2e-2, rtol=2e-2), float(
        jnp.max(jnp.abs(out - ref))
    )

    print("KERNEL_OK")
</pallas_src>

<mosaic_0001>
module attributes {stable_mosaic.version = 11 : i64} {
  func.func @mlp_kernel(%arg0: i32, %arg1: memref<8x12288xf32, #tpu.memory_space<vmem>>, %arg2: memref<12288x128xbf16, #tpu.memory_space<vmem>>, %arg3: memref<1x128xf32, #tpu.memory_space<vmem>>, %arg4: memref<128x256xbf16, #tpu.memory_space<vmem>>, %arg5: memref<1x256xf32, #tpu.memory_space<vmem>>, %arg6: memref<256x128xbf16, #tpu.memory_space<vmem>>, %arg7: memref<1x128xf32, #tpu.memory_space<vmem>>, %arg8: memref<8x128xf32, #tpu.memory_space<vmem>>) attributes {dimension_semantics = [#tpu.dimension_semantics<parallel>], iteration_bounds = array<i64: 1>, scalar_prefetch = 0 : i64, scratch_operands = 0 : i64, tpu.core_type = #tpu.core_type<tc>, window_params = [{transform_indices = @transform_0, window_bounds = array<i64: 8, 12288>}, {pipeline_mode = #tpu.pipeline_mode<synchronous>, transform_indices = @transform_1, window_bounds = array<i64: 12288, 128>}, {pipeline_mode = #tpu.pipeline_mode<synchronous>, transform_indices = @transform_2, window_bounds = array<i64: 1, 128>}, {pipeline_mode = #tpu.pipeline_mode<synchronous>, transform_indices = @transform_3, window_bounds = array<i64: 128, 256>}, {pipeline_mode = #tpu.pipeline_mode<synchronous>, transform_indices = @transform_4, window_bounds = array<i64: 1, 256>}, {pipeline_mode = #tpu.pipeline_mode<synchronous>, transform_indices = @transform_5, window_bounds = array<i64: 256, 128>}, {pipeline_mode = #tpu.pipeline_mode<synchronous>, transform_indices = @transform_6, window_bounds = array<i64: 1, 128>}, {transform_indices = @transform_7, window_bounds = array<i64: 8, 128>}]} {
    %c0 = arith.constant 0 : index
    %c0_0 = arith.constant 0 : index
    %0 = vector.load %arg1[%c0, %c0_0] : memref<8x12288xf32, #tpu.memory_space<vmem>>, vector<8x12288xf32>
    %1 = arith.truncf %0 : vector<8x12288xf32> to vector<8x12288xbf16>
    %c0_1 = arith.constant 0 : index
    %c0_2 = arith.constant 0 : index
    %2 = vector.load %arg2[%c0_1, %c0_2] : memref<12288x128xbf16, #tpu.memory_space<vmem>>, vector<12288x128xbf16>
    %cst = arith.constant dense<0.000000e+00> : vector<8x128xf32>
    %3 = tpu.matmul %1, %2, %cst {dimension_numbers = #tpu.dot_dimension_numbers<[1], [0], [0], [1], [0, 0, 1, 1], [], []>} : vector<8x12288xbf16>, vector<12288x128xbf16>, vector<8x128xf32> -> vector<8x128xf32>
    %c0_3 = arith.constant 0 : index
    %c0_4 = arith.constant 0 : index
    %4 = vector.load %arg3[%c0_3, %c0_4] : memref<1x128xf32, #tpu.memory_space<vmem>>, vector<1x128xf32>
    %5 = vector.broadcast %4 : vector<1x128xf32> to vector<8x128xf32>
    %6 = arith.addf %3, %5 : vector<8x128xf32>
    %cst_5 = arith.constant 0.000000e+00 : f32
    %7 = vector.broadcast %cst_5 : f32 to vector<8x128xf32>
    %8 = arith.cmpf ogt, %6, %7 : vector<8x128xf32>
    %cst_6 = arith.constant 0.00999999977 : f32
    %9 = vector.broadcast %cst_6 : f32 to vector<8x128xf32>
    %10 = arith.mulf %9, %6 : vector<8x128xf32>
    %11 = arith.select %8, %6, %10 : vector<8x128xi1>, vector<8x128xf32>
    %12 = arith.truncf %11 : vector<8x128xf32> to vector<8x128xbf16>
    %c0_7 = arith.constant 0 : index
    %c0_8 = arith.constant 0 : index
    %13 = vector.load %arg4[%c0_7, %c0_8] : memref<128x256xbf16, #tpu.memory_space<vmem>>, vector<128x256xbf16>
    %cst_9 = arith.constant dense<0.000000e+00> : vector<8x256xf32>
    %14 = tpu.matmul %12, %13, %cst_9 {dimension_numbers = #tpu.dot_dimension_numbers<[1], [0], [0], [1], [0, 0, 1, 1], [], []>} : vector<8x128xbf16>, vector<128x256xbf16>, vector<8x256xf32> -> vector<8x256xf32>
    %c0_10 = arith.constant 0 : index
    %c0_11 = arith.constant 0 : index
    %15 = vector.load %arg5[%c0_10, %c0_11] : memref<1x256xf32, #tpu.memory_space<vmem>>, vector<1x256xf32>
    %16 = vector.broadcast %15 : vector<1x256xf32> to vector<8x256xf32>
    %17 = arith.addf %14, %16 : vector<8x256xf32>
    %cst_12 = arith.constant 0.000000e+00 : f32
    %18 = vector.broadcast %cst_12 : f32 to vector<8x256xf32>
    %19 = arith.cmpf ogt, %17, %18 : vector<8x256xf32>
    %cst_13 = arith.constant 0.00999999977 : f32
    %20 = vector.broadcast %cst_13 : f32 to vector<8x256xf32>
    %21 = arith.mulf %20, %17 : vector<8x256xf32>
    %22 = arith.select %19, %17, %21 : vector<8x256xi1>, vector<8x256xf32>
    %23 = arith.truncf %22 : vector<8x256xf32> to vector<8x256xbf16>
    %c0_14 = arith.constant 0 : index
    %c0_15 = arith.constant 0 : index
    %24 = vector.load %arg6[%c0_14, %c0_15] : memref<256x128xbf16, #tpu.memory_space<vmem>>, vector<256x128xbf16>
    %cst_16 = arith.constant dense<0.000000e+00> : vector<8x128xf32>
    %25 = tpu.matmul %23, %24, %cst_16 {dimension_numbers = #tpu.dot_dimension_numbers<[1], [0], [0], [1], [0, 0, 1, 1], [], []>} : vector<8x256xbf16>, vector<256x128xbf16>, vector<8x128xf32> -> vector<8x128xf32>
    %c0_17 = arith.constant 0 : index
    %c0_18 = arith.constant 0 : index
    %26 = vector.load %arg7[%c0_17, %c0_18] : memref<1x128xf32, #tpu.memory_space<vmem>>, vector<1x128xf32>
    %27 = vector.broadcast %26 : vector<1x128xf32> to vector<8x128xf32>
    %28 = arith.addf %25, %27 : vector<8x128xf32>
    %c0_19 = arith.constant 0 : index
    %c0_20 = arith.constant 0 : index
    %29 = vector.load %arg8[%c0_19, %c0_20] : memref<8x128xf32, #tpu.memory_space<vmem>>, vector<8x128xf32>
    tpu.vector_store %arg8[%c0_19, %c0_20], %28 {strides = array<i32>} : memref<8x128xf32, #tpu.memory_space<vmem>>, vector<8x128xf32>,
    return
  }
  func.func @transform_0(%arg0: i32) -> (i32, i32) {
    %c0_i32 = arith.constant 0 : i32
    %c0_i32_0 = arith.constant 0 : i32
    return %arg0, %c0_i32 : i32, i32
  }
  func.func @transform_1(%arg0: i32) -> (i32, i32) {
    %c0_i32 = arith.constant 0 : i32
    %c0_i32_0 = arith.constant 0 : i32
    %c0_i32_1 = arith.constant 0 : i32
    return %c0_i32, %c0_i32_0 : i32, i32
  }
  func.func @transform_2(%arg0: i32) -> (i32, i32) {
    %c0_i32 = arith.constant 0 : i32
    %c0_i32_0 = arith.constant 0 : i32
    %c0_i32_1 = arith.constant 0 : i32
    return %c0_i32, %c0_i32_0 : i32, i32
  }
  func.func @transform_3(%arg0: i32) -> (i32, i32) {
    %c0_i32 = arith.constant 0 : i32
    %c0_i32_0 = arith.constant 0 : i32
    %c0_i32_1 = arith.constant 0 : i32
    return %c0_i32, %c0_i32_0 : i32, i32
  }
  func.func @transform_4(%arg0: i32) -> (i32, i32) {
    %c0_i32 = arith.constant 0 : i32
    %c0_i32_0 = arith.constant 0 : i32
    %c0_i32_1 = arith.constant 0 : i32
    return %c0_i32, %c0_i32_0 : i32, i32
  }
  func.func @transform_5(%arg0: i32) -> (i32, i32) {
    %c0_i32 = arith.constant 0 : i32
    %c0_i32_0 = arith.constant 0 : i32
    %c0_i32_1 = arith.constant 0 : i32
    return %c0_i32, %c0_i32_0 : i32, i32
  }
  func.func @transform_6(%arg0: i32) -> (i32, i32) {
    %c0_i32 = arith.constant 0 : i32
    %c0_i32_0 = arith.constant 0 : i32
    %c0_i32_1 = arith.constant 0 : i32
    return %c0_i32, %c0_i32_0 : i32, i32
  }
  func.func @transform_7(%arg0: i32) -> (i32, i32) {
    %c0_i32 = arith.constant 0 : i32
    %c0_i32_0 = arith.constant 0 : i32
    return %arg0, %c0_i32 : i32, i32
  }
}

</mosaic_0001>

<bundles_post_ra>
// kernel: tpu_custom_call.1
= control target key start
LH: loop header
LB: loop body
LE: loop exit
PB: predicated region body
PF: predicated region fallthrough
CT: control target
= control target key end

     0   :  { %12 = vsyncpa [#allocation3], 0  ;;  %s11738_s0 = inlined_call_operand.hbm [shape: f32[8,12288], index: 0, kind: input, shape index: {}]   ;;  %s11739_s1 = inlined_call_operand.hbm [shape: bf16[12288,128], index: 1, kind: input, shape index: {}]   ;;  %s11740_s2 = inlined_call_operand.hbm [shape: f32[1,128], index: 2, kind: input, shape index: {}]   ;;  %s11741_s3 = inlined_call_operand.hbm [shape: bf16[128,256], index: 3, kind: input, shape index: {}]   ;;  %s11742_s4 = inlined_call_operand.hbm [shape: f32[1,256], index: 4, kind: input, shape index: {}]   ;;  %s11743_s5 = inlined_call_operand.hbm [shape: bf16[256,128], index: 5, kind: input, shape index: {}]   ;;  %s11744_s6 = inlined_call_operand.hbm [shape: f32[1,128], index: 6, kind: input, shape index: {}]   ;;  %s11745_s7 = inlined_call_operand.hbm [shape: f32[8,128], index: 7, kind: output, shape index: {}]  }
   0x1   :  { %13 = vsyncpa [#allocation6], 0 }
   0x2   :  { %14 = vsyncpa [#allocation9], 0 }
   0x3   :  { %15 = vsyncpa [#allocation12], 0 }
   0x4   :  { %16 = vsyncpa [#allocation4], 0  ;;  %s11604_s24 = smov [#allocation5]  }
   0x5   :  { %s32_s25 = sshll.u32 %s11604_s24, 4  ;;  %s33_s25 = int_to_ptr.vmem [resolvable:$true] %s32_s25 }
   0x6   :  { %s11442_s26 = scalar_lea.vmem %s33_s25, 98304  ;;  %p11447_p1 = scmp.lt.s32.totalorder %s33_s25, %s33_s25 }
   0x7   :  { %p11443_p0 = scmp.ne.s32.totalorder %s33_s25, %s11442_s26  ;;  %p11448_p2 = scmp.lt.s32.totalorder %s11442_s26, %s11442_s26 }
   0x9   :  { %p11449_p3 = por %p11448_p2, %p11447_p1 }
   0xb   :  { %p11450_p4 = pnand %p11449_p3, %p11443_p0 }
   0xd   :  { %11453 = shalt.err (!%p11450_p4)
}
   0xe   :  { %s11605_s27 = smov 64   ;;  %s11606_s28 = smov 4  }
   0xf   :  { %38 = dma.hbm_to_vmem [thread:$0]  %s11739_s1, 98304, %s33_s25, [#allocation6], %s11605_s27, %s11605_s27, %s11606_s28  }
  0x10   :  { %s11607_s8 = smov [#allocation8]  }
  0x11   :  { %s54_s9 = sshll.u32 %s11607_s8, 4  ;;  %s55_s9 = int_to_ptr.vmem [resolvable:$true] %s54_s9 }
  0x12   :  { %s11462_s10 = scalar_lea.vmem %s55_s9, 2048  ;;  %p11467_p6 = scmp.lt.s32.totalorder %s55_s9, %s55_s9 }
  0x13   :  { %p11463_p5 = scmp.ne.s32.totalorder %s55_s9, %s11462_s10  ;;  %p11468_p7 = scmp.lt.s32.totalorder %s11462_s10, %s11462_s10 }
  0x15   :  { %p11469_p8 = por %p11468_p7, %p11467_p6 }
  0x17   :  { %p11470_p9 = pnand %p11469_p8, %p11463_p5 }
  0x19   :  { %11473 = shalt.err (!%p11470_p9)
}
  0x1a   :  { %s11608_s11 = smov 128   ;;  %s11609_s12 = smov 8  }
  0x1b   :  { %60 = dma.hbm_to_vmem [thread:$0]  %s11741_s3, 2048, %s55_s9, [#allocation9], %s11608_s11, %s11608_s11, %s11609_s12  }
  0x1c   :  { %s11610_s15 = smov [#allocation11]   ;;  %s11611_s17 = smov [#allocation2]  }
  0x1d   :  { %s76_s16 = sshll.u32 %s11610_s15, 4  ;;  %s23_s1 = sshll.u32 %s11611_s17, 4  ;;  %s77_s16 = int_to_ptr.vmem [resolvable:$true] %s76_s16  ;;  %s24_s1 = int_to_ptr.vmem [resolvable:$true] %s23_s1 }
  0x1e   :  { %s11482_s18 = scalar_lea.vmem %s77_s16, 2048  ;;  %p11487_p11 = scmp.lt.s32.totalorder %s77_s16, %s77_s16 }
  0x1f   :  { %p11483_p10 = scmp.ne.s32.totalorder %s77_s16, %s11482_s18  ;;  %p11488_p12 = scmp.lt.s32.totalorder %s11482_s18, %s11482_s18 }
  0x21   :  { %p11489_p13 = por %p11488_p12, %p11487_p11 }
  0x23   :  { %p11490_p0 = pnand %p11489_p13, %p11483_p10 }
  0x25   :  { %11493 = shalt.err (!%p11490_p0)
}
  0x26   :  { %82 = dma.hbm_to_vmem [thread:$0]  %s11743_s5, 2048, %s77_s16, [#allocation12], %s11605_s27, %s11605_s27, %s11606_s28  }
  0x27   :  { %s11502_s3 = scalar_lea.vmem %s24_s1, 12288  ;;  %p11507_p2 = scmp.lt.s32.totalorder %s24_s1, %s24_s1 }
  0x28   :  { %p11503_p1 = scmp.ne.s32.totalorder %s24_s1, %s11502_s3  ;;  %p11508_p3 = scmp.lt.s32.totalorder %s11502_s3, %s11502_s3 }
  0x2a   :  { %p11509_p4 = por %p11508_p3, %p11507_p2 }
  0x2c   :  { %p11510_p5 = pnand %p11509_p4, %p11503_p1 }
  0x2e   :  { %11513 = shalt.err (!%p11510_p5)
}
  0x2f   :  { %26 = dma.hbm_to_vmem [thread:$0]  %s11738_s0, 12288, %s24_s1, [#allocation3]  }
  0x30   :  { %s11612_s23 = smov [#allocation7]   ;;  %s11613_s25 = smov [#allocation10]  }
  0x31   :  { %s45_s24 = sshll.u32 %s11612_s23, 4  ;;  %s67_s26 = sshll.u32 %s11613_s25, 4  ;;  %s46_s24 = int_to_ptr.vmem [resolvable:$true] %s45_s24  ;;  %s68_s26 = int_to_ptr.vmem [resolvable:$true] %s67_s26 }
  0x32   :  { %s11522_s29 = scalar_lea.vmem %s46_s24, 16  ;;  %s11526_s5 = scalar_lea.vmem %s46_s24, 32 }
  0x33   :  { %p11523_p6 = scmp.ne.s32.totalorder %s46_s24, %s11522_s29  ;;  %p11527_p7 = scmp.lt.s32.totalorder %s46_s24, %s46_s24 }
  0x34   :  { %p11528_p8 = scmp.lt.s32.totalorder %s11526_s5, %s11522_s29 }
  0x36   :  { %p11529_p9 = por %p11528_p8, %p11527_p7 }
  0x38   :  { %p11530_p10 = pnand %p11529_p9, %p11523_p6 }
  0x3a   :  { %11533 = shalt.err (!%p11530_p10)
}
  0x3b   :  { %48 = dma.hbm_to_vmem [thread:$0]  %s11740_s2, 16, %s46_s24, [#allocation6]  }
  0x3c   :  { %s11542_s30 = scalar_lea.vmem %s68_s26, 32  ;;  %p11547_p12 = scmp.lt.s32.totalorder %s68_s26, %s68_s26 }
  0x3d   :  { %p11543_p11 = scmp.ne.s32.totalorder %s68_s26, %s11542_s30  ;;  %p11548_p13 = scmp.lt.s32.totalorder %s11542_s30, %s11542_s30 }
  0x3f   :  { %p11549_p0 = por %p11548_p13, %p11547_p12 }
  0x41   :  { %p11550_p1 = pnand %p11549_p0, %p11543_p11 }
  0x43   :  { %11553 = shalt.err (!%p11550_p1)
}
  0x44   :  { %70 = dma.hbm_to_vmem [thread:$0]  %s11742_s4, 32, %s68_s26, [#allocation9]  }
  0x45   :  { %s11614_s9 = smov [#allocation13]  }
  0x46   :  { %s89_s10 = sshll.u32 %s11614_s9, 4  ;;  %s90_s10 = int_to_ptr.vmem [resolvable:$true] %s89_s10 }
  0x47   :  { %s11562_s11 = scalar_lea.vmem %s90_s10, 16  ;;  %s11566_s12 = scalar_lea.vmem %s90_s10, 32 }
  0x48   :  { %p11563_p2 = scmp.ne.s32.totalorder %s90_s10, %s11562_s11  ;;  %p11567_p3 = scmp.lt.s32.totalorder %s90_s10, %s90_s10 }
  0x49   :  { %p11568_p4 = scmp.lt.s32.totalorder %s11566_s12, %s11562_s11 }
  0x4b   :  { %p11569_p5 = por %p11568_p4, %p11567_p3 }
  0x4d   :  { %p11570_p6 = pnand %p11569_p5, %p11563_p2 }
  0x4f   :  { %11573 = shalt.err (!%p11570_p6)
}
  0x50   :  { %92 = dma.hbm_to_vmem [thread:$0]  %s11744_s6, 16, %s90_s10, [#allocation12]  }
  0x51   :  { %11594 = dma.done.wait [#allocation3], 12288  }
  0x52   :  { %11595 = vsyncadd [#allocation3], 4294955008 }
  0x53   :  { %11596 = dma.done.wait [#allocation6], 98320  }
  0x54   :  { %11597 = vsyncadd [#allocation6], 4294868976 }
  0x55   :  { %11598 = dma.done.wait [#allocation9], 2080  }
  0x56   :  { %11599 = vsyncadd [#allocation9], 4294965216 }
  0x57   :  { %11600 = dma.done.wait [#allocation12], 2064  }
  0x58   :  { %11601 = vsyncadd [#allocation12], 4294965232  ;;  %v10626_v0 = vld [vmem:[#allocation5 + $0x78] sm:$0xff]   ;;  %v10630_v4 = vld [vmem:[#allocation5 + $0x70] sm:$0xff]   ;;  %s11616_s4 = smov [#allocation14]  }
  0x59   :  { %v10627_v1 = vld [vmem:[#allocation5 + $0xf8] sm:$0xff]   ;;  %9535 = vmatprep.subr.bf16.mxu0 %v10626_v0  ;;  %v10631_v5 = vld [vmem:[#allocation5 + $0xf0] sm:$0xff]   ;;  %v10634_v8 = vld [vmem:[#allocation5 + $0x68] sm:$0xff]   ;;  %s8721_s6 = sshll.u32 %s11616_s4, 4  ;;  %s8722_s6 = int_to_ptr.vmem [resolvable:$true] %s8721_s6 }
  0x5a   :  { %v10628_v2 = vld [vmem:[#allocation5 + $0x38] sm:$0xff]   ;;  %9557 = vmatprep.subr.bf16.mxu1 %v10627_v1  ;;  %v10632_v6 = vld [vmem:[#allocation5 + $0x30] sm:$0xff]   ;;  %v10635_v9 = vld [vmem:[#allocation5 + $0xe8] sm:$0xff]   ;;  %s11574_s14 = scalar_lea.vmem %s8722_s6, 128  ;;  %p11579_p8 = scmp.lt.s32.totalorder %s8722_s6, %s8722_s6 }
  0x5b   :  { %v10629_v3 = vld [vmem:[#allocation5 + $0xb8] sm:$0xff]   ;;  %9536 = vmatpush3.bf16.msra.mxu0 %v10628_v2  ;;  %v10633_v7 = vld [vmem:[#allocation5 + $0xb0] sm:$0xff]   ;;  %v10636_v10 = vld [vmem:[#allocation5 + $0x28] sm:$0xff]   ;;  %p11575_p7 = scmp.ne.s32.totalorder %s8722_s6, %s11574_s14  ;;  %p11580_p9 = scmp.lt.s32.totalorder %s11574_s14, %s11574_s14 }
  0x5c   :  { %9558 = vmatpush3.bf16.msra.mxu1 %v10629_v3  ;;  %9537 = vmatprep.subr.bf16.mxu0 %v10630_v4  ;;  %v10637_v11 = vld [vmem:[#allocation5 + $0xa8] sm:$0xff]   ;;  %v10638_v12 = vld [vmem:[#allocation5 + $0x60] sm:$0xff]   ;;  %v10642_v16 = vld [vmem:[#allocation5 + $0x58] sm:$0xff]  }
  0x5d   :  { %9559 = vmatprep.subr.bf16.mxu1 %v10631_v5  ;;  %v10639_v13 = vld [vmem:[#allocation5 + $0xe0] sm:$0xff]   ;;  %v10643_v17 = vld [vmem:[#allocation5 + $0xd8] sm:$0xff]   ;;  %v10646_v20 = vld [vmem:[#allocation5 + $0x50] sm:$0xff]   ;;  %p11581_p10 = por %p11580_p9, %p11579_p8 }
  0x5e   :  { %v10640_v14 = vld [vmem:[#allocation5 + $0x20] sm:$0xff]   ;;  %v10644_v18 = vld [vmem:[#allocation5 + $0x18] sm:$0xff]   ;;  %v10647_v21 = vld [vmem:[#allocation5 + $0xd0] sm:$0xff]  }
  0x5f   :  { %9538 = vmatpush3.bf16.msra.mxu0 %v10632_v6  ;;  %v10641_v15 = vld [vmem:[#allocation5 + $0xa0] sm:$0xff]   ;;  %v10645_v19 = vld [vmem:[#allocation5 + $0x98] sm:$0xff]   ;;  %v10648_v22 = vld [vmem:[#allocation5 + $0x10] sm:$0xff]   ;;  %p11582_p11 = pnand %p11581_p10, %p11575_p7 }
  0x60   :  { %9560 = vmatpush3.bf16.msra.mxu1 %v10633_v7  ;;  %9539 = vmatprep.subr.bf16.mxu0 %v10634_v8  ;;  %v10649_v23 = vld [vmem:[#allocation5 + $0x90] sm:$0xff]   ;;  %v10650_v24 = vld [vmem:[#allocation5 + $0x48] sm:$0xff]   ;;  %v10654_v28 = vld [vmem:[#allocation5 + $0x40] sm:$0xff]  }
  0x61   :  { %9561 = vmatprep.subr.bf16.mxu1 %v10635_v9  ;;  %v10651_v25 = vld [vmem:[#allocation5 + $0xc8] sm:$0xff]   ;;  %v10655_v29 = vld [vmem:[#allocation5 + $0xc0] sm:$0xff]   ;;  %v118_v33 = vld [vmem:[#allocation2 + $0x18] sm:$0xff] }
  0x62   :  { %v10652_v26 = vld [vmem:[#allocation5 + $0x8] sm:$0xff]   ;;  %v10656_v30 = vld [vmem:[#allocation5] sm:$0xff]   ;;  %v214_v36 = vpack.c.bf16 %v118_v33, %v118_v33  ;;  %v117_v38 = vld [vmem:[#allocation2 + $0x10] sm:$0xff] }
  0x63   :  { %9540 = vmatpush3.bf16.msra.mxu0 %v10636_v10  ;;  %v10653_v27 = vld [vmem:[#allocation5 + $0x88] sm:$0xff]   ;;  %v10657_v31 = vld [vmem:[#allocation5 + $0x80] sm:$0xff]   ;;  %v213_v39 = vpack.c.bf16 %v117_v38, %v117_v38  ;;  %v10658_v40 = vld [vmem:[#allocation5 + $0x178] sm:$0xff]  }
  0x64   :  { %9562 = vmatpush3.bf16.msra.mxu1 %v10637_v11  ;;  %9541 = vmatprep.subr.bf16.mxu0 %v10638_v12  ;;  %v116_v32 = vld [vmem:[#allocation2 + $0x8] sm:$0xff]  ;;  %v115_v34 = vld [vmem:[#allocation2] sm:$0xff]  ;;  %v10659_v41 = vld [vmem:[#allocation5 + $0x1f8] sm:$0xff]  }
  0x65   :  { %9563 = vmatprep.subr.bf16.mxu1 %v10639_v13  ;;  %v212_v35 = vpack.c.bf16 %v116_v32, %v116_v32  ;;  %v211_v37 = vpack.c.bf16 %v115_v34, %v115_v34  ;;  %6530 = vmatprep.mubr.bf16.mxu1 %v214_v36  ;;  %v10660_v42 = vld [vmem:[#allocation5 + $0x138] sm:$0xff]   ;;  %v10662_v44 = vld [vmem:[#allocation5 + $0x170] sm:$0xff]   ;;  %v10666_v48 = vld [vmem:[#allocation5 + $0x168] sm:$0xff]  }
  0x66   :  { %v10661_v43 = vld [vmem:[#allocation5 + $0x1b8] sm:$0xff]   ;;  %v10663_v45 = vld [vmem:[#allocation5 + $0x1f0] sm:$0xff]   ;;  %v10667_v49 = vld [vmem:[#allocation5 + $0x1e8] sm:$0xff]  }
  0x67   :  { %9542 = vmatpush3.bf16.msra.mxu0 %v10640_v14  ;;  %6490 = vmatprep.mubr.bf16.mxu0 %v212_v35  ;;  %v10664_v46 = vld [vmem:[#allocation5 + $0x130] sm:$0xff]   ;;  %v10668_v50 = vld [vmem:[#allocation5 + $0x128] sm:$0xff]   ;;  %v10670_v52 = vld [vmem:[#allocation5 + $0x160] sm:$0xff]  }
  0x68   :  { %9564 = vmatpush3.bf16.msra.mxu1 %v10641_v15  ;;  %9543 = vmatprep.subr.bf16.mxu0 %v10642_v16  ;;  %v10665_v47 = vld [vmem:[#allocation5 + $0x1b0] sm:$0xff]   ;;  %v10669_v51 = vld [vmem:[#allocation5 + $0x1a8] sm:$0xff]   ;;  %v10671_v53 = vld [vmem:[#allocation5 + $0x1e0] sm:$0xff]  }
  0x69   :  { %9565 = vmatprep.subr.bf16.mxu1 %v10643_v17  ;;  %v10672_v54 = vld [vmem:[#allocation5 + $0x120] sm:$0xff]   ;;  %v10674_v56 = vld [vmem:[#allocation5 + $0x158] sm:$0xff]   ;;  %v10678_v60 = vld [vmem:[#allocation5 + $0x150] sm:$0xff]  }
  0x6a   :  { %v10673_v55 = vld [vmem:[#allocation5 + $0x1a0] sm:$0xff]   ;;  %v10675_v57 = vld [vmem:[#allocation5 + $0x1d8] sm:$0xff]   ;;  %v10679_v61 = vld [vmem:[#allocation5 + $0x1d0] sm:$0xff]  }
  0x6b   :  { %9544 = vmatpush3.bf16.msra.mxu0 %v10644_v18  ;;  %v10676_v58 = vld [vmem:[#allocation5 + $0x118] sm:$0xff]   ;;  %v10680_v62 = vld [vmem:[#allocation5 + $0x110] sm:$0xff]   ;;  %v10682_v0 = vld [vmem:[#allocation5 + $0x148] sm:$0xff]  }
  0x6c   :  { %9566 = vmatpush3.bf16.msra.mxu1 %v10645_v19  ;;  %9545 = vmatprep.subr.bf16.mxu0 %v10646_v20  ;;  %v10677_v59 = vld [vmem:[#allocation5 + $0x198] sm:$0xff]   ;;  %v10681_v63 = vld [vmem:[#allocation5 + $0x190] sm:$0xff]   ;;  %v10683_v1 = vld [vmem:[#allocation5 + $0x1c8] sm:$0xff]  }
  0x6d   :  { %9567 = vmatprep.subr.bf16.mxu1 %v10647_v21  ;;  %v10684_v2 = vld [vmem:[#allocation5 + $0x108] sm:$0xff]   ;;  %v10686_v4 = vld [vmem:[#allocation5 + $0x140] sm:$0xff]   ;;  %v122_v9 = vld [vmem:[#allocation2 + $0x38] sm:$0xff] }
  0x6e   :  { %v10685_v3 = vld [vmem:[#allocation5 + $0x188] sm:$0xff]   ;;  %v10687_v5 = vld [vmem:[#allocation5 + $0x1c0] sm:$0xff]   ;;  %v218_v11 = vpack.c.bf16 %v122_v9, %v122_v9  ;;  %v121_v13 = vld [vmem:[#allocation2 + $0x30] sm:$0xff] }
  0x6f   :  { %9546 = vmatpush3.bf16.msra.mxu0 %v10648_v22  ;;  %v10688_v6 = vld [vmem:[#allocation5 + $0x100] sm:$0xff]   ;;  %v120_v8 = vld [vmem:[#allocation2 + $0x28] sm:$0xff]  ;;  %v217_v15 = vpack.c.bf16 %v121_v13, %v121_v13  ;;  %v10690_v16 = vld [vmem:[#allocation5 + $0x278] sm:$0xff]  }
  0x70   :  { %9568 = vmatpush3.bf16.msra.mxu1 %v10649_v23  ;;  %9547 = vmatprep.subr.bf16.mxu0 %v10650_v24  ;;  %v10689_v7 = vld [vmem:[#allocation5 + $0x180] sm:$0xff]   ;;  %v216_v10 = vpack.c.bf16 %v120_v8, %v120_v8  ;;  %v10691_v17 = vld [vmem:[#allocation5 + $0x2f8] sm:$0xff]   ;;  %v10694_v20 = vld [vmem:[#allocation5 + $0x270] sm:$0xff]  }
  0x71   :  { %9569 = vmatprep.subr.bf16.mxu1 %v10651_v25  ;;  %v119_v12 = vld [vmem:[#allocation2 + $0x20] sm:$0xff]  ;;  %v10692_v18 = vld [vmem:[#allocation5 + $0x238] sm:$0xff]   ;;  %v10695_v21 = vld [vmem:[#allocation5 + $0x2f0] sm:$0xff]  }
  0x72   :  { %v215_v14 = vpack.c.bf16 %v119_v12, %v119_v12  ;;  %v10693_v19 = vld [vmem:[#allocation5 + $0x2b8] sm:$0xff]   ;;  %v10696_v22 = vld [vmem:[#allocation5 + $0x230] sm:$0xff]   ;;  %v10698_v24 = vld [vmem:[#allocation5 + $0x268] sm:$0xff]  }
  0x73   :  { %9548 = vmatpush3.bf16.msra.mxu0 %v10652_v26  ;;  %v10697_v23 = vld [vmem:[#allocation5 + $0x2b0] sm:$0xff]   ;;  %v10699_v25 = vld [vmem:[#allocation5 + $0x2e8] sm:$0xff]   ;;  %v10706_v32 = vld [vmem:[#allocation5 + $0x258] sm:$0xff]  }
  0x74   :  { %9570 = vmatpush3.bf16.msra.mxu1 %v10653_v27  ;;  %9549 = vmatprep.subr.bf16.mxu0 %v10654_v28  ;;  %v10700_v26 = vld [vmem:[#allocation5 + $0x228] sm:$0xff]   ;;  %v10702_v28 = vld [vmem:[#allocation5 + $0x260] sm:$0xff]   ;;  %v10707_v33 = vld [vmem:[#allocation5 + $0x2d8] sm:$0xff]  }
  0x75   :  { %9571 = vmatprep.subr.bf16.mxu1 %v10655_v29  ;;  %v10701_v27 = vld [vmem:[#allocation5 + $0x2a8] sm:$0xff]   ;;  %v10703_v29 = vld [vmem:[#allocation5 + $0x2e0] sm:$0xff]   ;;  %v10708_v34 = vld [vmem:[#allocation5 + $0x218] sm:$0xff]  }
  0x76   :  { %v10709_v35 = vld [vmem:[#allocation5 + $0x298] sm:$0xff]   ;;  %v10710_v36 = vld [vmem:[#allocation5 + $0x250] sm:$0xff]  }
  0x77   :  { %9550 = vmatpush3.bf16.msra.mxu0 %v10656_v30  ;;  %v10704_v30 = vld [vmem:[#allocation5 + $0x220] sm:$0xff]   ;;  %v10712_v38 = vld [vmem:[#allocation5 + $0x210] sm:$0xff]   ;;  %v10738_v8 = vld [vmem:[#allocation5 + $0x358] sm:$0xff]  }
  0x78   :  { %9572 = vmatpush3.bf16.msra.mxu1 %v10657_v31  ;;  %9579 = vmatprep.subr.bf16.mxu0 %v10658_v40  ;;  %v10705_v31 = vld [vmem:[#allocation5 + $0x2a0] sm:$0xff]   ;;  %v10714_v40 = vld [vmem:[#allocation5 + $0x248] sm:$0xff]   ;;  %v10739_v9 = vld [vmem:[#allocation5 + $0x3d8] sm:$0xff]  }
  0x79   :  { %9601 = vmatprep.subr.bf16.mxu1 %v10659_v41  ;;  %v10715_v41 = vld [vmem:[#allocation5 + $0x2c8] sm:$0xff]   ;;  %v10742_v12 = vld [vmem:[#allocation5 + $0x350] sm:$0xff]  }
  0x7a   :  { %6491 = vmatmul.mubr.bf16.vlgmr.msra.gmra.mxu0 %v211_v37  ;;  %v10711_v37 = vld [vmem:[#allocation5 + $0x2d0] sm:$0xff]  }
  0x7b   :  { %6531 = vmatmul.mubr.bf16.vlgmr.msra.gmra.mxu1 %v213_v39  ;;  %9580 = vmatpush3.bf16.msra.mxu0 %v10660_v42  ;;  %v10713_v39 = vld [vmem:[#allocation5 + $0x290] sm:$0xff]   ;;  %v10716_v42 = vld [vmem:[#allocation5 + $0x208] sm:$0xff]  }
  0x7c   :  { %9602 = vmatpush3.bf16.msra.mxu1 %v10661_v43  ;;  %9581 = vmatprep.subr.bf16.mxu0 %v10662_v44  ;;  %v10717_v43 = vld [vmem:[#allocation5 + $0x288] sm:$0xff]   ;;  %v10718_v44 = vld [vmem:[#allocation5 + $0x240] sm:$0xff]   ;;  %v10743_v13 = vld [vmem:[#allocation5 + $0x3d0] sm:$0xff]  }
  0x7d   :  { %9603 = vmatprep.subr.bf16.mxu1 %v10663_v45  ;;  %6570 = vmatprep.mubr.bf16.mxu0 %v216_v10  ;;  %v10719_v45 = vld [vmem:[#allocation5 + $0x2c0] sm:$0xff]   ;;  %v10740_v10 = vld [vmem:[#allocation5 + $0x318] sm:$0xff]  }
  0x7e   :  { %6610 = vmatprep.mubr.bf16.mxu1 %v218_v11  ;;  %v10741_v11 = vld [vmem:[#allocation5 + $0x398] sm:$0xff]  }
  0x7f   :  { %9582 = vmatpush3.bf16.msra.mxu0 %v10664_v46  ;;  %v10720_v46 = vld [vmem:[#allocation5 + $0x200] sm:$0xff]  }
  0x80   :  { %9604 = vmatpush3.bf16.msra.mxu1 %v10665_v47  ;;  %9583 = vmatprep.subr.bf16.mxu0 %v10666_v48  ;;  %v10721_v47 = vld [vmem:[#allocation5 + $0x280] sm:$0xff]   ;;  %v124_v48 = vld [vmem:[#allocation2 + $0x48] sm:$0xff] }
  0x81   :  { %9605 = vmatprep.subr.bf16.mxu1 %v10667_v49  ;;  %v220_v49 = vpack.c.bf16 %v124_v48, %v124_v48  ;;  %v10770_v48 = vld [vmem:[#allocation5 + $0x458] sm:$0xff]  }
  0x83   :  { %9584 = vmatpush3.bf16.msra.mxu0 %v10668_v50  ;;  %v126_v50 = vld [vmem:[#allocation2 + $0x58] sm:$0xff] }
  0x84   :  { %9606 = vmatpush3.bf16.msra.mxu1 %v10669_v51  ;;  %9585 = vmatprep.subr.bf16.mxu0 %v10670_v52  ;;  %v123_v51 = vld [vmem:[#allocation2 + $0x40] sm:$0xff]  ;;  %v125_v52 = vld [vmem:[#allocation2 + $0x50] sm:$0xff] }
  0x85   :  { %9607 = vmatprep.subr.bf16.mxu1 %v10671_v53  ;;  %v222_v53 = vpack.c.bf16 %v126_v50, %v126_v50  ;;  %v10772_v50 = vld [vmem:[#allocation5 + $0x418] sm:$0xff]  }
  0x87   :  { %9586 = vmatpush3.bf16.msra.mxu0 %v10672_v54  ;;  %v219_v54 = vpack.c.bf16 %v123_v51, %v123_v51  ;;  %v10773_v51 = vld [vmem:[#allocation5 + $0x498] sm:$0xff]  }
  0x88   :  { %9608 = vmatpush3.bf16.msra.mxu1 %v10673_v55  ;;  %9587 = vmatprep.subr.bf16.mxu0 %v10674_v56  ;;  %v221_v55 = vpack.c.bf16 %v125_v52, %v125_v52  ;;  %v10722_v56 = vld [vmem:[#allocation5 + $0x378] sm:$0xff]   ;;  %v10774_v52 = vld [vmem:[#allocation5 + $0x450] sm:$0xff]  }
  0x89   :  { %9609 = vmatprep.subr.bf16.mxu1 %v10675_v57  ;;  %v10723_v57 = vld [vmem:[#allocation5 + $0x3f8] sm:$0xff]  }
  0x8b   :  { %9588 = vmatpush3.bf16.msra.mxu0 %v10676_v58  ;;  %v10724_v58 = vld [vmem:[#allocation5 + $0x338] sm:$0xff]  }
  0x8c   :  { %9610 = vmatpush3.bf16.msra.mxu1 %v10677_v59  ;;  %9589 = vmatprep.subr.bf16.mxu0 %v10678_v60  ;;  %v10725_v59 = vld [vmem:[#allocation5 + $0x3b8] sm:$0xff]   ;;  %v10726_v60 = vld [vmem:[#allocation5 + $0x370] sm:$0xff]  }
  0x8d   :  { %9611 = vmatprep.subr.bf16.mxu1 %v10679_v61  ;;  %v10727_v61 = vld [vmem:[#allocation5 + $0x3f0] sm:$0xff]  }
  0x8f   :  { %9590 = vmatpush3.bf16.msra.mxu0 %v10680_v62  ;;  %v10728_v62 = vld [vmem:[#allocation5 + $0x330] sm:$0xff]  }
  0x90   :  { %9612 = vmatpush3.bf16.msra.mxu1 %v10681_v63  ;;  %9591 = vmatprep.subr.bf16.mxu0 %v10682_v0  ;;  %v10729_v63 = vld [vmem:[#allocation5 + $0x3b0] sm:$0xff]   ;;  %v10730_v0 = vld [vmem:[#allocation5 + $0x368] sm:$0xff]  }
  0x91   :  { %9613 = vmatprep.subr.bf16.mxu1 %v10683_v1  ;;  %v10731_v1 = vld [vmem:[#allocation5 + $0x3e8] sm:$0xff]  }
  0x93   :  { %9592 = vmatpush3.bf16.msra.mxu0 %v10684_v2  ;;  %v10732_v2 = vld [vmem:[#allocation5 + $0x328] sm:$0xff]  }
  0x94   :  { %9614 = vmatpush3.bf16.msra.mxu1 %v10685_v3  ;;  %9593 = vmatprep.subr.bf16.mxu0 %v10686_v4  ;;  %v10733_v3 = vld [vmem:[#allocation5 + $0x3a8] sm:$0xff]   ;;  %v10734_v4 = vld [vmem:[#allocation5 + $0x360] sm:$0xff]  }
  0x95   :  { %9615 = vmatprep.subr.bf16.mxu1 %v10687_v5  ;;  %v10735_v5 = vld [vmem:[#allocation5 + $0x3e0] sm:$0xff]  }
  0x97   :  { %9594 = vmatpush3.bf16.msra.mxu0 %v10688_v6  ;;  %v10736_v6 = vld [vmem:[#allocation5 + $0x320] sm:$0xff]  }
  0x98   :  { %9616 = vmatpush3.bf16.msra.mxu1 %v10689_v7  ;;  %9623 = vmatprep.subr.bf16.mxu0 %v10690_v16  ;;  %v10737_v7 = vld [vmem:[#allocation5 + $0x3a0] sm:$0xff]   ;;  %v10746_v16 = vld [vmem:[#allocation5 + $0x348] sm:$0xff]  }
  0x99   :  { %9645 = vmatprep.subr.bf16.mxu1 %v10691_v17  ;;  %v10747_v17 = vld [vmem:[#allocation5 + $0x3c8] sm:$0xff]  }
  0x9a   :  { %6571 = vmatmul.mubr.bf16.vlgmr.msra.gmra.mxu0 %v215_v14  ;;  %v10744_v14 = vld [vmem:[#allocation5 + $0x310] sm:$0xff]  }
  0x9b   :  { %6611 = vmatmul.mubr.bf16.vlgmr.msra.gmra.mxu1 %v217_v15  ;;  %9624 = vmatpush3.bf16.msra.mxu0 %v10692_v18  ;;  %v10745_v15 = vld [vmem:[#allocation5 + $0x390] sm:$0xff]   ;;  %v10748_v18 = vld [vmem:[#allocation5 + $0x308] sm:$0xff]  }
  0x9c   :  { %9646 = vmatpush3.bf16.msra.mxu1 %v10693_v19  ;;  %9625 = vmatprep.subr.bf16.mxu0 %v10694_v20  ;;  %v10749_v19 = vld [vmem:[#allocation5 + $0x388] sm:$0xff]   ;;  %v10750_v20 = vld [vmem:[#allocation5 + $0x340] sm:$0xff]  }
  0x9d   :  { %9647 = vmatprep.subr.bf16.mxu1 %v10695_v21  ;;  %6650 = vmatprep.mubr.bf16.mxu0 %v220_v49  ;;  %v10751_v21 = vld [vmem:[#allocation5 + $0x3c0] sm:$0xff]   ;;  %v10771_v49 = vld [vmem:[#allocation5 + $0x4d8] sm:$0xff]  }
  0x9e   :  { %6690 = vmatprep.mubr.bf16.mxu1 %v222_v53  ;;  %v10775_v53 = vld [vmem:[#allocation5 + $0x4d0] sm:$0xff]  }
  0x9f   :  { %9626 = vmatpush3.bf16.msra.mxu0 %v10696_v22  ;;  %v10752_v22 = vld [vmem:[#allocation5 + $0x300] sm:$0xff]  }
  0xa0   :  { %9648 = vmatpush3.bf16.msra.mxu1 %v10697_v23  ;;  %9627 = vmatprep.subr.bf16.mxu0 %v10698_v24  ;;  %v10753_v23 = vld [vmem:[#allocation5 + $0x380] sm:$0xff]   ;;  %v128_v24 = vld [vmem:[#allocation2 + $0x68] sm:$0xff] }
  0xa1   :  { %9649 = vmatprep.subr.bf16.mxu1 %v10699_v25  ;;  %v130_v25 = vld [vmem:[#allocation2 + $0x78] sm:$0xff] }
  0xa3   :  { %9628 = vmatpush3.bf16.msra.mxu0 %v10700_v26  ;;  %v127_v26 = vld [vmem:[#allocation2 + $0x60] sm:$0xff] }
  0xa4   :  { %9650 = vmatpush3.bf16.msra.mxu1 %v10701_v27  ;;  %9629 = vmatprep.subr.bf16.mxu0 %v10702_v28  ;;  %v224_v27 = vpack.c.bf16 %v128_v24, %v128_v24  ;;  %v226_v28 = vpack.c.bf16 %v130_v25, %v130_v25  ;;  %v10802_v24 = vld [vmem:[#allocation5 + $0x558] sm:$0xff]  }
  0xa5   :  { %9651 = vmatprep.subr.bf16.mxu1 %v10703_v29  ;;  %v223_v29 = vpack.c.bf16 %v127_v26, %v127_v26  ;;  %v10803_v25 = vld [vmem:[#allocation5 + $0x5d8] sm:$0xff]  }
  0xa6   :  { %v10804_v26 = vld [vmem:[#allocation5 + $0x518] sm:$0xff]  }
  0xa7   :  { %9630 = vmatpush3.bf16.msra.mxu0 %v10704_v30  ;;  %v129_v30 = vld [vmem:[#allocation2 + $0x70] sm:$0xff] }
  0xa8   :  { %9652 = vmatpush3.bf16.msra.mxu1 %v10705_v31  ;;  %9631 = vmatprep.subr.bf16.mxu0 %v10706_v32  ;;  %v225_v31 = vpack.c.bf16 %v129_v30, %v129_v30  ;;  %v10754_v32 = vld [vmem:[#allocation5 + $0x478] sm:$0xff]   ;;  %v10808_v30 = vld [vmem:[#allocation5 + $0x510] sm:$0xff]  }
  0xa9   :  { %9653 = vmatprep.subr.bf16.mxu1 %v10707_v33  ;;  %v10755_v33 = vld [vmem:[#allocation5 + $0x4f8] sm:$0xff]  }
  0xab   :  { %9632 = vmatpush3.bf16.msra.mxu0 %v10708_v34  ;;  %v10756_v34 = vld [vmem:[#allocation5 + $0x438] sm:$0xff]  }
  0xac   :  { %9654 = vmatpush3.bf16.msra.mxu1 %v10709_v35  ;;  %9633 = vmatprep.subr.bf16.mxu0 %v10710_v36  ;;  %v10757_v35 = vld [vmem:[#allocation5 + $0x4b8] sm:$0xff]   ;;  %v10758_v36 = vld [vmem:[#allocation5 + $0x470] sm:$0xff]  }
  0xad   :  { %9655 = vmatprep.subr.bf16.mxu1 %v10711_v37  ;;  %v10759_v37 = vld [vmem:[#allocation5 + $0x4f0] sm:$0xff]  }
  0xaf   :  { %9634 = vmatpush3.bf16.msra.mxu0 %v10712_v38  ;;  %v10760_v38 = vld [vmem:[#allocation5 + $0x430] sm:$0xff]  }
  0xb0   :  { %9656 = vmatpush3.bf16.msra.mxu1 %v10713_v39  ;;  %9635 = vmatprep.subr.bf16.mxu0 %v10714_v40  ;;  %v10761_v39 = vld [vmem:[#allocation5 + $0x4b0] sm:$0xff]   ;;  %v10762_v40 = vld [vmem:[#allocation5 + $0x468] sm:$0xff]  }
  0xb1   :  { %9657 = vmatprep.subr.bf16.mxu1 %v10715_v41  ;;  %v10763_v41 = vld [vmem:[#allocation5 + $0x4e8] sm:$0xff]  }
  0xb3   :  { %9636 = vmatpush3.bf16.msra.mxu0 %v10716_v42  ;;  %v10764_v42 = vld [vmem:[#allocation5 + $0x428] sm:$0xff]  }
  0xb4   :  { %9658 = vmatpush3.bf16.msra.mxu1 %v10717_v43  ;;  %9637 = vmatprep.subr.bf16.mxu0 %v10718_v44  ;;  %v10765_v43 = vld [vmem:[#allocation5 + $0x4a8] sm:$0xff]   ;;  %v10766_v44 = vld [vmem:[#allocation5 + $0x460] sm:$0xff]  }
  0xb5   :  { %9659 = vmatprep.subr.bf16.mxu1 %v10719_v45  ;;  %v10767_v45 = vld [vmem:[#allocation5 + $0x4e0] sm:$0xff]  }
  0xb7   :  { %9638 = vmatpush3.bf16.msra.mxu0 %v10720_v46  ;;  %v10768_v46 = vld [vmem:[#allocation5 + $0x420] sm:$0xff]  }
  0xb8   :  { %9660 = vmatpush3.bf16.msra.mxu1 %v10721_v47  ;;  %9667 = vmatprep.subr.bf16.mxu0 %v10722_v56  ;;  %v10769_v47 = vld [vmem:[#allocation5 + $0x4a0] sm:$0xff]   ;;  %v10778_v56 = vld [vmem:[#allocation5 + $0x448] sm:$0xff]  }
  0xb9   :  { %9689 = vmatprep.subr.bf16.mxu1 %v10723_v57  ;;  %v10779_v57 = vld [vmem:[#allocation5 + $0x4c8] sm:$0xff]  }
  0xba   :  { %6651 = vmatmul.mubr.bf16.vlgmr.msra.gmra.mxu0 %v219_v54  ;;  %v10776_v54 = vld [vmem:[#allocation5 + $0x410] sm:$0xff]  }
  0xbb   :  { %6691 = vmatmul.mubr.bf16.vlgmr.msra.gmra.mxu1 %v221_v55  ;;  %9668 = vmatpush3.bf16.msra.mxu0 %v10724_v58  ;;  %v10777_v55 = vld [vmem:[#allocation5 + $0x490] sm:$0xff]   ;;  %v10780_v58 = vld [vmem:[#allocation5 + $0x408] sm:$0xff]  }
  0xbc   :  { %9690 = vmatpush3.bf16.msra.mxu1 %v10725_v59  ;;  %9669 = vmatprep.subr.bf16.mxu0 %v10726_v60  ;;  %v10781_v59 = vld [vmem:[#allocation5 + $0x488] sm:$0xff]   ;;  %v10782_v60 = vld [vmem:[#allocation5 + $0x440] sm:$0xff]  }
  0xbd   :  { %9691 = vmatprep.subr.bf16.mxu1 %v10727_v61  ;;  %6730 = vmatprep.mubr.bf16.mxu0 %v224_v27  ;;  %v10783_v61 = vld [vmem:[#allocation5 + $0x4c0] sm:$0xff]   ;;  %v10805_v27 = vld [vmem:[#allocation5 + $0x598] sm:$0xff]  }
  0xbe   :  { %6770 = vmatprep.mubr.bf16.mxu1 %v226_v28  ;;  %v10806_v28 = vld [vmem:[#allocation5 + $0x550] sm:$0xff]  }
  0xbf   :  { %9670 = vmatpush3.bf16.msra.mxu0 %v10728_v62  ;;  %v10784_v62 = vld [vmem:[#allocation5 + $0x400] sm:$0xff]  }
  0xc0   :  { %9692 = vmatpush3.bf16.msra.mxu1 %v10729_v63  ;;  %9671 = vmatprep.subr.bf16.mxu0 %v10730_v0  ;;  %v10785_v63 = vld [vmem:[#allocation5 + $0x480] sm:$0xff]   ;;  %v132_v0 = vld [vmem:[#allocation2 + $0x88] sm:$0xff] }
  0xc1   :  { %9693 = vmatprep.subr.bf16.mxu1 %v10731_v1  ;;  %v134_v1 = vld [vmem:[#allocation2 + $0x98] sm:$0xff] }
  0xc3   :  { %9672 = vmatpush3.bf16.msra.mxu0 %v10732_v2  ;;  %v228_v2 = vpack.c.bf16 %v132_v0, %v132_v0  ;;  %v10834_v0 = vld [vmem:[#allocation5 + $0x658] sm:$0xff]  }
  0xc4   :  { %9694 = vmatpush3.bf16.msra.mxu1 %v10733_v3  ;;  %9673 = vmatprep.subr.bf16.mxu0 %v10734_v4  ;;  %v230_v3 = vpack.c.bf16 %v134_v1, %v134_v1  ;;  %v131_v4 = vld [vmem:[#allocation2 + $0x80] sm:$0xff]  ;;  %v10835_v1 = vld [vmem:[#allocation5 + $0x6d8] sm:$0xff]  }
  0xc5   :  { %9695 = vmatprep.subr.bf16.mxu1 %v10735_v5  ;;  %v133_v5 = vld [vmem:[#allocation2 + $0x90] sm:$0xff] }
  0xc7   :  { %9674 = vmatpush3.bf16.msra.mxu0 %v10736_v6  ;;  %v227_v6 = vpack.c.bf16 %v131_v4, %v131_v4  ;;  %v10838_v4 = vld [vmem:[#allocation5 + $0x650] sm:$0xff]  }
  0xc8   :  { %9696 = vmatpush3.bf16.msra.mxu1 %v10737_v7  ;;  %9675 = vmatprep.subr.bf16.mxu0 %v10738_v8  ;;  %v229_v7 = vpack.c.bf16 %v133_v5, %v133_v5  ;;  %v10786_v8 = vld [vmem:[#allocation5 + $0x578] sm:$0xff]   ;;  %v10839_v5 = vld [vmem:[#allocation5 + $0x6d0] sm:$0xff]  }
  0xc9   :  { %9697 = vmatprep.subr.bf16.mxu1 %v10739_v9  ;;  %v10787_v9 = vld [vmem:[#allocation5 + $0x5f8] sm:$0xff]  }
  0xcb   :  { %9676 = vmatpush3.bf16.msra.mxu0 %v10740_v10  ;;  %v10788_v10 = vld [vmem:[#allocation5 + $0x538] sm:$0xff]  }
  0xcc   :  { %9698 = vmatpush3.bf16.msra.mxu1 %v10741_v11  ;;  %9677 = vmatprep.subr.bf16.mxu0 %v10742_v12  ;;  %v10789_v11 = vld [vmem:[#allocation5 + $0x5b8] sm:$0xff]   ;;  %v10790_v12 = vld [vmem:[#allocation5 + $0x570] sm:$0xff]  }
  0xcd   :  { %9699 = vmatprep.subr.bf16.mxu1 %v10743_v13  ;;  %v10791_v13 = vld [vmem:[#allocation5 + $0x5f0] sm:$0xff]  }
  0xcf   :  { %9678 = vmatpush3.bf16.msra.mxu0 %v10744_v14  ;;  %v10792_v14 = vld [vmem:[#allocation5 + $0x530] sm:$0xff]  }
  0xd0   :  { %9700 = vmatpush3.bf16.msra.mxu1 %v10745_v15  ;;  %9679 = vmatprep.subr.bf16.mxu0 %v10746_v16  ;;  %v10793_v15 = vld [vmem:[#allocation5 + $0x5b0] sm:$0xff]   ;;  %v10794_v16 = vld [vmem:[#allocation5 + $0x568] sm:$0xff]  }
  0xd1   :  { %9701 = vmatprep.subr.bf16.mxu1 %v10747_v17  ;;  %v10795_v17 = vld [vmem:[#allocation5 + $0x5e8] sm:$0xff]  }
  0xd3   :  { %9680 = vmatpush3.bf16.msra.mxu0 %v10748_v18  ;;  %v10796_v18 = vld [vmem:[#allocation5 + $0x528] sm:$0xff]  }
  0xd4   :  { %9702 = vmatpush3.bf16.msra.mxu1 %v10749_v19  ;;  %9681 = vmatprep.subr.bf16.mxu0 %v10750_v20  ;;  %v10797_v19 = vld [vmem:[#allocation5 + $0x5a8] sm:$0xff]   ;;  %v10798_v20 = vld [vmem:[#allocation5 + $0x560] sm:$0xff]  }
  0xd5   :  { %9703 = vmatprep.subr.bf16.mxu1 %v10751_v21  ;;  %v10799_v21 = vld [vmem:[#allocation5 + $0x5e0] sm:$0xff]  }
  0xd7   :  { %9682 = vmatpush3.bf16.msra.mxu0 %v10752_v22  ;;  %v10800_v22 = vld [vmem:[#allocation5 + $0x520] sm:$0xff]  }
  0xd8   :  { %9704 = vmatpush3.bf16.msra.mxu1 %v10753_v23  ;;  %9711 = vmatprep.subr.bf16.mxu0 %v10754_v32  ;;  %v10801_v23 = vld [vmem:[#allocation5 + $0x5a0] sm:$0xff]   ;;  %v10810_v32 = vld [vmem:[#allocation5 + $0x548] sm:$0xff]  }
  0xd9   :  { %9733 = vmatprep.subr.bf16.mxu1 %v10755_v33  ;;  %v10811_v33 = vld [vmem:[#allocation5 + $0x5c8] sm:$0xff]  }
  0xda   :  { %6731 = vmatmul.mubr.bf16.vlgmr.msra.gmra.mxu0 %v223_v29  ;;  %v10807_v29 = vld [vmem:[#allocation5 + $0x5d0] sm:$0xff]  }
  0xdb   :  { %6771 = vmatmul.mubr.bf16.vlgmr.msra.gmra.mxu1 %v225_v31  ;;  %9712 = vmatpush3.bf16.msra.mxu0 %v10756_v34  ;;  %v10809_v31 = vld [vmem:[#allocation5 + $0x590] sm:$0xff]   ;;  %v10812_v34 = vld [vmem:[#allocation5 + $0x508] sm:$0xff]  }
  0xdc   :  { %9734 = vmatpush3.bf16.msra.mxu1 %v10757_v35  ;;  %9713 = vmatprep.subr.bf16.mxu0 %v10758_v36  ;;  %v10813_v35 = vld [vmem:[#allocation5 + $0x588] sm:$0xff]   ;;  %v10814_v36 = vld [vmem:[#allocation5 + $0x540] sm:$0xff]  }
  0xdd   :  { %9735 = vmatprep.subr.bf16.mxu1 %v10759_v37  ;;  %6810 = vmatprep.mubr.bf16.mxu0 %v228_v2  ;;  %v10815_v37 = vld [vmem:[#allocation5 + $0x5c0] sm:$0xff]   ;;  %v10836_v2 = vld [vmem:[#allocation5 + $0x618] sm:$0xff]  }
  0xde   :  { %6850 = vmatprep.mubr.bf16.mxu1 %v230_v3  ;;  %v10837_v3 = vld [vmem:[#allocation5 + $0x698] sm:$0xff]  }
  0xdf   :  { %9714 = vmatpush3.bf16.msra.mxu0 %v10760_v38  ;;  %v10816_v38 = vld [vmem:[#allocation5 + $0x500] sm:$0xff]  }
  0xe0   :  { %9736 = vmatpush3.bf16.msra.mxu1 %v10761_v39  ;;  %9715 = vmatprep.subr.bf16.mxu0 %v10762_v40  ;;  %v10817_v39 = vld [vmem:[#allocation5 + $0x580] sm:$0xff]   ;;  %v136_v40 = vld [vmem:[#allocation2 + $0xa8] sm:$0xff] }
  0xe1   :  { %9737 = vmatprep.subr.bf16.mxu1 %v10763_v41  ;;  %v232_v41 = vpack.c.bf16 %v136_v40, %v136_v40  ;;  %v10854_v40 = vld [vmem:[#allocation5 + $0x770] sm:$0xff]  }
  0xe3   :  { %9716 = vmatpush3.bf16.msra.mxu0 %v10764_v42  ;;  %v138_v42 = vld [vmem:[#allocation2 + $0xb8] sm:$0xff] }
  0xe4   :  { %9738 = vmatpush3.bf16.msra.mxu1 %v10765_v43  ;;  %9717 = vmatprep.subr.bf16.mxu0 %v10766_v44  ;;  %v135_v43 = vld [vmem:[#allocation2 + $0xa0] sm:$0xff]  ;;  %v137_v44 = vld [vmem:[#allocation2 + $0xb0] sm:$0xff] }
  0xe5   :  { %9739 = vmatprep.subr.bf16.mxu1 %v10767_v45  ;;  %v234_v45 = vpack.c.bf16 %v138_v42, %v138_v42 }
  0xe7   :  { %9718 = vmatpush3.bf16.msra.mxu0 %v10768_v46  ;;  %v231_v46 = vpack.c.bf16 %v135_v43, %v135_v43  ;;  %v10856_v43 = vld [vmem:[#allocation5 + $0x730] sm:$0xff]  }
  0xe8   :  { %9740 = vmatpush3.bf16.msra.mxu1 %v10769_v47  ;;  %9719 = vmatprep.subr.bf16.mxu0 %v10770_v48  ;;  %v233_v47 = vpack.c.bf16 %v137_v44, %v137_v44  ;;  %v10818_v48 = vld [vmem:[#allocation5 + $0x678] sm:$0xff]   ;;  %v10857_v44 = vld [vmem:[#allocation5 + $0x7b0] sm:$0xff]  }
  0xe9   :  { %9741 = vmatprep.subr.bf16.mxu1 %v10771_v49  ;;  %v10819_v49 = vld [vmem:[#allocation5 + $0x6f8] sm:$0xff]  }
  0xeb   :  { %9720 = vmatpush3.bf16.msra.mxu0 %v10772_v50  ;;  %v10820_v50 = vld [vmem:[#allocation5 + $0x638] sm:$0xff]  }
  0xec   :  { %9742 = vmatpush3.bf16.msra.mxu1 %v10773_v51  ;;  %9721 = vmatprep.subr.bf16.mxu0 %v10774_v52  ;;  %v10821_v51 = vld [vmem:[#allocation5 + $0x6b8] sm:$0xff]   ;;  %v10822_v52 = vld [vmem:[#allocation5 + $0x670] sm:$0xff]  }
  0xed   :  { %9743 = vmatprep.subr.bf16.mxu1 %v10775_v53  ;;  %v10823_v53 = vld [vmem:[#allocation5 + $0x6f0] sm:$0xff]  }
  0xef   :  { %9722 = vmatpush3.bf16.msra.mxu0 %v10776_v54  ;;  %v10824_v54 = vld [vmem:[#allocation5 + $0x630] sm:$0xff]  }
  0xf0   :  { %9744 = vmatpush3.bf16.msra.mxu1 %v10777_v55  ;;  %9723 = vmatprep.subr.bf16.mxu0 %v10778_v56  ;;  %v10825_v55 = vld [vmem:[#allocation5 + $0x6b0] sm:$0xff]   ;;  %v10826_v56 = vld [vmem:[#allocation5 + $0x668] sm:$0xff]  }
  0xf1   :  { %9745 = vmatprep.subr.bf16.mxu1 %v10779_v57  ;;  %v10827_v57 = vld [vmem:[#allocation5 + $0x6e8] sm:$0xff]  }
  0xf3   :  { %9724 = vmatpush3.bf16.msra.mxu0 %v10780_v58  ;;  %v10828_v58 = vld [vmem:[#allocation5 + $0x628] sm:$0xff]  }
  0xf4   :  { %9746 = vmatpush3.bf16.msra.mxu1 %v10781_v59  ;;  %9725 = vmatprep.subr.bf16.mxu0 %v10782_v60  ;;  %v10829_v59 = vld [vmem:[#allocation5 + $0x6a8] sm:$0xff]   ;;  %v10830_v60 = vld [vmem:[#allocation5 + $0x660] sm:$0xff]  }
  0xf5   :  { %9747 = vmatprep.subr.bf16.mxu1 %v10783_v61  ;;  %v10831_v61 = vld [vmem:[#allocation5 + $0x6e0] sm:$0xff]  }
  0xf7   :  { %9726 = vmatpush3.bf16.msra.mxu0 %v10784_v62  ;;  %v10832_v62 = vld [vmem:[#allocation5 + $0x620] sm:$0xff]  }
  0xf8   :  { %9748 = vmatpush3.bf16.msra.mxu1 %v10785_v63  ;;  %9755 = vmatprep.subr.bf16.mxu0 %v10786_v8  ;;  %v10833_v63 = vld [vmem:[#allocation5 + $0x6a0] sm:$0xff]   ;;  %v10842_v8 = vld [vmem:[#allocation5 + $0x648] sm:$0xff]  }
  0xf9   :  { %9777 = vmatprep.subr.bf16.mxu1 %v10787_v9  ;;  %v10843_v9 = vld [vmem:[#allocation5 + $0x6c8] sm:$0xff]  }
  0xfa   :  { %6811 = vmatmul.mubr.bf16.vlgmr.msra.gmra.mxu0 %v227_v6  ;;  %v10840_v6 = vld [vmem:[#allocation5 + $0x610] sm:$0xff]  }
  0xfb   :  { %6851 = vmatmul.mubr.bf16.vlgmr.msra.gmra.mxu1 %v229_v7  ;;  %9756 = vmatpush3.bf16.msra.mxu0 %v10788_v10  ;;  %v10841_v7 = vld [vmem:[#allocation5 + $0x690] sm:$0xff]   ;;  %v10844_v10 = vld [vmem:[#allocation5 + $0x608] sm:$0xff]  }
  0xfc   :  { %9778 = vmatpush3.bf16.msra.mxu1 %v10789_v11  ;;  %9757 = vmatprep.subr.bf16.mxu0 %v10790_v12  ;;  %v10845_v11 = vld [vmem:[#allocation5 + $0x688] sm:$0xff]   ;;  %v10846_v12 = vld [vmem:[#allocation5 + $0x640] sm:$0xff]  }
  0xfd   :  { %9779 = vmatprep.subr.bf16.mxu1 %v10791_v13  ;;  %6890 = vmatprep.mubr.bf16.mxu0 %v232_v41  ;;  %v10855_v41 = vld [vmem:[#allocation5 + $0x7f0] sm:$0xff]  }
  0xfe   :  { %6930 = vmatprep.mubr.bf16.mxu1 %v234_v45  ;;  %v10858_v45 = vld [vmem:[#allocation5 + $0x768] sm:$0xff]  }
  0xff   :  { %9758 = vmatpush3.bf16.msra.mxu0 %v10792_v14 }
 0x100   :  { %9780 = vmatpush3.bf16.msra.mxu1 %v10793_v15  ;;  %9759 = vmatprep.subr.bf16.mxu0 %v10794_v16  ;;  %v10847_v15 = vld [vmem:[#allocation5 + $0x6c0] sm:$0xff]  }
 0x101   :  { %9781 = vmatprep.subr.bf16.mxu1 %v10795_v17  ;;  %v10848_v16 = vld [vmem:[#allocation5 + $0x600] sm:$0xff]  }
 0x103   :  { %9760 = vmatpush3.bf16.msra.mxu0 %v10796_v18 }
 0x104   :  { %9782 = vmatpush3.bf16.msra.mxu1 %v10797_v19  ;;  %9761 = vmatprep.subr.bf16.mxu0 %v10798_v20  ;;  %v10849_v19 = vld [vmem:[#allocation5 + $0x680] sm:$0xff]  }
 0x105   :  { %9783 = vmatprep.subr.bf16.mxu1 %v10799_v21 }
 0x107   :  { %9762 = vmatpush3.bf16.msra.mxu0 %v10800_v22  ;;  %v140_v22 = vld [vmem:[#allocation2 + $0xc8] sm:$0xff] }
 0x108   :  { %9784 = vmatpush3.bf16.msra.mxu1 %v10801_v23  ;;  %9763 = vmatprep.subr.bf16.mxu0 %v10802_v24  ;;  %v142_v23 = vld [vmem:[#allocation2 + $0xd8] sm:$0xff]  ;;  %v139_v24 = vld [vmem:[#allocation2 + $0xc0] sm:$0xff] }
 0x109   :  { %9785 = vmatprep.subr.bf16.mxu1 %v10803_v25 }
 0x10b   :  { %9764 = vmatpush3.bf16.msra.mxu0 %v10804_v26 }
 0x10c   :  { %9786 = vmatpush3.bf16.msra.mxu1 %v10805_v27  ;;  %9765 = vmatprep.subr.bf16.mxu0 %v10806_v28  ;;  %v236_v27 = vpack.c.bf16 %v140_v22, %v140_v22  ;;  %v238_v28 = vpack.c.bf16 %v142_v23, %v142_v23  ;;  %v10882_v22 = vld [vmem:[#allocation5 + $0x878] sm:$0xff]  }
 0x10d   :  { %9787 = vmatprep.subr.bf16.mxu1 %v10807_v29  ;;  %v235_v29 = vpack.c.bf16 %v139_v24, %v139_v24  ;;  %v10883_v24 = vld [vmem:[#allocation5 + $0x8f8] sm:$0xff]  }
 0x10f   :  { %9766 = vmatpush3.bf16.msra.mxu0 %v10808_v30  ;;  %v141_v30 = vld [vmem:[#allocation2 + $0xd0] sm:$0xff] }
 0x110   :  { %9788 = vmatpush3.bf16.msra.mxu1 %v10809_v31  ;;  %9767 = vmatprep.subr.bf16.mxu0 %v10810_v32  ;;  %v237_v31 = vpack.c.bf16 %v141_v30, %v141_v30  ;;  %v10850_v32 = vld [vmem:[#allocation5 + $0x778] sm:$0xff]   ;;  %v10887_v30 = vld [vmem:[#allocation5 + $0x8f0] sm:$0xff]  }
 0x111   :  { %9789 = vmatprep.subr.bf16.mxu1 %v10811_v33 }
 0x113   :  { %9768 = vmatpush3.bf16.msra.mxu0 %v10812_v34 }
 0x114   :  { %9790 = vmatpush3.bf16.msra.mxu1 %v10813_v35  ;;  %9769 = vmatprep.subr.bf16.mxu0 %v10814_v36  ;;  %v10851_v35 = vld [vmem:[#allocation5 + $0x7f8] sm:$0xff]  }
 0x115   :  { %9791 = vmatprep.subr.bf16.mxu1 %v10815_v37  ;;  %v10852_v36 = vld [vmem:[#allocation5 + $0x738] sm:$0xff]  }
 0x116   :  { %v10853_v37 = vld [vmem:[#allocation5 + $0x7b8] sm:$0xff]  }
 0x117   :  { %9770 = vmatpush3.bf16.msra.mxu0 %v10816_v38  ;;  %v8733_v38 = vld [vmem:[#allocation7] ss:$0 sm:$0xff] }
 0x118   :  { %9792 = vmatpush3.bf16.msra.mxu1 %v10817_v39  ;;  %9799 = vmatprep.subr.bf16.mxu0 %v10818_v48  ;;  %v10861_v48 = vld [vmem:[#allocation5 + $0x7a8] sm:$0xff]  }
 0x119   :  { %9821 = vmatprep.subr.bf16.mxu1 %v10819_v49  ;;  %v10862_v49 = vld [vmem:[#allocation5 + $0x760] sm:$0xff]  }
 0x11a   :  { %6891 = vmatmul.mubr.bf16.vlgmr.msra.gmra.mxu0 %v231_v46  ;;  %v10859_v46 = vld [vmem:[#allocation5 + $0x7e8] sm:$0xff]  }
 0x11b   :  { %6931 = vmatmul.mubr.bf16.vlgmr.msra.gmra.mxu1 %v233_v47  ;;  %9800 = vmatpush3.bf16.msra.mxu0 %v10820_v50  ;;  %v10860_v47 = vld [vmem:[#allocation5 + $0x728] sm:$0xff]   ;;  %v10863_v50 = vld [vmem:[#allocation5 + $0x7e0] sm:$0xff]  }
 0x11c   :  { %9822 = vmatpush3.bf16.msra.mxu1 %v10821_v51  ;;  %9801 = vmatprep.subr.bf16.mxu0 %v10822_v52  ;;  %v10864_v51 = vld [vmem:[#allocation5 + $0x720] sm:$0xff]  }
 0x11d   :  { %9823 = vmatprep.subr.bf16.mxu1 %v10823_v53  ;;  %6970 = vmatprep.mubr.bf16.mxu0 %v236_v27  ;;  %v10865_v52 = vld [vmem:[#allocation5 + $0x7a0] sm:$0xff]   ;;  %v10866_v53 = vld [vmem:[#allocation5 + $0x758] sm:$0xff]  }
 0x11e   :  { %7010 = vmatprep.mubr.bf16.mxu1 %v238_v28  ;;  %v10884_v27 = vld [vmem:[#allocation5 + $0x838] sm:$0xff]  }
 0x11f   :  { %9802 = vmatpush3.bf16.msra.mxu0 %v10824_v54  ;;  %v10867_v54 = vld [vmem:[#allocation5 + $0x7d8] sm:$0xff]  }
 0x120   :  { %9824 = vmatpush3.bf16.msra.mxu1 %v10825_v55  ;;  %9803 = vmatprep.subr.bf16.mxu0 %v10826_v56  ;;  %v10868_v55 = vld [vmem:[#allocation5 + $0x718] sm:$0xff]  }
 0x121   :  { %9825 = vmatprep.subr.bf16.mxu1 %v10827_v57  ;;  %v10869_v56 = vld [vmem:[#allocation5 + $0x798] sm:$0xff]   ;;  %v10870_v57 = vld [vmem:[#allocation5 + $0x750] sm:$0xff]  }
 0x122   :  { %v10885_v28 = vld [vmem:[#allocation5 + $0x8b8] sm:$0xff]  }
 0x123   :  { %9804 = vmatpush3.bf16.msra.mxu0 %v10828_v58  ;;  %v10871_v58 = vld [vmem:[#allocation5 + $0x7d0] sm:$0xff]  }
 0x124   :  { %9826 = vmatpush3.bf16.msra.mxu1 %v10829_v59  ;;  %9805 = vmatprep.subr.bf16.mxu0 %v10830_v60  ;;  %v10872_v59 = vld [vmem:[#allocation5 + $0x710] sm:$0xff]  }
 0x125   :  { %9827 = vmatprep.subr.bf16.mxu1 %v10831_v61  ;;  %v10873_v60 = vld [vmem:[#allocation5 + $0x790] sm:$0xff]   ;;  %v10874_v61 = vld [vmem:[#allocation5 + $0x748] sm:$0xff]  }
 0x127   :  { %9806 = vmatpush3.bf16.msra.mxu0 %v10832_v62  ;;  %v10875_v62 = vld [vmem:[#allocation5 + $0x7c8] sm:$0xff]  }
 0x128   :  { %9828 = vmatpush3.bf16.msra.mxu1 %v10833_v63  ;;  %9807 = vmatprep.subr.bf16.mxu0 %v10834_v0  ;;  %v10876_v63 = vld [vmem:[#allocation5 + $0x708] sm:$0xff]  }
 0x129   :  { %9829 = vmatprep.subr.bf16.mxu1 %v10835_v1  ;;  %v10877_v0 = vld [vmem:[#allocation5 + $0x788] sm:$0xff]  }
 0x12b   :  { %9808 = vmatpush3.bf16.msra.mxu0 %v10836_v2  ;;  %v10878_v2 = vld [vmem:[#allocation5 + $0x740] sm:$0xff]  }
 0x12c   :  { %9830 = vmatpush3.bf16.msra.mxu1 %v10837_v3  ;;  %9809 = vmatprep.subr.bf16.mxu0 %v10838_v4  ;;  %v10879_v4 = vld [vmem:[#allocation5 + $0x7c0] sm:$0xff]  }
 0x12d   :  { %9831 = vmatprep.subr.bf16.mxu1 %v10839_v5 }
 0x12f   :  { %9810 = vmatpush3.bf16.msra.mxu0 %v10840_v6  ;;  %v10880_v6 = vld [vmem:[#allocation5 + $0x700] sm:$0xff]  }
 0x130   :  { %9832 = vmatpush3.bf16.msra.mxu1 %v10841_v7  ;;  %9811 = vmatprep.subr.bf16.mxu0 %v10842_v8 }
 0x131   :  { %9833 = vmatprep.subr.bf16.mxu1 %v10843_v9  ;;  %v10881_v9 = vld [vmem:[#allocation5 + $0x780] sm:$0xff]  }
 0x133   :  { %9812 = vmatpush3.bf16.msra.mxu0 %v10844_v10  ;;  %v144_v10 = vld [vmem:[#allocation2 + $0xe8] sm:$0xff] }
 0x134   :  { %9834 = vmatpush3.bf16.msra.mxu1 %v10845_v11  ;;  %9813 = vmatprep.subr.bf16.mxu0 %v10846_v12 }
 0x135   :  { %9835 = vmatprep.subr.bf16.mxu1 %v10847_v15  ;;  %v143_v15 = vld [vmem:[#allocation2 + $0xe0] sm:$0xff] }
 0x137   :  { %9814 = vmatpush3.bf16.msra.mxu0 %v10848_v16  ;;  %v145_v16 = vld [vmem:[#allocation2 + $0xf0] sm:$0xff] }
 0x138   :  { %9836 = vmatpush3.bf16.msra.mxu1 %v10849_v19  ;;  %9843 = vmatprep.subr.bf16.mxu0 %v10850_v32  ;;  %v10889_v32 = vld [vmem:[#allocation5 + $0x8b0] sm:$0xff]  }
 0x139   :  { %9865 = vmatprep.subr.bf16.mxu1 %v10851_v35  ;;  %v10892_v35 = vld [vmem:[#allocation5 + $0x828] sm:$0xff]  }
 0x13a   :  { %v9551_v13 = vpop.f32.mrf.mxu0  ;;  %6971 = vmatmul.mubr.bf16.vlgmr.msra.gmra.mxu0 %v235_v29  ;;  %v10886_v29 = vld [vmem:[#allocation5 + $0x870] sm:$0xff]  }
 0x13b   :  { %v9573_v14 = vpop.f32.mrf.mxu1  ;;  %7011 = vmatmul.mubr.bf16.vlgmr.msra.gmra.mxu1 %v237_v31  ;;  %9844 = vmatpush3.bf16.msra.mxu0 %v10852_v36  ;;  %v10888_v31 = vld [vmem:[#allocation5 + $0x830] sm:$0xff]   ;;  %v10893_v36 = vld [vmem:[#allocation5 + $0x8a8] sm:$0xff]  }
 0x13c   :  { %v9552_v17 = vpop.f32.mrf.mxu0  ;;  %9866 = vmatpush3.bf16.msra.mxu1 %v10853_v37  ;;  %9845 = vmatprep.subr.bf16.mxu0 %v10854_v40  ;;  %v10894_v37 = vld [vmem:[#allocation5 + $0x860] sm:$0xff]  }
 0x13d   :  { %v9574_v18 = vpop.f32.mrf.mxu1  ;;  %v9553_v20 = vadd.f32 %v9552_v17, %v9551_v13  ;;  %9867 = vmatprep.subr.bf16.mxu1 %v10855_v41  ;;  %v240_v13 = vpack.c.bf16 %v144_v10, %v144_v10  ;;  %v10897_v40 = vld [vmem:[#allocation5 + $0x8a0] sm:$0xff]   ;;  %v10898_v41 = vld [vmem:[#allocation5 + $0x858] sm:$0xff]  }
 0x13e   :  { %v9575_v21 = vadd.f32 %v9574_v18, %v9573_v14  ;;  %v9554_v25 = vpop.f32.mrf.mxu0  ;;  %v146_v14 = vld [vmem:[#allocation2 + $0xf8] sm:$0xff] }
 0x13f   :  { %v9576_v26 = vpop.f32.mrf.mxu1  ;;  %v6493_v39 = vadd.f32 %v9553_v20, %v8733_v38  ;;  %9846 = vmatpush3.bf16.msra.mxu0 %v10856_v43  ;;  %v242_v19 = vpack.c.bf16 %v146_v14, %v146_v14  ;;  %v239_v20 = vpack.c.bf16 %v143_v15, %v143_v15  ;;  %7050 = vmatprep.mubr.bf16.mxu0 %v240_v13  ;;  %v10895_v38 = vld [vmem:[#allocation5 + $0x8e0] sm:$0xff]   ;;  %v10900_v43 = vld [vmem:[#allocation5 + $0x818] sm:$0xff]  }
 0x140   :  { %v9555_v33 = vpop.f32.mrf.mxu0  ;;  %9868 = vmatpush3.bf16.msra.mxu1 %v10857_v44  ;;  %9847 = vmatprep.subr.bf16.mxu0 %v10858_v45  ;;  %v10901_v44 = vld [vmem:[#allocation5 + $0x898] sm:$0xff]   ;;  %v10902_v45 = vld [vmem:[#allocation5 + $0x850] sm:$0xff]  }
 0x141   :  { %v9577_v34 = vpop.f32.mrf.mxu1  ;;  %v11684_v42 = vadd.f32 %v9575_v21, %v6493_v39  ;;  %9869 = vmatprep.subr.bf16.mxu1 %v10859_v46  ;;  %v241_v21 = vpack.c.bf16 %v145_v16, %v145_v16  ;;  %7090 = vmatprep.mubr.bf16.mxu1 %v242_v19  ;;  %v10890_v33 = vld [vmem:[#allocation5 + $0x868] sm:$0xff]   ;;  %v10896_v39 = vld [vmem:[#allocation5 + $0x820] sm:$0xff]   ;;  %v10903_v46 = vld [vmem:[#allocation5 + $0x8d0] sm:$0xff]  }
 0x142   :  { %v10891_v34 = vld [vmem:[#allocation5 + $0x8e8] sm:$0xff]   ;;  %v10915_v14 = vld [vmem:[#allocation5 + $0x9f8] sm:$0xff]   ;;  %v10920_v19 = vld [vmem:[#allocation5 + $0x930] sm:$0xff]  }
 0x143   :  { %9848 = vmatpush3.bf16.msra.mxu0 %v10860_v47  ;;  %v10904_v47 = vld [vmem:[#allocation5 + $0x810] sm:$0xff]   ;;  %v10916_v15 = vld [vmem:[#allocation5 + $0x938] sm:$0xff]  }
 0x144   :  { %9870 = vmatpush3.bf16.msra.mxu1 %v10861_v48  ;;  %9849 = vmatprep.subr.bf16.mxu0 %v10862_v49  ;;  %v10905_v48 = vld [vmem:[#allocation5 + $0x890] sm:$0xff]   ;;  %v10906_v49 = vld [vmem:[#allocation5 + $0x848] sm:$0xff]   ;;  %v10917_v16 = vld [vmem:[#allocation5 + $0x9b8] sm:$0xff]  }
 0x145   :  { %9871 = vmatprep.subr.bf16.mxu1 %v10863_v50  ;;  %v10907_v50 = vld [vmem:[#allocation5 + $0x8c8] sm:$0xff]  }
 0x147   :  { %9850 = vmatpush3.bf16.msra.mxu0 %v10864_v51  ;;  %v10908_v51 = vld [vmem:[#allocation5 + $0x808] sm:$0xff]  }
 0x148   :  { %9872 = vmatpush3.bf16.msra.mxu1 %v10865_v52  ;;  %9851 = vmatprep.subr.bf16.mxu0 %v10866_v53  ;;  %v10909_v52 = vld [vmem:[#allocation5 + $0x888] sm:$0xff]  }
 0x149   :  { %9873 = vmatprep.subr.bf16.mxu1 %v10867_v54  ;;  %v10910_v54 = vld [vmem:[#allocation5 + $0x840] sm:$0xff]  }
 0x14b   :  { %9852 = vmatpush3.bf16.msra.mxu0 %v10868_v55 }
 0x14c   :  { %9874 = vmatpush3.bf16.msra.mxu1 %v10869_v56  ;;  %9853 = vmatprep.subr.bf16.mxu0 %v10870_v57  ;;  %v10911_v56 = vld [vmem:[#allocation5 + $0x8c0] sm:$0xff]  }
 0x14d   :  { %9875 = vmatprep.subr.bf16.mxu1 %v10871_v58  ;;  %v10912_v58 = vld [vmem:[#allocation5 + $0x800] sm:$0xff]  }
 0x14f   :  { %9854 = vmatpush3.bf16.msra.mxu0 %v10872_v59 }
 0x150   :  { %9876 = vmatpush3.bf16.msra.mxu1 %v10873_v60  ;;  %9855 = vmatprep.subr.bf16.mxu0 %v10874_v61  ;;  %v10913_v61 = vld [vmem:[#allocation5 + $0x880] sm:$0xff]  }
 0x151   :  { %9877 = vmatprep.subr.bf16.mxu1 %v10875_v62 }
 0x153   :  { %9856 = vmatpush3.bf16.msra.mxu0 %v10876_v63 }
 0x154   :  { %9878 = vmatpush3.bf16.msra.mxu1 %v10877_v0  ;;  %9857 = vmatprep.subr.bf16.mxu0 %v10878_v2  ;;  %v148_v0 = vld [vmem:[#allocation2 + $0x108] sm:$0xff]  ;;  %v147_v2 = vld [vmem:[#allocation2 + $0x100] sm:$0xff] }
 0x155   :  { %9879 = vmatprep.subr.bf16.mxu1 %v10879_v4 }
 0x157   :  { %9858 = vmatpush3.bf16.msra.mxu0 %v10880_v6 }
 0x158   :  { %9880 = vmatpush3.bf16.msra.mxu1 %v10881_v9  ;;  %9887 = vmatprep.subr.bf16.mxu0 %v10882_v22  ;;  %v10923_v22 = vld [vmem:[#allocation5 + $0x9e8] sm:$0xff]  }
 0x159   :  { %9909 = vmatprep.subr.bf16.mxu1 %v10883_v24  ;;  %v10925_v24 = vld [vmem:[#allocation5 + $0x9a8] sm:$0xff]  }
 0x15a   :  { %v9595_v1 = vpop.f32.mrf.mxu0  ;;  %7051 = vmatmul.mubr.bf16.vlgmr.msra.gmra.mxu0 %v239_v20  ;;  %v10921_v20 = vld [vmem:[#allocation5 + $0x9b0] sm:$0xff]  }
 0x15b   :  { %v9617_v3 = vpop.f32.mrf.mxu1  ;;  %7091 = vmatmul.mubr.bf16.vlgmr.msra.gmra.mxu1 %v241_v21  ;;  %9888 = vmatpush3.bf16.msra.mxu0 %v10884_v27  ;;  %v10922_v21 = vld [vmem:[#allocation5 + $0x968] sm:$0xff]   ;;  %v10928_v27 = vld [vmem:[#allocation5 + $0x920] sm:$0xff]  }
 0x15c   :  { %v9596_v5 = vpop.f32.mrf.mxu0  ;;  %9910 = vmatpush3.bf16.msra.mxu1 %v10885_v28  ;;  %9889 = vmatprep.subr.bf16.mxu0 %v10886_v29  ;;  %v10929_v28 = vld [vmem:[#allocation5 + $0x9a0] sm:$0xff]   ;;  %v10930_v29 = vld [vmem:[#allocation5 + $0x958] sm:$0xff]  }
 0x15d   :  { %v9597_v7 = vadd.f32 %v9596_v5, %v9595_v1  ;;  %v9618_v8 = vpop.f32.mrf.mxu1  ;;  %9911 = vmatprep.subr.bf16.mxu1 %v10887_v30  ;;  %v150_v1 = vld [vmem:[#allocation2 + $0x118] sm:$0xff]  ;;  %v244_v5 = vpack.c.bf16 %v148_v0, %v148_v0 }
 0x15e   :  { %v9619_v11 = vadd.f32 %v9618_v8, %v9617_v3  ;;  %v9598_v12 = vpop.f32.mrf.mxu0  ;;  %v246_v6 = vpack.c.bf16 %v150_v1, %v150_v1  ;;  %v149_v8 = vld [vmem:[#allocation2 + $0x110] sm:$0xff]  ;;  %v10931_v30 = vld [vmem:[#allocation5 + $0x9d8] sm:$0xff]  }
 0x15f   :  { %v6573_v17 = vadd.f32 %v9597_v7, %v11684_v42  ;;  %v9620_v18 = vpop.f32.mrf.mxu1  ;;  %9890 = vmatpush3.bf16.msra.mxu0 %v10888_v31  ;;  %v10899_v42 = vld [vmem:[#allocation5 + $0x8d8] sm:$0xff]   ;;  %v243_v7 = vpack.c.bf16 %v147_v2, %v147_v2  ;;  %v245_v10 = vpack.c.bf16 %v149_v8, %v149_v8  ;;  %7130 = vmatprep.mubr.bf16.mxu0 %v244_v5  ;;  %v10950_v5 = vld [vmem:[#allocation5 + $0xa70] sm:$0xff]  }
 0x160   :  { %v9599_v23 = vpop.f32.mrf.mxu0  ;;  %9912 = vmatpush3.bf16.msra.mxu1 %v10889_v32  ;;  %9891 = vmatprep.subr.bf16.mxu0 %v10890_v33  ;;  %v10919_v18 = vld [vmem:[#allocation5 + $0x9f0] sm:$0xff]   ;;  %v10932_v31 = vld [vmem:[#allocation5 + $0x918] sm:$0xff]  }
 0x161   :  { %v11687_v25 = vadd.f32 %v9619_v11, %v6573_v17  ;;  %v9621_v26 = vpop.f32.mrf.mxu1  ;;  %9913 = vmatprep.subr.bf16.mxu1 %v10891_v34  ;;  %v10914_v11 = vld [vmem:[#allocation5 + $0x978] sm:$0xff]   ;;  %7170 = vmatprep.mubr.bf16.mxu1 %v246_v6  ;;  %v10918_v17 = vld [vmem:[#allocation5 + $0x970] sm:$0xff]   ;;  %v10924_v23 = vld [vmem:[#allocation5 + $0x928] sm:$0xff]  }
 0x162   :  { %v10927_v26 = vld [vmem:[#allocation5 + $0x9e0] sm:$0xff]   ;;  %v10933_v32 = vld [vmem:[#allocation5 + $0x998] sm:$0xff]   ;;  %v10934_v33 = vld [vmem:[#allocation5 + $0x950] sm:$0xff]  }
 0x163   :  { %9892 = vmatpush3.bf16.msra.mxu0 %v10892_v35  ;;  %v10935_v34 = vld [vmem:[#allocation5 + $0x9d0] sm:$0xff]   ;;  %v10947_v1 = vld [vmem:[#allocation5 + $0xaf8] sm:$0xff]  }
 0x164   :  { %9914 = vmatpush3.bf16.msra.mxu1 %v10893_v36  ;;  %9893 = vmatprep.subr.bf16.mxu0 %v10894_v37  ;;  %v10936_v35 = vld [vmem:[#allocation5 + $0x910] sm:$0xff]   ;;  %v10938_v37 = vld [vmem:[#allocation5 + $0x948] sm:$0xff]  }
 0x165   :  { %9915 = vmatprep.subr.bf16.mxu1 %v10895_v38  ;;  %v10937_v36 = vld [vmem:[#allocation5 + $0x990] sm:$0xff]   ;;  %v10939_v38 = vld [vmem:[#allocation5 + $0x9c8] sm:$0xff]  }
 0x166   :  { %v10951_v6 = vld [vmem:[#allocation5 + $0xaf0] sm:$0xff]  }
 0x167   :  { %9894 = vmatpush3.bf16.msra.mxu0 %v10896_v39  ;;  %v10940_v39 = vld [vmem:[#allocation5 + $0x908] sm:$0xff]   ;;  %v10953_v8 = vld [vmem:[#allocation5 + $0xab0] sm:$0xff]  }
 0x168   :  { %9916 = vmatpush3.bf16.msra.mxu1 %v10897_v40  ;;  %9895 = vmatprep.subr.bf16.mxu0 %v10898_v41  ;;  %v10941_v40 = vld [vmem:[#allocation5 + $0x988] sm:$0xff]  }
 0x169   :  { %9917 = vmatprep.subr.bf16.mxu1 %v10899_v42 }
 0x16b   :  { %9896 = vmatpush3.bf16.msra.mxu0 %v10900_v43  ;;  %v10942_v43 = vld [vmem:[#allocation5 + $0x940] sm:$0xff]  }
 0x16c   :  { %9918 = vmatpush3.bf16.msra.mxu1 %v10901_v44  ;;  %9897 = vmatprep.subr.bf16.mxu0 %v10902_v45  ;;  %v10943_v44 = vld [vmem:[#allocation5 + $0x9c0] sm:$0xff]  }
 0x16d   :  { %9919 = vmatprep.subr.bf16.mxu1 %v10903_v46 }
 0x16f   :  { %9898 = vmatpush3.bf16.msra.mxu0 %v10904_v47  ;;  %v10944_v47 = vld [vmem:[#allocation5 + $0x900] sm:$0xff]  }
 0x170   :  { %9920 = vmatpush3.bf16.msra.mxu1 %v10905_v48  ;;  %9899 = vmatprep.subr.bf16.mxu0 %v10906_v49 }
 0x171   :  { %9921 = vmatprep.subr.bf16.mxu1 %v10907_v50  ;;  %v10945_v50 = vld [vmem:[#allocation5 + $0x980] sm:$0xff]  }
 0x173   :  { %9900 = vmatpush3.bf16.msra.mxu0 %v10908_v51  ;;  %v152_v51 = vld [vmem:[#allocation2 + $0x128] sm:$0xff] }
 0x174   :  { %9922 = vmatpush3.bf16.msra.mxu1 %v10909_v52  ;;  %9901 = vmatprep.subr.bf16.mxu0 %v10910_v54  ;;  %v154_v52 = vld [vmem:[#allocation2 + $0x138] sm:$0xff] }
 0x175   :  { %9923 = vmatprep.subr.bf16.mxu1 %v10911_v56  ;;  %v250_v56 = vpack.c.bf16 %v154_v52, %v154_v52  ;;  %v10979_v52 = vld [vmem:[#allocation5 + $0xbf8] sm:$0xff]  }
 0x177   :  { %9902 = vmatpush3.bf16.msra.mxu0 %v10912_v58  ;;  %v153_v58 = vld [vmem:[#allocation2 + $0x130] sm:$0xff] }
 0x178   :  { %9924 = vmatpush3.bf16.msra.mxu1 %v10913_v61  ;;  %9931 = vmatprep.subr.bf16.mxu0 %v10914_v11  ;;  %v249_v61 = vpack.c.bf16 %v153_v58, %v153_v58  ;;  %v10956_v11 = vld [vmem:[#allocation5 + $0xa28] sm:$0xff]   ;;  %v10983_v58 = vld [vmem:[#allocation5 + $0xbf0] sm:$0xff]  }
 0x179   :  { %9953 = vmatprep.subr.bf16.mxu1 %v10915_v14  ;;  %v10959_v14 = vld [vmem:[#allocation5 + $0xae0] sm:$0xff]  }
 0x17a   :  { %v9639_v53 = vpop.f32.mrf.mxu0  ;;  %7131 = vmatmul.mubr.bf16.vlgmr.msra.gmra.mxu0 %v243_v7  ;;  %v10952_v7 = vld [vmem:[#allocation5 + $0xa30] sm:$0xff]  }
 0x17b   :  { %v9661_v55 = vpop.f32.mrf.mxu1  ;;  %7171 = vmatmul.mubr.bf16.vlgmr.msra.gmra.mxu1 %v245_v10  ;;  %9932 = vmatpush3.bf16.msra.mxu0 %v10916_v15  ;;  %v10955_v10 = vld [vmem:[#allocation5 + $0xae8] sm:$0xff]   ;;  %v10960_v15 = vld [vmem:[#allocation5 + $0xa20] sm:$0xff]  }
 0x17c   :  { %v9640_v57 = vpop.f32.mrf.mxu0  ;;  %9954 = vmatpush3.bf16.msra.mxu1 %v10917_v16  ;;  %9933 = vmatprep.subr.bf16.mxu0 %v10918_v17  ;;  %v10961_v16 = vld [vmem:[#allocation5 + $0xaa0] sm:$0xff]   ;;  %v10962_v17 = vld [vmem:[#allocation5 + $0xa58] sm:$0xff]  }
 0x17d   :  { %v9641_v59 = vadd.f32 %v9640_v57, %v9639_v53  ;;  %v9662_v60 = vpop.f32.mrf.mxu1  ;;  %9955 = vmatprep.subr.bf16.mxu1 %v10919_v18  ;;  %v151_v57 = vld [vmem:[#allocation2 + $0x120] sm:$0xff]  ;;  %7250 = vmatprep.mubr.bf16.mxu1 %v250_v56  ;;  %v10963_v18 = vld [vmem:[#allocation5 + $0xad8] sm:$0xff]  }
 0x17e   :  { %v9663_v62 = vadd.f32 %v9662_v60, %v9661_v55  ;;  %v9642_v63 = vpop.f32.mrf.mxu0  ;;  %v248_v55 = vpack.c.bf16 %v152_v51, %v152_v51  ;;  %v247_v60 = vpack.c.bf16 %v151_v57, %v151_v57  ;;  %v10981_v56 = vld [vmem:[#allocation5 + $0xbb8] sm:$0xff]   ;;  %v10982_v57 = vld [vmem:[#allocation5 + $0xb70] sm:$0xff]  }
 0x17f   :  { %v6653_v3 = vadd.f32 %v9641_v59, %v11687_v25  ;;  %v9664_v4 = vpop.f32.mrf.mxu1  ;;  %9934 = vmatpush3.bf16.msra.mxu0 %v10920_v19  ;;  %v10926_v25 = vld [vmem:[#allocation5 + $0x960] sm:$0xff]   ;;  %v10964_v19 = vld [vmem:[#allocation5 + $0xa18] sm:$0xff]  }
 0x180   :  { %v9643_v9 = vpop.f32.mrf.mxu0  ;;  %9956 = vmatpush3.bf16.msra.mxu1 %v10921_v20  ;;  %9935 = vmatprep.subr.bf16.mxu0 %v10922_v21  ;;  %v10949_v4 = vld [vmem:[#allocation5 + $0xab8] sm:$0xff]   ;;  %v10966_v21 = vld [vmem:[#allocation5 + $0xa50] sm:$0xff]  }
 0x181   :  { %v11690_v12 = vadd.f32 %v9663_v62, %v6653_v3  ;;  %v9665_v13 = vpop.f32.mrf.mxu1  ;;  %9957 = vmatprep.subr.bf16.mxu1 %v10923_v22  ;;  %v10946_v62 = vld [vmem:[#allocation5 + $0xa78] sm:$0xff]   ;;  %7210 = vmatprep.mubr.bf16.mxu0 %v248_v55  ;;  %v10954_v9 = vld [vmem:[#allocation5 + $0xa68] sm:$0xff]   ;;  %v10967_v22 = vld [vmem:[#allocation5 + $0xad0] sm:$0xff]  }
 0x182   :  { %v10948_v3 = vld [vmem:[#allocation5 + $0xa38] sm:$0xff]   ;;  %v10958_v13 = vld [vmem:[#allocation5 + $0xa60] sm:$0xff]  }
 0x183   :  { %9936 = vmatpush3.bf16.msra.mxu0 %v10924_v23  ;;  %v10965_v20 = vld [vmem:[#allocation5 + $0xa98] sm:$0xff]   ;;  %v10968_v23 = vld [vmem:[#allocation5 + $0xa10] sm:$0xff]  }
 0x184   :  { %9958 = vmatpush3.bf16.msra.mxu1 %v10925_v24  ;;  %9937 = vmatprep.subr.bf16.mxu0 %v10926_v25  ;;  %v10969_v24 = vld [vmem:[#allocation5 + $0xa90] sm:$0xff]   ;;  %v10970_v25 = vld [vmem:[#allocation5 + $0xa48] sm:$0xff]   ;;  %v10980_v55 = vld [vmem:[#allocation5 + $0xb38] sm:$0xff]  }
 0x185   :  { %9959 = vmatprep.subr.bf16.mxu1 %v10927_v26  ;;  %v10971_v26 = vld [vmem:[#allocation5 + $0xac8] sm:$0xff]  }
 0x187   :  { %9938 = vmatpush3.bf16.msra.mxu0 %v10928_v27  ;;  %v10972_v27 = vld [vmem:[#allocation5 + $0xa08] sm:$0xff]  }
 0x188   :  { %9960 = vmatpush3.bf16.msra.mxu1 %v10929_v28  ;;  %9939 = vmatprep.subr.bf16.mxu0 %v10930_v29  ;;  %v10973_v28 = vld [vmem:[#allocation5 + $0xa88] sm:$0xff]  }
 0x189   :  { %9961 = vmatprep.subr.bf16.mxu1 %v10931_v30  ;;  %v10974_v30 = vld [vmem:[#allocation5 + $0xa40] sm:$0xff]  }
 0x18b   :  { %9940 = vmatpush3.bf16.msra.mxu0 %v10932_v31 }
 0x18c   :  { %9962 = vmatpush3.bf16.msra.mxu1 %v10933_v32  ;;  %9941 = vmatprep.subr.bf16.mxu0 %v10934_v33  ;;  %v10975_v32 = vld [vmem:[#allocation5 + $0xac0] sm:$0xff]  }
 0x18d   :  { %9963 = vmatprep.subr.bf16.mxu1 %v10935_v34  ;;  %v10976_v34 = vld [vmem:[#allocation5 + $0xa00] sm:$0xff]  }
 0x18f   :  { %9942 = vmatpush3.bf16.msra.mxu0 %v10936_v35 }
 0x190   :  { %9964 = vmatpush3.bf16.msra.mxu1 %v10937_v36  ;;  %9943 = vmatprep.subr.bf16.mxu0 %v10938_v37  ;;  %v10977_v37 = vld [vmem:[#allocation5 + $0xa80] sm:$0xff]  }
 0x191   :  { %9965 = vmatprep.subr.bf16.mxu1 %v10939_v38  ;;  %v156_v38 = vld [vmem:[#allocation2 + $0x148] sm:$0xff] }
 0x193   :  { %9944 = vmatpush3.bf16.msra.mxu0 %v10940_v39 }
 0x194   :  { %9966 = vmatpush3.bf16.msra.mxu1 %v10941_v40  ;;  %9945 = vmatprep.subr.bf16.mxu0 %v10942_v43  ;;  %v155_v43 = vld [vmem:[#allocation2 + $0x140] sm:$0xff] }
 0x195   :  { %9967 = vmatprep.subr.bf16.mxu1 %v10943_v44  ;;  %v157_v44 = vld [vmem:[#allocation2 + $0x150] sm:$0xff] }
 0x197   :  { %9946 = vmatpush3.bf16.msra.mxu0 %v10944_v47 }
 0x198   :  { %9968 = vmatpush3.bf16.msra.mxu1 %v10945_v50  ;;  %9975 = vmatprep.subr.bf16.mxu0 %v10946_v62  ;;  %v10978_v50 = vld [vmem:[#allocation5 + $0xb78] sm:$0xff]   ;;  %v10987_v62 = vld [vmem:[#allocation5 + $0xbe8] sm:$0xff]  }
 0x199   :  { %9997 = vmatprep.subr.bf16.mxu1 %v10947_v1  ;;  %v10990_v1 = vld [vmem:[#allocation5 + $0xb60] sm:$0xff]  }
 0x19a   :  { %v9683_v41 = vpop.f32.mrf.mxu0  ;;  %7211 = vmatmul.mubr.bf16.vlgmr.msra.gmra.mxu0 %v247_v60  ;;  %v10985_v60 = vld [vmem:[#allocation5 + $0xbb0] sm:$0xff]  }
 0x19b   :  { %v9705_v42 = vpop.f32.mrf.mxu1  ;;  %7251 = vmatmul.mubr.bf16.vlgmr.msra.gmra.mxu1 %v249_v61  ;;  %9976 = vmatpush3.bf16.msra.mxu0 %v10948_v3  ;;  %v10986_v61 = vld [vmem:[#allocation5 + $0xb68] sm:$0xff]   ;;  %v10992_v3 = vld [vmem:[#allocation5 + $0xb20] sm:$0xff]  }
 0x19c   :  { %v9684_v45 = vpop.f32.mrf.mxu0  ;;  %9998 = vmatpush3.bf16.msra.mxu1 %v10949_v4  ;;  %9977 = vmatprep.subr.bf16.mxu0 %v10950_v5  ;;  %v10993_v4 = vld [vmem:[#allocation5 + $0xba0] sm:$0xff]   ;;  %v10994_v5 = vld [vmem:[#allocation5 + $0xb58] sm:$0xff]  }
 0x19d   :  { %v9706_v46 = vpop.f32.mrf.mxu1  ;;  %v9685_v48 = vadd.f32 %v9684_v45, %v9683_v41  ;;  %9999 = vmatprep.subr.bf16.mxu1 %v10951_v6  ;;  %v252_v41 = vpack.c.bf16 %v156_v38, %v156_v38  ;;  %v10995_v6 = vld [vmem:[#allocation5 + $0xbd8] sm:$0xff]  }
 0x19e   :  { %v9707_v49 = vadd.f32 %v9706_v46, %v9705_v42  ;;  %v9686_v53 = vpop.f32.mrf.mxu0  ;;  %v158_v42 = vld [vmem:[#allocation2 + $0x158] sm:$0xff] }
 0x19f   :  { %v9708_v54 = vpop.f32.mrf.mxu1  ;;  %v6733_v59 = vadd.f32 %v9685_v48, %v11690_v12  ;;  %9978 = vmatpush3.bf16.msra.mxu0 %v10952_v7  ;;  %v10957_v12 = vld [vmem:[#allocation5 + $0xaa8] sm:$0xff]   ;;  %v254_v47 = vpack.c.bf16 %v158_v42, %v158_v42  ;;  %v251_v48 = vpack.c.bf16 %v155_v43, %v155_v43  ;;  %7290 = vmatprep.mubr.bf16.mxu0 %v252_v41  ;;  %v10996_v7 = vld [vmem:[#allocation5 + $0xb18] sm:$0xff]  }
 0x1a0   :  { %v9687_v63 = vpop.f32.mrf.mxu0  ;;  %10000 = vmatpush3.bf16.msra.mxu1 %v10953_v8  ;;  %9979 = vmatprep.subr.bf16.mxu0 %v10954_v9  ;;  %v10997_v8 = vld [vmem:[#allocation5 + $0xb98] sm:$0xff]   ;;  %v10998_v9 = vld [vmem:[#allocation5 + $0xb50] sm:$0xff]  }
 0x1a1   :  { %v9709_v0 = vpop.f32.mrf.mxu1  ;;  %v11693_v2 = vadd.f32 %v9707_v49, %v6733_v59  ;;  %10001 = vmatprep.subr.bf16.mxu1 %v10955_v10  ;;  %v253_v49 = vpack.c.bf16 %v157_v44, %v157_v44  ;;  %7330 = vmatprep.mubr.bf16.mxu1 %v254_v47  ;;  %v10984_v59 = vld [vmem:[#allocation5 + $0xb30] sm:$0xff]   ;;  %v10988_v63 = vld [vmem:[#allocation5 + $0xb28] sm:$0xff]   ;;  %v11011_v42 = vld [vmem:[#allocation5 + $0xcf8] sm:$0xff]  }
 0x1a2   :  { %v10989_v0 = vld [vmem:[#allocation5 + $0xba8] sm:$0xff]   ;;  %v10999_v10 = vld [vmem:[#allocation5 + $0xbd0] sm:$0xff]   ;;  %v11012_v43 = vld [vmem:[#allocation5 + $0xc38] sm:$0xff]  }
 0x1a3   :  { %9980 = vmatpush3.bf16.msra.mxu0 %v10956_v11  ;;  %v11000_v11 = vld [vmem:[#allocation5 + $0xb10] sm:$0xff]   ;;  %v11013_v44 = vld [vmem:[#allocation5 + $0xcb8] sm:$0xff]  }
 0x1a4   :  { %10002 = vmatpush3.bf16.msra.mxu1 %v10957_v12  ;;  %9981 = vmatprep.subr.bf16.mxu0 %v10958_v13  ;;  %v11001_v12 = vld [vmem:[#allocation5 + $0xb90] sm:$0xff]   ;;  %v11002_v13 = vld [vmem:[#allocation5 + $0xb48] sm:$0xff]  }
 0x1a5   :  { %10003 = vmatprep.subr.bf16.mxu1 %v10959_v14  ;;  %v11003_v14 = vld [vmem:[#allocation5 + $0xbc8] sm:$0xff]   ;;  %v11016_v47 = vld [vmem:[#allocation5 + $0xc30] sm:$0xff]  }
 0x1a7   :  { %9982 = vmatpush3.bf16.msra.mxu0 %v10960_v15  ;;  %v11004_v15 = vld [vmem:[#allocation5 + $0xb08] sm:$0xff]  }
 0x1a8   :  { %10004 = vmatpush3.bf16.msra.mxu1 %v10961_v16  ;;  %9983 = vmatprep.subr.bf16.mxu0 %v10962_v17  ;;  %v11005_v16 = vld [vmem:[#allocation5 + $0xb88] sm:$0xff]  }
 0x1a9   :  { %10005 = vmatprep.subr.bf16.mxu1 %v10963_v18  ;;  %v11006_v18 = vld [vmem:[#allocation5 + $0xb40] sm:$0xff]  }
 0x1ab   :  { %9984 = vmatpush3.bf16.msra.mxu0 %v10964_v19 }
 0x1ac   :  { %10006 = vmatpush3.bf16.msra.mxu1 %v10965_v20  ;;  %9985 = vmatprep.subr.bf16.mxu0 %v10966_v21  ;;  %v11007_v20 = vld [vmem:[#allocation5 + $0xbc0] sm:$0xff]  }
 0x1ad   :  { %10007 = vmatprep.subr.bf16.mxu1 %v10967_v22  ;;  %v11008_v22 = vld [vmem:[#allocation5 + $0xb00] sm:$0xff]  }
 0x1af   :  { %9986 = vmatpush3.bf16.msra.mxu0 %v10968_v23 }
 0x1b0   :  { %10008 = vmatpush3.bf16.msra.mxu1 %v10969_v24  ;;  %9987 = vmatprep.subr.bf16.mxu0 %v10970_v25  ;;  %v11009_v25 = vld [vmem:[#allocation5 + $0xb80] sm:$0xff]  }
 0x1b1   :  { %10009 = vmatprep.subr.bf16.mxu1 %v10971_v26 }
 0x1b3   :  { %9988 = vmatpush3.bf16.msra.mxu0 %v10972_v27 }
 0x1b4   :  { %10010 = vmatpush3.bf16.msra.mxu1 %v10973_v28  ;;  %9989 = vmatprep.subr.bf16.mxu0 %v10974_v30  ;;  %v160_v28 = vld [vmem:[#allocation2 + $0x168] sm:$0xff]  ;;  %v159_v30 = vld [vmem:[#allocation2 + $0x160] sm:$0xff] }
 0x1b5   :  { %10011 = vmatprep.subr.bf16.mxu1 %v10975_v32 }
 0x1b7   :  { %9990 = vmatpush3.bf16.msra.mxu0 %v10976_v34 }
 0x1b8   :  { %10012 = vmatpush3.bf16.msra.mxu1 %v10977_v37  ;;  %10019 = vmatprep.subr.bf16.mxu0 %v10978_v50  ;;  %v11019_v50 = vld [vmem:[#allocation5 + $0xce8] sm:$0xff]  }
 0x1b9   :  { %10041 = vmatprep.subr.bf16.mxu1 %v10979_v52  ;;  %v11021_v52 = vld [vmem:[#allocation5 + $0xca8] sm:$0xff]  }
 0x1ba   :  { %v9727_v29 = vpop.f32.mrf.mxu0  ;;  %7291 = vmatmul.mubr.bf16.vlgmr.msra.gmra.mxu0 %v251_v48  ;;  %v11017_v48 = vld [vmem:[#allocation5 + $0xcb0] sm:$0xff]  }
 0x1bb   :  { %v9749_v31 = vpop.f32.mrf.mxu1  ;;  %7331 = vmatmul.mubr.bf16.vlgmr.msra.gmra.mxu1 %v253_v49  ;;  %10020 = vmatpush3.bf16.msra.mxu0 %v10980_v55  ;;  %v11018_v49 = vld [vmem:[#allocation5 + $0xc68] sm:$0xff]   ;;  %v11024_v55 = vld [vmem:[#allocation5 + $0xc20] sm:$0xff]  }
 0x1bc   :  { %v9728_v33 = vpop.f32.mrf.mxu0  ;;  %10042 = vmatpush3.bf16.msra.mxu1 %v10981_v56  ;;  %10021 = vmatprep.subr.bf16.mxu0 %v10982_v57  ;;  %v11025_v56 = vld [vmem:[#allocation5 + $0xca0] sm:$0xff]   ;;  %v11026_v57 = vld [vmem:[#allocation5 + $0xc58] sm:$0xff]  }
 0x1bd   :  { %v9729_v35 = vadd.f32 %v9728_v33, %v9727_v29  ;;  %v9750_v36 = vpop.f32.mrf.mxu1  ;;  %10043 = vmatprep.subr.bf16.mxu1 %v10983_v58  ;;  %v162_v29 = vld [vmem:[#allocation2 + $0x178] sm:$0xff]  ;;  %v256_v33 = vpack.c.bf16 %v160_v28, %v160_v28 }
 0x1be   :  { %v9751_v39 = vadd.f32 %v9750_v36, %v9749_v31  ;;  %v9730_v40 = vpop.f32.mrf.mxu0  ;;  %v258_v34 = vpack.c.bf16 %v162_v29, %v162_v29  ;;  %v161_v36 = vld [vmem:[#allocation2 + $0x170] sm:$0xff]  ;;  %v11027_v58 = vld [vmem:[#allocation5 + $0xcd8] sm:$0xff]  }
 0x1bf   :  { %v6813_v45 = vadd.f32 %v9729_v35, %v11693_v2  ;;  %v9752_v46 = vpop.f32.mrf.mxu1  ;;  %10022 = vmatpush3.bf16.msra.mxu0 %v10984_v59  ;;  %v10991_v2 = vld [vmem:[#allocation5 + $0xbe0] sm:$0xff]   ;;  %v255_v35 = vpack.c.bf16 %v159_v30, %v159_v30  ;;  %v257_v38 = vpack.c.bf16 %v161_v36, %v161_v36  ;;  %7370 = vmatprep.mubr.bf16.mxu0 %v256_v33  ;;  %v11028_v59 = vld [vmem:[#allocation5 + $0xc18] sm:$0xff]   ;;  %v11046_v33 = vld [vmem:[#allocation5 + $0xd70] sm:$0xff]  }
 0x1c0   :  { %v9731_v51 = vpop.f32.mrf.mxu0  ;;  %10044 = vmatpush3.bf16.msra.mxu1 %v10985_v60  ;;  %10023 = vmatprep.subr.bf16.mxu0 %v10986_v61  ;;  %v11015_v46 = vld [vmem:[#allocation5 + $0xcf0] sm:$0xff]   ;;  %v11029_v60 = vld [vmem:[#allocation5 + $0xc98] sm:$0xff]  }
 0x1c1   :  { %v11696_v53 = vadd.f32 %v9751_v39, %v6813_v45  ;;  %v9753_v54 = vpop.f32.mrf.mxu1  ;;  %10045 = vmatprep.subr.bf16.mxu1 %v10987_v62  ;;  %v11010_v39 = vld [vmem:[#allocation5 + $0xc78] sm:$0xff]   ;;  %7410 = vmatprep.mubr.bf16.mxu1 %v258_v34  ;;  %v11014_v45 = vld [vmem:[#allocation5 + $0xc70] sm:$0xff]   ;;  %v11020_v51 = vld [vmem:[#allocation5 + $0xc28] sm:$0xff]  }
 0x1c2   :  { %v11023_v54 = vld [vmem:[#allocation5 + $0xce0] sm:$0xff]   ;;  %v11030_v61 = vld [vmem:[#allocation5 + $0xc50] sm:$0xff]   ;;  %v11043_v29 = vld [vmem:[#allocation5 + $0xdf8] sm:$0xff]  }
 0x1c3   :  { %10024 = vmatpush3.bf16.msra.mxu0 %v10988_v63  ;;  %v11031_v62 = vld [vmem:[#allocation5 + $0xcd0] sm:$0xff]  }
 0x1c4   :  { %10046 = vmatpush3.bf16.msra.mxu1 %v10989_v0  ;;  %10025 = vmatprep.subr.bf16.mxu0 %v10990_v1  ;;  %v11032_v63 = vld [vmem:[#allocation5 + $0xc10] sm:$0xff]   ;;  %v11034_v1 = vld [vmem:[#allocation5 + $0xc48] sm:$0xff]  }
 0x1c5   :  { %10047 = vmatprep.subr.bf16.mxu1 %v10991_v2  ;;  %v11033_v0 = vld [vmem:[#allocation5 + $0xc90] sm:$0xff]   ;;  %v11035_v2 = vld [vmem:[#allocation5 + $0xcc8] sm:$0xff]  }
 0x1c6   :  { %v11047_v34 = vld [vmem:[#allocation5 + $0xdf0] sm:$0xff]  }
 0x1c7   :  { %10026 = vmatpush3.bf16.msra.mxu0 %v10992_v3  ;;  %v11036_v3 = vld [vmem:[#allocation5 + $0xc08] sm:$0xff]   ;;  %v11049_v36 = vld [vmem:[#allocation5 + $0xdb0] sm:$0xff]  }
 0x1c8   :  { %10048 = vmatpush3.bf16.msra.mxu1 %v10993_v4  ;;  %10027 = vmatprep.subr.bf16.mxu0 %v10994_v5  ;;  %v11037_v4 = vld [vmem:[#allocation5 + $0xc88] sm:$0xff]  }
 0x1c9   :  { %10049 = vmatprep.subr.bf16.mxu1 %v10995_v6 }
 0x1cb   :  { %10028 = vmatpush3.bf16.msra.mxu0 %v10996_v7  ;;  %v11038_v7 = vld [vmem:[#allocation5 + $0xc40] sm:$0xff]  }
 0x1cc   :  { %10050 = vmatpush3.bf16.msra.mxu1 %v10997_v8  ;;  %10029 = vmatprep.subr.bf16.mxu0 %v10998_v9  ;;  %v11039_v8 = vld [vmem:[#allocation5 + $0xcc0] sm:$0xff]  }
 0x1cd   :  { %10051 = vmatprep.subr.bf16.mxu1 %v10999_v10 }
 0x1cf   :  { %10030 = vmatpush3.bf16.msra.mxu0 %v11000_v11  ;;  %v11040_v11 = vld [vmem:[#allocation5 + $0xc00] sm:$0xff]  }
 0x1d0   :  { %10052 = vmatpush3.bf16.msra.mxu1 %v11001_v12  ;;  %10031 = vmatprep.subr.bf16.mxu0 %v11002_v13 }
 0x1d1   :  { %10053 = vmatprep.subr.bf16.mxu1 %v11003_v14  ;;  %v11041_v14 = vld [vmem:[#allocation5 + $0xc80] sm:$0xff]  }
 0x1d3   :  { %10032 = vmatpush3.bf16.msra.mxu0 %v11004_v15  ;;  %v164_v15 = vld [vmem:[#allocation2 + $0x188] sm:$0xff] }
 0x1d4   :  { %10054 = vmatpush3.bf16.msra.mxu1 %v11005_v16  ;;  %10033 = vmatprep.subr.bf16.mxu0 %v11006_v18  ;;  %v166_v16 = vld [vmem:[#allocation2 + $0x198] sm:$0xff] }
 0x1d5   :  { %10055 = vmatprep.subr.bf16.mxu1 %v11007_v20  ;;  %v262_v20 = vpack.c.bf16 %v166_v16, %v166_v16  ;;  %v11075_v16 = vld [vmem:[#allocation5 + $0xef8] sm:$0xff]  }
 0x1d7   :  { %10034 = vmatpush3.bf16.msra.mxu0 %v11008_v22  ;;  %v165_v22 = vld [vmem:[#allocation2 + $0x190] sm:$0xff] }
 0x1d8   :  { %10056 = vmatpush3.bf16.msra.mxu1 %v11009_v25  ;;  %10063 = vmatprep.subr.bf16.mxu0 %v11010_v39  ;;  %v261_v25 = vpack.c.bf16 %v165_v22, %v165_v22  ;;  %v11052_v39 = vld [vmem:[#allocation5 + $0xd28] sm:$0xff]   ;;  %v11079_v22 = vld [vmem:[#allocation5 + $0xef0] sm:$0xff]  }
 0x1d9   :  { %10085 = vmatprep.subr.bf16.mxu1 %v11011_v42  ;;  %v11055_v42 = vld [vmem:[#allocation5 + $0xde0] sm:$0xff]  }
 0x1da   :  { %v9771_v17 = vpop.f32.mrf.mxu0  ;;  %7371 = vmatmul.mubr.bf16.vlgmr.msra.gmra.mxu0 %v255_v35  ;;  %v11048_v35 = vld [vmem:[#allocation5 + $0xd30] sm:$0xff]  }
 0x1db   :  { %v9793_v19 = vpop.f32.mrf.mxu1  ;;  %7411 = vmatmul.mubr.bf16.vlgmr.msra.gmra.mxu1 %v257_v38  ;;  %10064 = vmatpush3.bf16.msra.mxu0 %v11012_v43  ;;  %v11051_v38 = vld [vmem:[#allocation5 + $0xde8] sm:$0xff]   ;;  %v11056_v43 = vld [vmem:[#allocation5 + $0xd20] sm:$0xff]  }
 0x1dc   :  { %v9772_v21 = vpop.f32.mrf.mxu0  ;;  %10086 = vmatpush3.bf16.msra.mxu1 %v11013_v44  ;;  %10065 = vmatprep.subr.bf16.mxu0 %v11014_v45  ;;  %v11057_v44 = vld [vmem:[#allocation5 + $0xda0] sm:$0xff]   ;;  %v11058_v45 = vld [vmem:[#allocation5 + $0xd58] sm:$0xff]  }
 0x1dd   :  { %v9773_v23 = vadd.f32 %v9772_v21, %v9771_v17  ;;  %v9794_v24 = vpop.f32.mrf.mxu1  ;;  %10087 = vmatprep.subr.bf16.mxu1 %v11015_v46  ;;  %v163_v21 = vld [vmem:[#allocation2 + $0x180] sm:$0xff]  ;;  %7490 = vmatprep.mubr.bf16.mxu1 %v262_v20  ;;  %v11059_v46 = vld [vmem:[#allocation5 + $0xdd8] sm:$0xff]  }
 0x1de   :  { %v9795_v26 = vadd.f32 %v9794_v24, %v9793_v19  ;;  %v9774_v27 = vpop.f32.mrf.mxu0  ;;  %v260_v19 = vpack.c.bf16 %v164_v15, %v164_v15  ;;  %v259_v24 = vpack.c.bf16 %v163_v21, %v163_v21  ;;  %v11077_v20 = vld [vmem:[#allocation5 + $0xeb8] sm:$0xff]   ;;  %v11078_v21 = vld [vmem:[#allocation5 + $0xe70] sm:$0xff]  }
 0x1df   :  { %v6893_v31 = vadd.f32 %v9773_v23, %v11696_v53  ;;  %v9796_v32 = vpop.f32.mrf.mxu1  ;;  %10066 = vmatpush3.bf16.msra.mxu0 %v11016_v47  ;;  %v11022_v53 = vld [vmem:[#allocation5 + $0xc60] sm:$0xff]   ;;  %v11060_v47 = vld [vmem:[#allocation5 + $0xd18] sm:$0xff]  }
 0x1e0   :  { %v9775_v37 = vpop.f32.mrf.mxu0  ;;  %10088 = vmatpush3.bf16.msra.mxu1 %v11017_v48  ;;  %10067 = vmatprep.subr.bf16.mxu0 %v11018_v49  ;;  %v11045_v32 = vld [vmem:[#allocation5 + $0xdb8] sm:$0xff]   ;;  %v11062_v49 = vld [vmem:[#allocation5 + $0xd50] sm:$0xff]  }
 0x1e1   :  { %v11699_v40 = vadd.f32 %v9795_v26, %v6893_v31  ;;  %v9797_v41 = vpop.f32.mrf.mxu1  ;;  %10089 = vmatprep.subr.bf16.mxu1 %v11019_v50  ;;  %v11042_v26 = vld [vmem:[#allocation5 + $0xd78] sm:$0xff]   ;;  %7450 = vmatprep.mubr.bf16.mxu0 %v260_v19  ;;  %v11050_v37 = vld [vmem:[#allocation5 + $0xd68] sm:$0xff]   ;;  %v11063_v50 = vld [vmem:[#allocation5 + $0xdd0] sm:$0xff]  }
 0x1e2   :  { %v11044_v31 = vld [vmem:[#allocation5 + $0xd38] sm:$0xff]   ;;  %v11054_v41 = vld [vmem:[#allocation5 + $0xd60] sm:$0xff]  }
 0x1e3   :  { %10068 = vmatpush3.bf16.msra.mxu0 %v11020_v51  ;;  %v11061_v48 = vld [vmem:[#allocation5 + $0xd98] sm:$0xff]   ;;  %v11064_v51 = vld [vmem:[#allocation5 + $0xd10] sm:$0xff]  }
 0x1e4   :  { %10090 = vmatpush3.bf16.msra.mxu1 %v11021_v52  ;;  %10069 = vmatprep.subr.bf16.mxu0 %v11022_v53  ;;  %v11065_v52 = vld [vmem:[#allocation5 + $0xd90] sm:$0xff]   ;;  %v11066_v53 = vld [vmem:[#allocation5 + $0xd48] sm:$0xff]   ;;  %v11076_v19 = vld [vmem:[#allocation5 + $0xe38] sm:$0xff]  }
 0x1e5   :  { %10091 = vmatprep.subr.bf16.mxu1 %v11023_v54  ;;  %v11067_v54 = vld [vmem:[#allocation5 + $0xdc8] sm:$0xff]  }
 0x1e7   :  { %10070 = vmatpush3.bf16.msra.mxu0 %v11024_v55  ;;  %v11068_v55 = vld [vmem:[#allocation5 + $0xd08] sm:$0xff]  }
 0x1e8   :  { %10092 = vmatpush3.bf16.msra.mxu1 %v11025_v56  ;;  %10071 = vmatprep.subr.bf16.mxu0 %v11026_v57  ;;  %v11069_v56 = vld [vmem:[#allocation5 + $0xd88] sm:$0xff]  }
 0x1e9   :  { %10093 = vmatprep.subr.bf16.mxu1 %v11027_v58  ;;  %v11070_v58 = vld [vmem:[#allocation5 + $0xd40] sm:$0xff]  }
 0x1eb   :  { %10072 = vmatpush3.bf16.msra.mxu0 %v11028_v59 }
 0x1ec   :  { %10094 = vmatpush3.bf16.msra.mxu1 %v11029_v60  ;;  %10073 = vmatprep.subr.bf16.mxu0 %v11030_v61  ;;  %v11071_v60 = vld [vmem:[#allocation5 + $0xdc0] sm:$0xff]  }
 0x1ed   :  { %10095 = vmatprep.subr.bf16.mxu1 %v11031_v62  ;;  %v11072_v62 = vld [vmem:[#allocation5 + $0xd00] sm:$0xff]  }
 0x1ef   :  { %10074 = vmatpush3.bf16.msra.mxu0 %v11032_v63 }
 0x1f0   :  { %10096 = vmatpush3.bf16.msra.mxu1 %v11033_v0  ;;  %10075 = vmatprep.subr.bf16.mxu0 %v11034_v1  ;;  %v11073_v1 = vld [vmem:[#allocation5 + $0xd80] sm:$0xff]  }
 0x1f1   :  { %10097 = vmatprep.subr.bf16.mxu1 %v11035_v2  ;;  %v168_v2 = vld [vmem:[#allocation2 + $0x1a8] sm:$0xff] }
 0x1f3   :  { %10076 = vmatpush3.bf16.msra.mxu0 %v11036_v3 }
 0x1f4   :  { %10098 = vmatpush3.bf16.msra.mxu1 %v11037_v4  ;;  %10077 = vmatprep.subr.bf16.mxu0 %v11038_v7  ;;  %v167_v7 = vld [vmem:[#allocation2 + $0x1a0] sm:$0xff] }
 0x1f5   :  { %10099 = vmatprep.subr.bf16.mxu1 %v11039_v8  ;;  %v169_v8 = vld [vmem:[#allocation2 + $0x1b0] sm:$0xff] }
 0x1f7   :  { %10078 = vmatpush3.bf16.msra.mxu0 %v11040_v11 }
 0x1f8   :  { %10100 = vmatpush3.bf16.msra.mxu1 %v11041_v14  ;;  %10107 = vmatprep.subr.bf16.mxu0 %v11042_v26  ;;  %v11074_v14 = vld [vmem:[#allocation5 + $0xe78] sm:$0xff]   ;;  %v11083_v26 = vld [vmem:[#allocation5 + $0xee8] sm:$0xff]  }
 0x1f9   :  { %10129 = vmatprep.subr.bf16.mxu1 %v11043_v29  ;;  %v11086_v29 = vld [vmem:[#allocation5 + $0xe60] sm:$0xff]  }
 0x1fa   :  { %v9815_v5 = vpop.f32.mrf.mxu0  ;;  %7451 = vmatmul.mubr.bf16.vlgmr.msra.gmra.mxu0 %v259_v24  ;;  %v11081_v24 = vld [vmem:[#allocation5 + $0xeb0] sm:$0xff]  }
 0x1fb   :  { %v9837_v6 = vpop.f32.mrf.mxu1  ;;  %7491 = vmatmul.mubr.bf16.vlgmr.msra.gmra.mxu1 %v261_v25  ;;  %10108 = vmatpush3.bf16.msra.mxu0 %v11044_v31  ;;  %v11082_v25 = vld [vmem:[#allocation5 + $0xe68] sm:$0xff]   ;;  %v11088_v31 = vld [vmem:[#allocation5 + $0xe20] sm:$0xff]  }
 0x1fc   :  { %v9816_v9 = vpop.f32.mrf.mxu0  ;;  %10130 = vmatpush3.bf16.msra.mxu1 %v11045_v32  ;;  %10109 = vmatprep.subr.bf16.mxu0 %v11046_v33  ;;  %v11089_v32 = vld [vmem:[#allocation5 + $0xea0] sm:$0xff]   ;;  %v11090_v33 = vld [vmem:[#allocation5 + $0xe58] sm:$0xff]  }
 0x1fd   :  { %v9838_v10 = vpop.f32.mrf.mxu1  ;;  %v9817_v12 = vadd.f32 %v9816_v9, %v9815_v5  ;;  %10131 = vmatprep.subr.bf16.mxu1 %v11047_v34  ;;  %v264_v5 = vpack.c.bf16 %v168_v2, %v168_v2  ;;  %v11091_v34 = vld [vmem:[#allocation5 + $0xed8] sm:$0xff]  }
 0x1fe   :  { %v9839_v13 = vadd.f32 %v9838_v10, %v9837_v6  ;;  %v9818_v17 = vpop.f32.mrf.mxu0  ;;  %v170_v6 = vld [vmem:[#allocation2 + $0x1b8] sm:$0xff] }
 0x1ff   :  { %v9840_v18 = vpop.f32.mrf.mxu1  ;;  %v6973_v23 = vadd.f32 %v9817_v12, %v11699_v40  ;;  %10110 = vmatpush3.bf16.msra.mxu0 %v11048_v35  ;;  %v11053_v40 = vld [vmem:[#allocation5 + $0xda8] sm:$0xff]   ;;  %v266_v11 = vpack.c.bf16 %v170_v6, %v170_v6  ;;  %v263_v12 = vpack.c.bf16 %v167_v7, %v167_v7  ;;  %7530 = vmatprep.mubr.bf16.mxu0 %v264_v5  ;;  %v11092_v35 = vld [vmem:[#allocation5 + $0xe18] sm:$0xff]  }
 0x200   :  { %v9819_v27 = vpop.f32.mrf.mxu0  ;;  %10132 = vmatpush3.bf16.msra.mxu1 %v11049_v36  ;;  %10111 = vmatprep.subr.bf16.mxu0 %v11050_v37  ;;  %v11093_v36 = vld [vmem:[#allocation5 + $0xe98] sm:$0xff]   ;;  %v11094_v37 = vld [vmem:[#allocation5 + $0xe50] sm:$0xff]  }
 0x201   :  { %v9841_v28 = vpop.f32.mrf.mxu1  ;;  %v11702_v30 = vadd.f32 %v9839_v13, %v6973_v23  ;;  %10133 = vmatprep.subr.bf16.mxu1 %v11051_v38  ;;  %v265_v13 = vpack.c.bf16 %v169_v8, %v169_v8  ;;  %7570 = vmatprep.mubr.bf16.mxu1 %v266_v11  ;;  %v11080_v23 = vld [vmem:[#allocation5 + $0xe30] sm:$0xff]   ;;  %v11084_v27 = vld [vmem:[#allocation5 + $0xe28] sm:$0xff]   ;;  %v11106_v2 = vld [vmem:[#allocation5 + $0xf78] sm:$0xff]  }
 0x202   :  { %v11085_v28 = vld [vmem:[#allocation5 + $0xea8] sm:$0xff]   ;;  %v11095_v38 = vld [vmem:[#allocation5 + $0xed0] sm:$0xff]   ;;  %v11107_v5 = vld [vmem:[#allocation5 + $0xff8] sm:$0xff]  }
 0x203   :  { %10112 = vmatpush3.bf16.msra.mxu0 %v11052_v39  ;;  %v11096_v39 = vld [vmem:[#allocation5 + $0xe10] sm:$0xff]   ;;  %v11108_v7 = vld [vmem:[#allocation5 + $0xf38] sm:$0xff]  }
 0x204   :  { %10134 = vmatpush3.bf16.msra.mxu1 %v11053_v40  ;;  %10113 = vmatprep.subr.bf16.mxu0 %v11054_v41  ;;  %v11097_v40 = vld [vmem:[#allocation5 + $0xe90] sm:$0xff]   ;;  %v11098_v41 = vld [vmem:[#allocation5 + $0xe48] sm:$0xff]   ;;  %v11109_v8 = vld [vmem:[#allocation5 + $0xfb8] sm:$0xff]  }
 0x205   :  { %10135 = vmatprep.subr.bf16.mxu1 %v11055_v42  ;;  %v11099_v42 = vld [vmem:[#allocation5 + $0xec8] sm:$0xff]   ;;  %v11112_v11 = vld [vmem:[#allocation5 + $0xf30] sm:$0xff]  }
 0x207   :  { %10114 = vmatpush3.bf16.msra.mxu0 %v11056_v43  ;;  %v11100_v43 = vld [vmem:[#allocation5 + $0xe08] sm:$0xff]  }
 0x208   :  { %10136 = vmatpush3.bf16.msra.mxu1 %v11057_v44  ;;  %10115 = vmatprep.subr.bf16.mxu0 %v11058_v45  ;;  %v11101_v44 = vld [vmem:[#allocation5 + $0xe88] sm:$0xff]   ;;  %v11102_v45 = vld [vmem:[#allocation5 + $0xe40] sm:$0xff]  }
 0x209   :  { %10137 = vmatprep.subr.bf16.mxu1 %v11059_v46 }
 0x20b   :  { %10116 = vmatpush3.bf16.msra.mxu0 %v11060_v47 }
 0x20c   :  { %10138 = vmatpush3.bf16.msra.mxu1 %v11061_v48  ;;  %10117 = vmatprep.subr.bf16.mxu0 %v11062_v49  ;;  %v11103_v48 = vld [vmem:[#allocation5 + $0xec0] sm:$0xff]  }
 0x20d   :  { %10139 = vmatprep.subr.bf16.mxu1 %v11063_v50  ;;  %v11104_v49 = vld [vmem:[#allocation5 + $0xe00] sm:$0xff]  }
 0x20f   :  { %10118 = vmatpush3.bf16.msra.mxu0 %v11064_v51 }
 0x210   :  { %10140 = vmatpush3.bf16.msra.mxu1 %v11065_v52  ;;  %10119 = vmatprep.subr.bf16.mxu0 %v11066_v53  ;;  %v11105_v52 = vld [vmem:[#allocation5 + $0xe80] sm:$0xff]  }
 0x211   :  { %10141 = vmatprep.subr.bf16.mxu1 %v11067_v54 }
 0x213   :  { %10120 = vmatpush3.bf16.msra.mxu0 %v11068_v55  ;;  %v172_v55 = vld [vmem:[#allocation2 + $0x1c8] sm:$0xff] }
 0x214   :  { %10142 = vmatpush3.bf16.msra.mxu1 %v11069_v56  ;;  %10121 = vmatprep.subr.bf16.mxu0 %v11070_v58  ;;  %v174_v56 = vld [vmem:[#allocation2 + $0x1d8] sm:$0xff] }
 0x215   :  { %10143 = vmatprep.subr.bf16.mxu1 %v11071_v60  ;;  %v268_v60 = vpack.c.bf16 %v172_v55, %v172_v55 }
 0x217   :  { %10122 = vmatpush3.bf16.msra.mxu0 %v11072_v62 }
 0x218   :  { %10144 = vmatpush3.bf16.msra.mxu1 %v11073_v1  ;;  %10151 = vmatprep.subr.bf16.mxu0 %v11074_v14  ;;  %v11115_v14 = vld [vmem:[#allocation5 + $0xfe8] sm:$0xff]  }
 0x219   :  { %10173 = vmatprep.subr.bf16.mxu1 %v11075_v16  ;;  %v11117_v16 = vld [vmem:[#allocation5 + $0xfa8] sm:$0xff]  }
 0x21a   :  { %v9859_v57 = vpop.f32.mrf.mxu0  ;;  %7531 = vmatmul.mubr.bf16.vlgmr.msra.gmra.mxu0 %v263_v12  ;;  %v11113_v12 = vld [vmem:[#allocation5 + $0xfb0] sm:$0xff]  }
 0x21b   :  { %v9881_v59 = vpop.f32.mrf.mxu1  ;;  %7571 = vmatmul.mubr.bf16.vlgmr.msra.gmra.mxu1 %v265_v13  ;;  %10152 = vmatpush3.bf16.msra.mxu0 %v11076_v19  ;;  %v11114_v13 = vld [vmem:[#allocation5 + $0xf68] sm:$0xff]   ;;  %v11120_v19 = vld [vmem:[#allocation5 + $0xf20] sm:$0xff]  }
 0x21c   :  { %v9860_v61 = vpop.f32.mrf.mxu0  ;;  %10174 = vmatpush3.bf16.msra.mxu1 %v11077_v20  ;;  %10153 = vmatprep.subr.bf16.mxu0 %v11078_v21  ;;  %v11121_v20 = vld [vmem:[#allocation5 + $0xfa0] sm:$0xff]   ;;  %v11122_v21 = vld [vmem:[#allocation5 + $0xf58] sm:$0xff]  }
 0x21d   :  { %v9861_v63 = vadd.f32 %v9860_v61, %v9859_v57  ;;  %v9882_v0 = vpop.f32.mrf.mxu1  ;;  %10175 = vmatprep.subr.bf16.mxu1 %v11079_v22  ;;  %v171_v57 = vld [vmem:[#allocation2 + $0x1c0] sm:$0xff]  ;;  %v270_v61 = vpack.c.bf16 %v174_v56, %v174_v56  ;;  %7610 = vmatprep.mubr.bf16.mxu0 %v268_v60  ;;  %v11123_v22 = vld [vmem:[#allocation5 + $0xfd8] sm:$0xff]  }
 0x21e   :  { %v9883_v3 = vadd.f32 %v9882_v0, %v9881_v59  ;;  %v9862_v4 = vpop.f32.mrf.mxu0  ;;  %v267_v62 = vpack.c.bf16 %v171_v57, %v171_v57  ;;  %v11139_v56 = vld [vmem:[#allocation5 + $0x10f8] sm:$0xff]  }
 0x21f   :  { %v7053_v9 = vadd.f32 %v9861_v63, %v11702_v30  ;;  %v9884_v10 = vpop.f32.mrf.mxu1  ;;  %10154 = vmatpush3.bf16.msra.mxu0 %v11080_v23  ;;  %v11087_v30 = vld [vmem:[#allocation5 + $0xee0] sm:$0xff]   ;;  %v173_v63 = vld [vmem:[#allocation2 + $0x1d0] sm:$0xff]  ;;  %7650 = vmatprep.mubr.bf16.mxu1 %v270_v61  ;;  %v11124_v23 = vld [vmem:[#allocation5 + $0xf18] sm:$0xff]  }
 0x220   :  { %v9863_v15 = vpop.f32.mrf.mxu0  ;;  %10176 = vmatpush3.bf16.msra.mxu1 %v11081_v24  ;;  %10155 = vmatprep.subr.bf16.mxu0 %v11082_v25  ;;  %v269_v1 = vpack.c.bf16 %v173_v63, %v173_v63  ;;  %v11111_v10 = vld [vmem:[#allocation5 + $0xff0] sm:$0xff]   ;;  %v11125_v24 = vld [vmem:[#allocation5 + $0xf98] sm:$0xff]  }
 0x221   :  { %v11705_v17 = vadd.f32 %v9883_v3, %v7053_v9  ;;  %v9885_v18 = vpop.f32.mrf.mxu1  ;;  %10177 = vmatprep.subr.bf16.mxu1 %v11083_v26  ;;  %v11110_v9 = vld [vmem:[#allocation5 + $0xf70] sm:$0xff]   ;;  %v11116_v15 = vld [vmem:[#allocation5 + $0xf28] sm:$0xff]   ;;  %v11141_v60 = vld [vmem:[#allocation5 + $0x10b8] sm:$0xff]  }
 0x222   :  { %v11119_v18 = vld [vmem:[#allocation5 + $0xfe0] sm:$0xff]   ;;  %v11126_v25 = vld [vmem:[#allocation5 + $0xf50] sm:$0xff]  }
 0x223   :  { %10156 = vmatpush3.bf16.msra.mxu0 %v11084_v27  ;;  %v11127_v26 = vld [vmem:[#allocation5 + $0xfd0] sm:$0xff]  }
 0x224   :  { %10178 = vmatpush3.bf16.msra.mxu1 %v11085_v28  ;;  %10157 = vmatprep.subr.bf16.mxu0 %v11086_v29  ;;  %v11128_v27 = vld [vmem:[#allocation5 + $0xf10] sm:$0xff]   ;;  %v11130_v29 = vld [vmem:[#allocation5 + $0xf48] sm:$0xff]  }
 0x225   :  { %10179 = vmatprep.subr.bf16.mxu1 %v11087_v30  ;;  %v11129_v28 = vld [vmem:[#allocation5 + $0xf90] sm:$0xff]   ;;  %v11131_v30 = vld [vmem:[#allocation5 + $0xfc8] sm:$0xff]  }
 0x226   :  { %v11142_v61 = vld [vmem:[#allocation5 + $0x1070] sm:$0xff]  }
 0x227   :  { %10158 = vmatpush3.bf16.msra.mxu0 %v11088_v31  ;;  %v11132_v31 = vld [vmem:[#allocation5 + $0xf08] sm:$0xff]   ;;  %v11144_v63 = vld [vmem:[#allocation5 + $0x1030] sm:$0xff]  }
 0x228   :  { %10180 = vmatpush3.bf16.msra.mxu1 %v11089_v32  ;;  %10159 = vmatprep.subr.bf16.mxu0 %v11090_v33  ;;  %v11133_v32 = vld [vmem:[#allocation5 + $0xf88] sm:$0xff]  }
 0x229   :  { %10181 = vmatprep.subr.bf16.mxu1 %v11091_v34  ;;  %v11134_v34 = vld [vmem:[#allocation5 + $0xf40] sm:$0xff]  }
 0x22b   :  { %10160 = vmatpush3.bf16.msra.mxu0 %v11092_v35 }
 0x22c   :  { %10182 = vmatpush3.bf16.msra.mxu1 %v11093_v36  ;;  %10161 = vmatprep.subr.bf16.mxu0 %v11094_v37  ;;  %v11135_v36 = vld [vmem:[#allocation5 + $0xfc0] sm:$0xff]  }
 0x22d   :  { %10183 = vmatprep.subr.bf16.mxu1 %v11095_v38  ;;  %v11136_v38 = vld [vmem:[#allocation5 + $0xf00] sm:$0xff]  }
 0x22f   :  { %10162 = vmatpush3.bf16.msra.mxu0 %v11096_v39 }
 0x230   :  { %10184 = vmatpush3.bf16.msra.mxu1 %v11097_v40  ;;  %10163 = vmatprep.subr.bf16.mxu0 %v11098_v41  ;;  %v11137_v41 = vld [vmem:[#allocation5 + $0xf80] sm:$0xff]  }
 0x231   :  { %10185 = vmatprep.subr.bf16.mxu1 %v11099_v42  ;;  %v176_v42 = vld [vmem:[#allocation2 + $0x1e8] sm:$0xff] }
 0x233   :  { %10164 = vmatpush3.bf16.msra.mxu0 %v11100_v43  ;;  %v178_v43 = vld [vmem:[#allocation2 + $0x1f8] sm:$0xff] }
 0x234   :  { %10186 = vmatpush3.bf16.msra.mxu1 %v11101_v44  ;;  %10165 = vmatprep.subr.bf16.mxu0 %v11102_v45 }
 0x235   :  { %10187 = vmatprep.subr.bf16.mxu1 %v11103_v48  ;;  %v175_v48 = vld [vmem:[#allocation2 + $0x1e0] sm:$0xff] }
 0x237   :  { %10166 = vmatpush3.bf16.msra.mxu0 %v11104_v49  ;;  %v177_v49 = vld [vmem:[#allocation2 + $0x1f0] sm:$0xff] }
 0x238   :  { %10188 = vmatpush3.bf16.msra.mxu1 %v11105_v52  ;;  %10195 = vmatprep.subr.bf16.mxu0 %v11106_v2  ;;  %v271_v52 = vpack.c.bf16 %v175_v48, %v175_v48  ;;  %v11147_v2 = vld [vmem:[#allocation5 + $0x10e8] sm:$0xff]   ;;  %v11173_v48 = vld [vmem:[#allocation5 + $0x11b8] sm:$0xff]  }
 0x239   :  { %10217 = vmatprep.subr.bf16.mxu1 %v11107_v5  ;;  %v11150_v5 = vld [vmem:[#allocation5 + $0x1060] sm:$0xff]  }
 0x23a   :  { %v9903_v46 = vpop.f32.mrf.mxu0  ;;  %7611 = vmatmul.mubr.bf16.vlgmr.msra.gmra.mxu0 %v267_v62  ;;  %v11143_v62 = vld [vmem:[#allocation5 + $0x10f0] sm:$0xff]  }
 0x23b   :  { %v9925_v47 = vpop.f32.mrf.mxu1  ;;  %7651 = vmatmul.mubr.bf16.vlgmr.msra.gmra.mxu1 %v269_v1  ;;  %10196 = vmatpush3.bf16.msra.mxu0 %v11108_v7  ;;  %v11146_v1 = vld [vmem:[#allocation5 + $0x1068] sm:$0xff]   ;;  %v11152_v7 = vld [vmem:[#allocation5 + $0x1020] sm:$0xff]  }
 0x23c   :  { %v9904_v50 = vpop.f32.mrf.mxu0  ;;  %10218 = vmatpush3.bf16.msra.mxu1 %v11109_v8  ;;  %10197 = vmatprep.subr.bf16.mxu0 %v11110_v9  ;;  %v11153_v8 = vld [vmem:[#allocation5 + $0x10a0] sm:$0xff]   ;;  %v11154_v9 = vld [vmem:[#allocation5 + $0x1058] sm:$0xff]  }
 0x23d   :  { %v9926_v51 = vpop.f32.mrf.mxu1  ;;  %v9905_v53 = vadd.f32 %v9904_v50, %v9903_v46  ;;  %10219 = vmatprep.subr.bf16.mxu1 %v11111_v10  ;;  %v272_v46 = vpack.c.bf16 %v176_v42, %v176_v42  ;;  %v11155_v10 = vld [vmem:[#allocation5 + $0x10d8] sm:$0xff]  }
 0x23e   :  { %v9927_v54 = vadd.f32 %v9926_v51, %v9925_v47  ;;  %v9906_v58 = vpop.f32.mrf.mxu0  ;;  %v274_v47 = vpack.c.bf16 %v178_v43, %v178_v43  ;;  %v11170_v42 = vld [vmem:[#allocation5 + $0x1178] sm:$0xff]  }
 0x23f   :  { %v9928_v59 = vpop.f32.mrf.mxu1  ;;  %v7133_v0 = vadd.f32 %v9905_v53, %v11705_v17  ;;  %10198 = vmatpush3.bf16.msra.mxu0 %v11112_v11  ;;  %v11118_v17 = vld [vmem:[#allocation5 + $0xf60] sm:$0xff]   ;;  %v273_v53 = vpack.c.bf16 %v177_v49, %v177_v49  ;;  %7690 = vmatprep.mubr.bf16.mxu0 %v272_v46  ;;  %v11156_v11 = vld [vmem:[#allocation5 + $0x1018] sm:$0xff]   ;;  %v11174_v49 = vld [vmem:[#allocation5 + $0x1170] sm:$0xff]  }
 0x240   :  { %v9907_v3 = vpop.f32.mrf.mxu0  ;;  %10220 = vmatpush3.bf16.msra.mxu1 %v11113_v12  ;;  %10199 = vmatprep.subr.bf16.mxu0 %v11114_v13  ;;  %v11140_v59 = vld [vmem:[#allocation5 + $0x1038] sm:$0xff]   ;;  %v11158_v13 = vld [vmem:[#allocation5 + $0x1050] sm:$0xff]  }
 0x241   :  { %v9929_v4 = vpop.f32.mrf.mxu1  ;;  %v11708_v6 = vadd.f32 %v9927_v54, %v7133_v0  ;;  %10221 = vmatprep.subr.bf16.mxu1 %v11115_v14  ;;  %v11138_v54 = vld [vmem:[#allocation5 + $0x1078] sm:$0xff]   ;;  %7730 = vmatprep.mubr.bf16.mxu1 %v274_v47  ;;  %v11145_v0 = vld [vmem:[#allocation5 + $0x10b0] sm:$0xff]   ;;  %v11148_v3 = vld [vmem:[#allocation5 + $0x1028] sm:$0xff]  }
 0x242   :  { %v11149_v4 = vld [vmem:[#allocation5 + $0x10a8] sm:$0xff]   ;;  %v11157_v12 = vld [vmem:[#allocation5 + $0x1098] sm:$0xff]   ;;  %v11159_v14 = vld [vmem:[#allocation5 + $0x10d0] sm:$0xff]  }
 0x243   :  { %10200 = vmatpush3.bf16.msra.mxu0 %v11116_v15  ;;  %v11160_v15 = vld [vmem:[#allocation5 + $0x1010] sm:$0xff]   ;;  %v11172_v47 = vld [vmem:[#allocation5 + $0x1138] sm:$0xff]  }
 0x244   :  { %10222 = vmatpush3.bf16.msra.mxu1 %v11117_v16  ;;  %10201 = vmatprep.subr.bf16.mxu0 %v11118_v17  ;;  %v11161_v16 = vld [vmem:[#allocation5 + $0x1090] sm:$0xff]   ;;  %v11162_v17 = vld [vmem:[#allocation5 + $0x1048] sm:$0xff]  }
 0x245   :  { %10223 = vmatprep.subr.bf16.mxu1 %v11119_v18  ;;  %v11163_v18 = vld [vmem:[#allocation5 + $0x10c8] sm:$0xff]  }
 0x247   :  { %10202 = vmatpush3.bf16.msra.mxu0 %v11120_v19  ;;  %v11164_v19 = vld [vmem:[#allocation5 + $0x1008] sm:$0xff]  }
 0x248   :  { %10224 = vmatpush3.bf16.msra.mxu1 %v11121_v20  ;;  %10203 = vmatprep.subr.bf16.mxu0 %v11122_v21  ;;  %v11165_v20 = vld [vmem:[#allocation5 + $0x1088] sm:$0xff]  }
 0x249   :  { %10225 = vmatprep.subr.bf16.mxu1 %v11123_v22  ;;  %v11166_v22 = vld [vmem:[#allocation5 + $0x1040] sm:$0xff]  }
 0x24b   :  { %10204 = vmatpush3.bf16.msra.mxu0 %v11124_v23 }
 0x24c   :  { %10226 = vmatpush3.bf16.msra.mxu1 %v11125_v24  ;;  %10205 = vmatprep.subr.bf16.mxu0 %v11126_v25  ;;  %v11167_v24 = vld [vmem:[#allocation5 + $0x10c0] sm:$0xff]  }
 0x24d   :  { %10227 = vmatprep.subr.bf16.mxu1 %v11127_v26  ;;  %v11168_v26 = vld [vmem:[#allocation5 + $0x1000] sm:$0xff]  }
 0x24f   :  { %10206 = vmatpush3.bf16.msra.mxu0 %v11128_v27 }
 0x250   :  { %10228 = vmatpush3.bf16.msra.mxu1 %v11129_v28  ;;  %10207 = vmatprep.subr.bf16.mxu0 %v11130_v29  ;;  %v11169_v29 = vld [vmem:[#allocation5 + $0x1080] sm:$0xff]  }
 0x251   :  { %10229 = vmatprep.subr.bf16.mxu1 %v11131_v30  ;;  %v180_v30 = vld [vmem:[#allocation2 + $0x208] sm:$0xff] }
 0x253   :  { %10208 = vmatpush3.bf16.msra.mxu0 %v11132_v31 }
 0x254   :  { %10230 = vmatpush3.bf16.msra.mxu1 %v11133_v32  ;;  %10209 = vmatprep.subr.bf16.mxu0 %v11134_v34  ;;  %v182_v34 = vld [vmem:[#allocation2 + $0x218] sm:$0xff] }
 0x255   :  { %10231 = vmatprep.subr.bf16.mxu1 %v11135_v36  ;;  %v181_v36 = vld [vmem:[#allocation2 + $0x210] sm:$0xff] }
 0x257   :  { %10210 = vmatpush3.bf16.msra.mxu0 %v11136_v38 }
 0x258   :  { %10232 = vmatpush3.bf16.msra.mxu1 %v11137_v41  ;;  %10239 = vmatprep.subr.bf16.mxu0 %v11138_v54  ;;  %v277_v41 = vpack.c.bf16 %v181_v36, %v181_v36  ;;  %v11179_v54 = vld [vmem:[#allocation5 + $0x11e8] sm:$0xff]   ;;  %v11205_v36 = vld [vmem:[#allocation5 + $0x12b8] sm:$0xff]  }
 0x259   :  { %10261 = vmatprep.subr.bf16.mxu1 %v11139_v56  ;;  %v11181_v56 = vld [vmem:[#allocation5 + $0x11a8] sm:$0xff]  }
 0x25a   :  { %v9947_v33 = vpop.f32.mrf.mxu0  ;;  %7691 = vmatmul.mubr.bf16.vlgmr.msra.gmra.mxu0 %v271_v52  ;;  %v11177_v52 = vld [vmem:[#allocation5 + $0x11b0] sm:$0xff]  }
 0x25b   :  { %v9969_v35 = vpop.f32.mrf.mxu1  ;;  %7731 = vmatmul.mubr.bf16.vlgmr.msra.gmra.mxu1 %v273_v53  ;;  %10240 = vmatpush3.bf16.msra.mxu0 %v11140_v59  ;;  %v11178_v53 = vld [vmem:[#allocation5 + $0x1168] sm:$0xff]   ;;  %v11184_v59 = vld [vmem:[#allocation5 + $0x1120] sm:$0xff]  }
 0x25c   :  { %v9948_v37 = vpop.f32.mrf.mxu0  ;;  %10262 = vmatpush3.bf16.msra.mxu1 %v11141_v60  ;;  %10241 = vmatprep.subr.bf16.mxu0 %v11142_v61  ;;  %v11185_v60 = vld [vmem:[#allocation5 + $0x11a0] sm:$0xff]   ;;  %v11186_v61 = vld [vmem:[#allocation5 + $0x1158] sm:$0xff]  }
 0x25d   :  { %v9949_v39 = vadd.f32 %v9948_v37, %v9947_v33  ;;  %v9970_v40 = vpop.f32.mrf.mxu1  ;;  %10263 = vmatprep.subr.bf16.mxu1 %v11143_v62  ;;  %v276_v33 = vpack.c.bf16 %v180_v30, %v180_v30  ;;  %v11187_v62 = vld [vmem:[#allocation5 + $0x11d8] sm:$0xff]  }
 0x25e   :  { %v9971_v44 = vadd.f32 %v9970_v40, %v9969_v35  ;;  %v9950_v45 = vpop.f32.mrf.mxu0  ;;  %v179_v35 = vld [vmem:[#allocation2 + $0x200] sm:$0xff]  ;;  %v11202_v30 = vld [vmem:[#allocation5 + $0x1278] sm:$0xff]  }
 0x25f   :  { %v7213_v50 = vadd.f32 %v9949_v39, %v11708_v6  ;;  %v9972_v51 = vpop.f32.mrf.mxu1  ;;  %10242 = vmatpush3.bf16.msra.mxu0 %v11144_v63  ;;  %v11151_v6 = vld [vmem:[#allocation5 + $0x10e0] sm:$0xff]   ;;  %v278_v39 = vpack.c.bf16 %v182_v34, %v182_v34  ;;  %v275_v40 = vpack.c.bf16 %v179_v35, %v179_v35  ;;  %7770 = vmatprep.mubr.bf16.mxu0 %v276_v33  ;;  %v11188_v63 = vld [vmem:[#allocation5 + $0x1118] sm:$0xff]  }
 0x260   :  { %v9951_v55 = vpop.f32.mrf.mxu0  ;;  %10264 = vmatpush3.bf16.msra.mxu1 %v11145_v0  ;;  %10243 = vmatprep.subr.bf16.mxu0 %v11146_v1  ;;  %v11176_v51 = vld [vmem:[#allocation5 + $0x1130] sm:$0xff]   ;;  %v11189_v0 = vld [vmem:[#allocation5 + $0x1198] sm:$0xff]  }
 0x261   :  { %v11711_v57 = vadd.f32 %v9971_v44, %v7213_v50  ;;  %v9973_v58 = vpop.f32.mrf.mxu1  ;;  %10265 = vmatprep.subr.bf16.mxu1 %v11147_v2  ;;  %v11171_v44 = vld [vmem:[#allocation5 + $0x11f8] sm:$0xff]   ;;  %7810 = vmatprep.mubr.bf16.mxu1 %v278_v39  ;;  %v11175_v50 = vld [vmem:[#allocation5 + $0x11f0] sm:$0xff]   ;;  %v11180_v55 = vld [vmem:[#allocation5 + $0x1128] sm:$0xff]  }
 0x262   :  { %v11183_v58 = vld [vmem:[#allocation5 + $0x11e0] sm:$0xff]   ;;  %v11190_v1 = vld [vmem:[#allocation5 + $0x1150] sm:$0xff]   ;;  %v11203_v33 = vld [vmem:[#allocation5 + $0x12f8] sm:$0xff]  }
 0x263   :  { %10244 = vmatpush3.bf16.msra.mxu0 %v11148_v3  ;;  %v11191_v2 = vld [vmem:[#allocation5 + $0x11d0] sm:$0xff]   ;;  %v11204_v35 = vld [vmem:[#allocation5 + $0x1238] sm:$0xff]  }
 0x264   :  { %10266 = vmatpush3.bf16.msra.mxu1 %v11149_v4  ;;  %10245 = vmatprep.subr.bf16.mxu0 %v11150_v5  ;;  %v11192_v3 = vld [vmem:[#allocation5 + $0x1110] sm:$0xff]   ;;  %v11194_v5 = vld [vmem:[#allocation5 + $0x1148] sm:$0xff]  }
 0x265   :  { %10267 = vmatprep.subr.bf16.mxu1 %v11151_v6  ;;  %v11193_v4 = vld [vmem:[#allocation5 + $0x1190] sm:$0xff]   ;;  %v11195_v6 = vld [vmem:[#allocation5 + $0x11c8] sm:$0xff]  }
 0x266   :  { %v11208_v39 = vld [vmem:[#allocation5 + $0x1230] sm:$0xff]  }
 0x267   :  { %10246 = vmatpush3.bf16.msra.mxu0 %v11152_v7  ;;  %v11196_v7 = vld [vmem:[#allocation5 + $0x1108] sm:$0xff]  }
 0x268   :  { %10268 = vmatpush3.bf16.msra.mxu1 %v11153_v8  ;;  %10247 = vmatprep.subr.bf16.mxu0 %v11154_v9  ;;  %v11197_v8 = vld [vmem:[#allocation5 + $0x1188] sm:$0xff]   ;;  %v11198_v9 = vld [vmem:[#allocation5 + $0x1140] sm:$0xff]  }
 0x269   :  { %10269 = vmatprep.subr.bf16.mxu1 %v11155_v10 }
 0x26b   :  { %10248 = vmatpush3.bf16.msra.mxu0 %v11156_v11 }
 0x26c   :  { %10270 = vmatpush3.bf16.msra.mxu1 %v11157_v12  ;;  %10249 = vmatprep.subr.bf16.mxu0 %v11158_v13  ;;  %v11199_v12 = vld [vmem:[#allocation5 + $0x11c0] sm:$0xff]  }
 0x26d   :  { %10271 = vmatprep.subr.bf16.mxu1 %v11159_v14  ;;  %v11200_v13 = vld [vmem:[#allocation5 + $0x1100] sm:$0xff]  }
 0x26f   :  { %10250 = vmatpush3.bf16.msra.mxu0 %v11160_v15 }
 0x270   :  { %10272 = vmatpush3.bf16.msra.mxu1 %v11161_v16  ;;  %10251 = vmatprep.subr.bf16.mxu0 %v11162_v17  ;;  %v11201_v16 = vld [vmem:[#allocation5 + $0x1180] sm:$0xff]  }
 0x271   :  { %10273 = vmatprep.subr.bf16.mxu1 %v11163_v18 }
 0x273   :  { %10252 = vmatpush3.bf16.msra.mxu0 %v11164_v19  ;;  %v184_v19 = vld [vmem:[#allocation2 + $0x228] sm:$0xff] }
 0x274   :  { %10274 = vmatpush3.bf16.msra.mxu1 %v11165_v20  ;;  %10253 = vmatprep.subr.bf16.mxu0 %v11166_v22  ;;  %v186_v20 = vld [vmem:[#allocation2 + $0x238] sm:$0xff] }
 0x275   :  { %10275 = vmatprep.subr.bf16.mxu1 %v11167_v24  ;;  %v280_v24 = vpack.c.bf16 %v184_v19, %v184_v19 }
 0x277   :  { %10254 = vmatpush3.bf16.msra.mxu0 %v11168_v26 }
 0x278   :  { %10276 = vmatpush3.bf16.msra.mxu1 %v11169_v29  ;;  %10283 = vmatprep.subr.bf16.mxu0 %v11170_v42  ;;  %v11211_v42 = vld [vmem:[#allocation5 + $0x12e8] sm:$0xff]  }
 0x279   :  { %10305 = vmatprep.subr.bf16.mxu1 %v11171_v44  ;;  %v11213_v44 = vld [vmem:[#allocation5 + $0x12a8] sm:$0xff]  }
 0x27a   :  { %v9991_v21 = vpop.f32.mrf.mxu0  ;;  %7771 = vmatmul.mubr.bf16.vlgmr.msra.gmra.mxu0 %v275_v40  ;;  %v11209_v40 = vld [vmem:[#allocation5 + $0x12b0] sm:$0xff]  }
 0x27b   :  { %v10013_v23 = vpop.f32.mrf.mxu1  ;;  %7811 = vmatmul.mubr.bf16.vlgmr.msra.gmra.mxu1 %v277_v41  ;;  %10284 = vmatpush3.bf16.msra.mxu0 %v11172_v47  ;;  %v11210_v41 = vld [vmem:[#allocation5 + $0x1268] sm:$0xff]   ;;  %v11216_v47 = vld [vmem:[#allocation5 + $0x1220] sm:$0xff]  }
 0x27c   :  { %v9992_v25 = vpop.f32.mrf.mxu0  ;;  %10306 = vmatpush3.bf16.msra.mxu1 %v11173_v48  ;;  %10285 = vmatprep.subr.bf16.mxu0 %v11174_v49  ;;  %v11217_v48 = vld [vmem:[#allocation5 + $0x12a0] sm:$0xff]   ;;  %v11218_v49 = vld [vmem:[#allocation5 + $0x1258] sm:$0xff]  }
 0x27d   :  { %v9993_v27 = vadd.f32 %v9992_v25, %v9991_v21  ;;  %v10014_v28 = vpop.f32.mrf.mxu1  ;;  %10307 = vmatprep.subr.bf16.mxu1 %v11175_v50  ;;  %v183_v21 = vld [vmem:[#allocation2 + $0x220] sm:$0xff]  ;;  %v282_v25 = vpack.c.bf16 %v186_v20, %v186_v20  ;;  %7850 = vmatprep.mubr.bf16.mxu0 %v280_v24  ;;  %v11219_v50 = vld [vmem:[#allocation5 + $0x12d8] sm:$0xff]  }
 0x27e   :  { %v10015_v31 = vadd.f32 %v10014_v28, %v10013_v23  ;;  %v9994_v32 = vpop.f32.mrf.mxu0  ;;  %v279_v26 = vpack.c.bf16 %v183_v21, %v183_v21  ;;  %v11235_v20 = vld [vmem:[#allocation5 + $0x13f8] sm:$0xff]  }
 0x27f   :  { %v7293_v37 = vadd.f32 %v9993_v27, %v11711_v57  ;;  %v10016_v38 = vpop.f32.mrf.mxu1  ;;  %10286 = vmatpush3.bf16.msra.mxu0 %v11176_v51  ;;  %v11182_v57 = vld [vmem:[#allocation5 + $0x1160] sm:$0xff]   ;;  %v185_v27 = vld [vmem:[#allocation2 + $0x230] sm:$0xff]  ;;  %7890 = vmatprep.mubr.bf16.mxu1 %v282_v25  ;;  %v11220_v51 = vld [vmem:[#allocation5 + $0x1218] sm:$0xff]  }
 0x280   :  { %v9995_v43 = vpop.f32.mrf.mxu0  ;;  %10308 = vmatpush3.bf16.msra.mxu1 %v11177_v52  ;;  %10287 = vmatprep.subr.bf16.mxu0 %v11178_v53  ;;  %v281_v29 = vpack.c.bf16 %v185_v27, %v185_v27  ;;  %v11207_v38 = vld [vmem:[#allocation5 + $0x12f0] sm:$0xff]   ;;  %v11221_v52 = vld [vmem:[#allocation5 + $0x1298] sm:$0xff]  }
 0x281   :  { %v11714_v45 = vadd.f32 %v10015_v31, %v7293_v37  ;;  %v10017_v46 = vpop.f32.mrf.mxu1  ;;  %10309 = vmatprep.subr.bf16.mxu1 %v11179_v54  ;;  %v11206_v37 = vld [vmem:[#allocation5 + $0x1270] sm:$0xff]   ;;  %v11212_v43 = vld [vmem:[#allocation5 + $0x1228] sm:$0xff]   ;;  %v11237_v24 = vld [vmem:[#allocation5 + $0x13b8] sm:$0xff]  }
 0x282   :  { %v11215_v46 = vld [vmem:[#allocation5 + $0x12e0] sm:$0xff]   ;;  %v11222_v53 = vld [vmem:[#allocation5 + $0x1250] sm:$0xff]  }
 0x283   :  { %10288 = vmatpush3.bf16.msra.mxu0 %v11180_v55  ;;  %v11223_v54 = vld [vmem:[#allocation5 + $0x12d0] sm:$0xff]  }
 0x284   :  { %10310 = vmatpush3.bf16.msra.mxu1 %v11181_v56  ;;  %10289 = vmatprep.subr.bf16.mxu0 %v11182_v57  ;;  %v11224_v55 = vld [vmem:[#allocation5 + $0x1210] sm:$0xff]   ;;  %v11226_v57 = vld [vmem:[#allocation5 + $0x1248] sm:$0xff]  }
 0x285   :  { %10311 = vmatprep.subr.bf16.mxu1 %v11183_v58  ;;  %v11225_v56 = vld [vmem:[#allocation5 + $0x1290] sm:$0xff]   ;;  %v11227_v58 = vld [vmem:[#allocation5 + $0x12c8] sm:$0xff]  }
 0x286   :  { %v11238_v25 = vld [vmem:[#allocation5 + $0x1370] sm:$0xff]  }
 0x287   :  { %10290 = vmatpush3.bf16.msra.mxu0 %v11184_v59  ;;  %v11228_v59 = vld [vmem:[#allocation5 + $0x1208] sm:$0xff]   ;;  %v11240_v27 = vld [vmem:[#allocation5 + $0x1330] sm:$0xff]  }
 0x288   :  { %10312 = vmatpush3.bf16.msra.mxu1 %v11185_v60  ;;  %10291 = vmatprep.subr.bf16.mxu0 %v11186_v61  ;;  %v11229_v60 = vld [vmem:[#allocation5 + $0x1288] sm:$0xff]  }
 0x289   :  { %10313 = vmatprep.subr.bf16.mxu1 %v11187_v62  ;;  %v11230_v62 = vld [vmem:[#allocation5 + $0x1240] sm:$0xff]  }
 0x28b   :  { %10292 = vmatpush3.bf16.msra.mxu0 %v11188_v63 }
 0x28c   :  { %10314 = vmatpush3.bf16.msra.mxu1 %v11189_v0  ;;  %10293 = vmatprep.subr.bf16.mxu0 %v11190_v1  ;;  %v11231_v0 = vld [vmem:[#allocation5 + $0x12c0] sm:$0xff]  }
 0x28d   :  { %10315 = vmatprep.subr.bf16.mxu1 %v11191_v2  ;;  %v11232_v2 = vld [vmem:[#allocation5 + $0x1200] sm:$0xff]  }
 0x28f   :  { %10294 = vmatpush3.bf16.msra.mxu0 %v11192_v3 }
 0x290   :  { %10316 = vmatpush3.bf16.msra.mxu1 %v11193_v4  ;;  %10295 = vmatprep.subr.bf16.mxu0 %v11194_v5  ;;  %v11233_v5 = vld [vmem:[#allocation5 + $0x1280] sm:$0xff]  }
 0x291   :  { %10317 = vmatprep.subr.bf16.mxu1 %v11195_v6  ;;  %v188_v6 = vld [vmem:[#allocation2 + $0x248] sm:$0xff] }
 0x293   :  { %10296 = vmatpush3.bf16.msra.mxu0 %v11196_v7  ;;  %v190_v7 = vld [vmem:[#allocation2 + $0x258] sm:$0xff] }
 0x294   :  { %10318 = vmatpush3.bf16.msra.mxu1 %v11197_v8  ;;  %10297 = vmatprep.subr.bf16.mxu0 %v11198_v9 }
 0x295   :  { %10319 = vmatprep.subr.bf16.mxu1 %v11199_v12  ;;  %v187_v12 = vld [vmem:[#allocation2 + $0x240] sm:$0xff] }
 0x297   :  { %10298 = vmatpush3.bf16.msra.mxu0 %v11200_v13  ;;  %v189_v13 = vld [vmem:[#allocation2 + $0x250] sm:$0xff] }
 0x298   :  { %10320 = vmatpush3.bf16.msra.mxu1 %v11201_v16  ;;  %10327 = vmatprep.subr.bf16.mxu0 %v11202_v30  ;;  %v283_v16 = vpack.c.bf16 %v187_v12, %v187_v12  ;;  %v11243_v30 = vld [vmem:[#allocation5 + $0x13e8] sm:$0xff]   ;;  %v11269_v12 = vld [vmem:[#allocation5 + $0x14b8] sm:$0xff]  }
 0x299   :  { %10349 = vmatprep.subr.bf16.mxu1 %v11203_v33  ;;  %v11246_v33 = vld [vmem:[#allocation5 + $0x1360] sm:$0xff]  }
 0x29a   :  { %v10035_v10 = vpop.f32.mrf.mxu0  ;;  %7851 = vmatmul.mubr.bf16.vlgmr.msra.gmra.mxu0 %v279_v26  ;;  %v11239_v26 = vld [vmem:[#allocation5 + $0x13f0] sm:$0xff]  }
 0x29b   :  { %v10057_v11 = vpop.f32.mrf.mxu1  ;;  %7891 = vmatmul.mubr.bf16.vlgmr.msra.gmra.mxu1 %v281_v29  ;;  %10328 = vmatpush3.bf16.msra.mxu0 %v11204_v35  ;;  %v11242_v29 = vld [vmem:[#allocation5 + $0x1368] sm:$0xff]   ;;  %v11248_v35 = vld [vmem:[#allocation5 + $0x1320] sm:$0xff]  }
 0x29c   :  { %v10036_v14 = vpop.f32.mrf.mxu0  ;;  %10350 = vmatpush3.bf16.msra.mxu1 %v11205_v36  ;;  %10329 = vmatprep.subr.bf16.mxu0 %v11206_v37  ;;  %v11249_v36 = vld [vmem:[#allocation5 + $0x13a0] sm:$0xff]   ;;  %v11250_v37 = vld [vmem:[#allocation5 + $0x1358] sm:$0xff]  }
 0x29d   :  { %v10058_v15 = vpop.f32.mrf.mxu1  ;;  %v10037_v17 = vadd.f32 %v10036_v14, %v10035_v10  ;;  %10351 = vmatprep.subr.bf16.mxu1 %v11207_v38  ;;  %v284_v10 = vpack.c.bf16 %v188_v6, %v188_v6  ;;  %v11251_v38 = vld [vmem:[#allocation5 + $0x13d8] sm:$0xff]  }
 0x29e   :  { %v10059_v18 = vadd.f32 %v10058_v15, %v10057_v11  ;;  %v10038_v22 = vpop.f32.mrf.mxu0  ;;  %v286_v11 = vpack.c.bf16 %v190_v7, %v190_v7  ;;  %v11266_v6 = vld [vmem:[#allocation5 + $0x1478] sm:$0xff]  }
 0x29f   :  { %v10060_v23 = vpop.f32.mrf.mxu1  ;;  %v7373_v28 = vadd.f32 %v10037_v17, %v11714_v45  ;;  %10330 = vmatpush3.bf16.msra.mxu0 %v11208_v39  ;;  %v11214_v45 = vld [vmem:[#allocation5 + $0x1260] sm:$0xff]   ;;  %v285_v17 = vpack.c.bf16 %v189_v13, %v189_v13  ;;  %7930 = vmatprep.mubr.bf16.mxu0 %v284_v10  ;;  %v11252_v39 = vld [vmem:[#allocation5 + $0x1318] sm:$0xff]   ;;  %v11270_v13 = vld [vmem:[#allocation5 + $0x1470] sm:$0xff]  }
 0x2a0   :  { %v10039_v31 = vpop.f32.mrf.mxu0  ;;  %10352 = vmatpush3.bf16.msra.mxu1 %v11209_v40  ;;  %10331 = vmatprep.subr.bf16.mxu0 %v11210_v41  ;;  %v11236_v23 = vld [vmem:[#allocation5 + $0x1338] sm:$0xff]   ;;  %v11254_v41 = vld [vmem:[#allocation5 + $0x1350] sm:$0xff]  }
 0x2a1   :  { %v10061_v32 = vpop.f32.mrf.mxu1  ;;  %v11717_v34 = vadd.f32 %v10059_v18, %v7373_v28  ;;  %10353 = vmatprep.subr.bf16.mxu1 %v11211_v42  ;;  %v11234_v18 = vld [vmem:[#allocation5 + $0x1378] sm:$0xff]   ;;  %7970 = vmatprep.mubr.bf16.mxu1 %v286_v11  ;;  %v11241_v28 = vld [vmem:[#allocation5 + $0x13b0] sm:$0xff]   ;;  %v11244_v31 = vld [vmem:[#allocation5 + $0x1328] sm:$0xff]  }
 0x2a2   :  { %v11245_v32 = vld [vmem:[#allocation5 + $0x13a8] sm:$0xff]   ;;  %v11253_v40 = vld [vmem:[#allocation5 + $0x1398] sm:$0xff]   ;;  %v11255_v42 = vld [vmem:[#allocation5 + $0x13d0] sm:$0xff]  }
 0x2a3   :  { %10332 = vmatpush3.bf16.msra.mxu0 %v11212_v43  ;;  %v11256_v43 = vld [vmem:[#allocation5 + $0x1310] sm:$0xff]   ;;  %v11268_v11 = vld [vmem:[#allocation5 + $0x1438] sm:$0xff]  }
 0x2a4   :  { %10354 = vmatpush3.bf16.msra.mxu1 %v11213_v44  ;;  %10333 = vmatprep.subr.bf16.mxu0 %v11214_v45  ;;  %v11257_v44 = vld [vmem:[#allocation5 + $0x1390] sm:$0xff]   ;;  %v11258_v45 = vld [vmem:[#allocation5 + $0x1348] sm:$0xff]  }
 0x2a5   :  { %10355 = vmatprep.subr.bf16.mxu1 %v11215_v46  ;;  %v11259_v46 = vld [vmem:[#allocation5 + $0x13c8] sm:$0xff]  }
 0x2a7   :  { %10334 = vmatpush3.bf16.msra.mxu0 %v11216_v47  ;;  %v11260_v47 = vld [vmem:[#allocation5 + $0x1308] sm:$0xff]  }
 0x2a8   :  { %10356 = vmatpush3.bf16.msra.mxu1 %v11217_v48  ;;  %10335 = vmatprep.subr.bf16.mxu0 %v11218_v49  ;;  %v11261_v48 = vld [vmem:[#allocation5 + $0x1388] sm:$0xff]  }
 0x2a9   :  { %10357 = vmatprep.subr.bf16.mxu1 %v11219_v50  ;;  %v11262_v50 = vld [vmem:[#allocation5 + $0x1340] sm:$0xff]  }
 0x2ab   :  { %10336 = vmatpush3.bf16.msra.mxu0 %v11220_v51 }
 0x2ac   :  { %10358 = vmatpush3.bf16.msra.mxu1 %v11221_v52  ;;  %10337 = vmatprep.subr.bf16.mxu0 %v11222_v53  ;;  %v11263_v52 = vld [vmem:[#allocation5 + $0x13c0] sm:$0xff]  }
 0x2ad   :  { %10359 = vmatprep.subr.bf16.mxu1 %v11223_v54  ;;  %v11264_v54 = vld [vmem:[#allocation5 + $0x1300] sm:$0xff]  }
 0x2af   :  { %10338 = vmatpush3.bf16.msra.mxu0 %v11224_v55 }
 0x2b0   :  { %10360 = vmatpush3.bf16.msra.mxu1 %v11225_v56  ;;  %10339 = vmatprep.subr.bf16.mxu0 %v11226_v57  ;;  %v11265_v57 = vld [vmem:[#allocation5 + $0x1380] sm:$0xff]  }
 0x2b1   :  { %10361 = vmatprep.subr.bf16.mxu1 %v11227_v58  ;;  %v192_v58 = vld [vmem:[#allocation2 + $0x268] sm:$0xff] }
 0x2b3   :  { %10340 = vmatpush3.bf16.msra.mxu0 %v11228_v59 }
 0x2b4   :  { %10362 = vmatpush3.bf16.msra.mxu1 %v11229_v60  ;;  %10341 = vmatprep.subr.bf16.mxu0 %v11230_v62  ;;  %v194_v62 = vld [vmem:[#allocation2 + $0x278] sm:$0xff] }
 0x2b5   :  { %10363 = vmatprep.subr.bf16.mxu1 %v11231_v0  ;;  %v193_v0 = vld [vmem:[#allocation2 + $0x270] sm:$0xff] }
 0x2b7   :  { %10342 = vmatpush3.bf16.msra.mxu0 %v11232_v2 }
 0x2b8   :  { %10364 = vmatpush3.bf16.msra.mxu1 %v11233_v5  ;;  %10371 = vmatprep.subr.bf16.mxu0 %v11234_v18  ;;  %v289_v5 = vpack.c.bf16 %v193_v0, %v193_v0  ;;  %v11275_v18 = vld [vmem:[#allocation5 + $0x14e8] sm:$0xff]   ;;  %v11301_v0 = vld [vmem:[#allocation5 + $0x15b8] sm:$0xff]  }
 0x2b9   :  { %10393 = vmatprep.subr.bf16.mxu1 %v11235_v20  ;;  %v11277_v20 = vld [vmem:[#allocation5 + $0x14a8] sm:$0xff]  }
 0x2ba   :  { %v10079_v61 = vpop.f32.mrf.mxu0  ;;  %7931 = vmatmul.mubr.bf16.vlgmr.msra.gmra.mxu0 %v283_v16  ;;  %v11273_v16 = vld [vmem:[#allocation5 + $0x14b0] sm:$0xff]  }
 0x2bb   :  { %v10101_v63 = vpop.f32.mrf.mxu1  ;;  %7971 = vmatmul.mubr.bf16.vlgmr.msra.gmra.mxu1 %v285_v17  ;;  %10372 = vmatpush3.bf16.msra.mxu0 %v11236_v23  ;;  %v11274_v17 = vld [vmem:[#allocation5 + $0x1468] sm:$0xff]   ;;  %v11280_v23 = vld [vmem:[#allocation5 + $0x1420] sm:$0xff]  }
 0x2bc   :  { %v10080_v1 = vpop.f32.mrf.mxu0  ;;  %10394 = vmatpush3.bf16.msra.mxu1 %v11237_v24  ;;  %10373 = vmatprep.subr.bf16.mxu0 %v11238_v25  ;;  %v11281_v24 = vld [vmem:[#allocation5 + $0x14a0] sm:$0xff]   ;;  %v11282_v25 = vld [vmem:[#allocation5 + $0x1458] sm:$0xff]  }
 0x2bd   :  { %v10081_v3 = vadd.f32 %v10080_v1, %v10079_v61  ;;  %v10102_v4 = vpop.f32.mrf.mxu1  ;;  %10395 = vmatprep.subr.bf16.mxu1 %v11239_v26  ;;  %v288_v61 = vpack.c.bf16 %v192_v58, %v192_v58  ;;  %v11283_v26 = vld [vmem:[#allocation5 + $0x14d8] sm:$0xff]  }
 0x2be   :  { %v10103_v8 = vadd.f32 %v10102_v4, %v10101_v63  ;;  %v10082_v9 = vpop.f32.mrf.mxu0  ;;  %v191_v63 = vld [vmem:[#allocation2 + $0x260] sm:$0xff]  ;;  %v11298_v58 = vld [vmem:[#allocation5 + $0x1578] sm:$0xff]  }
 0x2bf   :  { %v7453_v14 = vadd.f32 %v10081_v3, %v11717_v34  ;;  %v10104_v15 = vpop.f32.mrf.mxu1  ;;  %10374 = vmatpush3.bf16.msra.mxu0 %v11240_v27  ;;  %v11247_v34 = vld [vmem:[#allocation5 + $0x13e0] sm:$0xff]   ;;  %v290_v3 = vpack.c.bf16 %v194_v62, %v194_v62  ;;  %v287_v4 = vpack.c.bf16 %v191_v63, %v191_v63  ;;  %8010 = vmatprep.mubr.bf16.mxu0 %v288_v61  ;;  %v11284_v27 = vld [vmem:[#allocation5 + $0x1418] sm:$0xff]  }
 0x2c0   :  { %v10083_v19 = vpop.f32.mrf.mxu0  ;;  %10396 = vmatpush3.bf16.msra.mxu1 %v11241_v28  ;;  %10375 = vmatprep.subr.bf16.mxu0 %v11242_v29  ;;  %v11272_v15 = vld [vmem:[#allocation5 + $0x1430] sm:$0xff]   ;;  %v11285_v28 = vld [vmem:[#allocation5 + $0x1498] sm:$0xff]  }
 0x2c1   :  { %v11720_v21 = vadd.f32 %v10103_v8, %v7453_v14  ;;  %v10105_v22 = vpop.f32.mrf.mxu1  ;;  %10397 = vmatprep.subr.bf16.mxu1 %v11243_v30  ;;  %v11267_v8 = vld [vmem:[#allocation5 + $0x14f8] sm:$0xff]   ;;  %8050 = vmatprep.mubr.bf16.mxu1 %v290_v3  ;;  %v11271_v14 = vld [vmem:[#allocation5 + $0x14f0] sm:$0xff]   ;;  %v11276_v19 = vld [vmem:[#allocation5 + $0x1428] sm:$0xff]  }
 0x2c2   :  { %v11279_v22 = vld [vmem:[#allocation5 + $0x14e0] sm:$0xff]   ;;  %v11286_v29 = vld [vmem:[#allocation5 + $0x1450] sm:$0xff]   ;;  %v11299_v61 = vld [vmem:[#allocation5 + $0x15f8] sm:$0xff]  }
 0x2c3   :  { %10376 = vmatpush3.bf16.msra.mxu0 %v11244_v31  ;;  %v11287_v30 = vld [vmem:[#allocation5 + $0x14d0] sm:$0xff]   ;;  %v11300_v63 = vld [vmem:[#allocation5 + $0x1538] sm:$0xff]  }
 0x2c4   :  { %10398 = vmatpush3.bf16.msra.mxu1 %v11245_v32  ;;  %10377 = vmatprep.subr.bf16.mxu0 %v11246_v33  ;;  %v11288_v31 = vld [vmem:[#allocation5 + $0x1410] sm:$0xff]   ;;  %v11290_v33 = vld [vmem:[#allocation5 + $0x1448] sm:$0xff]  }
 0x2c5   :  { %10399 = vmatprep.subr.bf16.mxu1 %v11247_v34  ;;  %v11289_v32 = vld [vmem:[#allocation5 + $0x1490] sm:$0xff]   ;;  %v11291_v34 = vld [vmem:[#allocation5 + $0x14c8] sm:$0xff]  }
 0x2c6   :  { %v11304_v3 = vld [vmem:[#allocation5 + $0x1530] sm:$0xff]  }
 0x2c7   :  { %10378 = vmatpush3.bf16.msra.mxu0 %v11248_v35  ;;  %v11292_v35 = vld [vmem:[#allocation5 + $0x1408] sm:$0xff]  }
 0x2c8   :  { %10400 = vmatpush3.bf16.msra.mxu1 %v11249_v36  ;;  %10379 = vmatprep.subr.bf16.mxu0 %v11250_v37  ;;  %v11293_v36 = vld [vmem:[#allocation5 + $0x1488] sm:$0xff]   ;;  %v11294_v37 = vld [vmem:[#allocation5 + $0x1440] sm:$0xff]  }
 0x2c9   :  { %10401 = vmatprep.subr.bf16.mxu1 %v11251_v38 }
 0x2cb   :  { %10380 = vmatpush3.bf16.msra.mxu0 %v11252_v39 }
 0x2cc   :  { %10402 = vmatpush3.bf16.msra.mxu1 %v11253_v40  ;;  %10381 = vmatprep.subr.bf16.mxu0 %v11254_v41  ;;  %v11295_v40 = vld [vmem:[#allocation5 + $0x14c0] sm:$0xff]  }
 0x2cd   :  { %10403 = vmatprep.subr.bf16.mxu1 %v11255_v42  ;;  %v11296_v41 = vld [vmem:[#allocation5 + $0x1400] sm:$0xff]  }
 0x2cf   :  { %10382 = vmatpush3.bf16.msra.mxu0 %v11256_v43 }
 0x2d0   :  { %10404 = vmatpush3.bf16.msra.mxu1 %v11257_v44  ;;  %10383 = vmatprep.subr.bf16.mxu0 %v11258_v45  ;;  %v11297_v44 = vld [vmem:[#allocation5 + $0x1480] sm:$0xff]  }
 0x2d1   :  { %10405 = vmatprep.subr.bf16.mxu1 %v11259_v46 }
 0x2d3   :  { %10384 = vmatpush3.bf16.msra.mxu0 %v11260_v47  ;;  %v196_v47 = vld [vmem:[#allocation2 + $0x288] sm:$0xff] }
 0x2d4   :  { %10406 = vmatpush3.bf16.msra.mxu1 %v11261_v48  ;;  %10385 = vmatprep.subr.bf16.mxu0 %v11262_v50  ;;  %v198_v48 = vld [vmem:[#allocation2 + $0x298] sm:$0xff] }
 0x2d5   :  { %10407 = vmatprep.subr.bf16.mxu1 %v11263_v52  ;;  %v292_v52 = vpack.c.bf16 %v196_v47, %v196_v47 }
 0x2d7   :  { %10386 = vmatpush3.bf16.msra.mxu0 %v11264_v54 }
 0x2d8   :  { %10408 = vmatpush3.bf16.msra.mxu1 %v11265_v57  ;;  %10415 = vmatprep.subr.bf16.mxu0 %v11266_v6  ;;  %v11307_v6 = vld [vmem:[#allocation5 + $0x15e8] sm:$0xff]  }
 0x2d9   :  { %10437 = vmatprep.subr.bf16.mxu1 %v11267_v8  ;;  %v11309_v8 = vld [vmem:[#allocation5 + $0x15a8] sm:$0xff]  }
 0x2da   :  { %v10123_v49 = vpop.f32.mrf.mxu0  ;;  %8011 = vmatmul.mubr.bf16.vlgmr.msra.gmra.mxu0 %v287_v4  ;;  %v11305_v4 = vld [vmem:[#allocation5 + $0x15b0] sm:$0xff]  }
 0x2db   :  { %v10145_v51 = vpop.f32.mrf.mxu1  ;;  %8051 = vmatmul.mubr.bf16.vlgmr.msra.gmra.mxu1 %v289_v5  ;;  %10416 = vmatpush3.bf16.msra.mxu0 %v11268_v11  ;;  %v11306_v5 = vld [vmem:[#allocation5 + $0x1568] sm:$0xff]   ;;  %v11312_v11 = vld [vmem:[#allocation5 + $0x1520] sm:$0xff]  }
 0x2dc   :  { %v10124_v53 = vpop.f32.mrf.mxu0  ;;  %10438 = vmatpush3.bf16.msra.mxu1 %v11269_v12  ;;  %10417 = vmatprep.subr.bf16.mxu0 %v11270_v13  ;;  %v11313_v12 = vld [vmem:[#allocation5 + $0x15a0] sm:$0xff]   ;;  %v11314_v13 = vld [vmem:[#allocation5 + $0x1558] sm:$0xff]  }
 0x2dd   :  { %v10125_v55 = vadd.f32 %v10124_v53, %v10123_v49  ;;  %v10146_v56 = vpop.f32.mrf.mxu1  ;;  %10439 = vmatprep.subr.bf16.mxu1 %v11271_v14  ;;  %v195_v49 = vld [vmem:[#allocation2 + $0x280] sm:$0xff]  ;;  %v294_v53 = vpack.c.bf16 %v198_v48, %v198_v48  ;;  %8090 = vmatprep.mubr.bf16.mxu0 %v292_v52  ;;  %v11315_v14 = vld [vmem:[#allocation5 + $0x15d8] sm:$0xff]  }
 0x2de   :  { %v10147_v59 = vadd.f32 %v10146_v56, %v10145_v51  ;;  %v10126_v60 = vpop.f32.mrf.mxu0  ;;  %v291_v54 = vpack.c.bf16 %v195_v49, %v195_v49  ;;  %v11331_v48 = vld [vmem:[#allocation5 + $0x16f8] sm:$0xff]  }
 0x2df   :  { %v7533_v1 = vadd.f32 %v10125_v55, %v11720_v21  ;;  %v10148_v2 = vpop.f32.mrf.mxu1  ;;  %10418 = vmatpush3.bf16.msra.mxu0 %v11272_v15  ;;  %v11278_v21 = vld [vmem:[#allocation5 + $0x1460] sm:$0xff]   ;;  %v197_v55 = vld [vmem:[#allocation2 + $0x290] sm:$0xff]  ;;  %8130 = vmatprep.mubr.bf16.mxu1 %v294_v53  ;;  %v11316_v15 = vld [vmem:[#allocation5 + $0x1518] sm:$0xff]  }
 0x2e0   :  { %v10127_v7 = vpop.f32.mrf.mxu0  ;;  %10440 = vmatpush3.bf16.msra.mxu1 %v11273_v16  ;;  %10419 = vmatprep.subr.bf16.mxu0 %v11274_v17  ;;  %v293_v57 = vpack.c.bf16 %v197_v55, %v197_v55  ;;  %v11303_v2 = vld [vmem:[#allocation5 + $0x15f0] sm:$0xff]   ;;  %v11317_v16 = vld [vmem:[#allocation5 + $0x1598] sm:$0xff]  }
 0x2e1   :  { %v11723_v9 = vadd.f32 %v10147_v59, %v7533_v1  ;;  %v10149_v10 = vpop.f32.mrf.mxu1  ;;  %10441 = vmatprep.subr.bf16.mxu1 %v11275_v18  ;;  %v11302_v1 = vld [vmem:[#allocation5 + $0x1570] sm:$0xff]   ;;  %v11308_v7 = vld [vmem:[#allocation5 + $0x1528] sm:$0xff]   ;;  %v11333_v52 = vld [vmem:[#allocation5 + $0x16b8] sm:$0xff]  }
 0x2e2   :  { %v11311_v10 = vld [vmem:[#allocation5 + $0x15e0] sm:$0xff]   ;;  %v11318_v17 = vld [vmem:[#allocation5 + $0x1550] sm:$0xff]  }
 0x2e3   :  { %10420 = vmatpush3.bf16.msra.mxu0 %v11276_v19  ;;  %v11319_v18 = vld [vmem:[#allocation5 + $0x15d0] sm:$0xff]  }
 0x2e4   :  { %10442 = vmatpush3.bf16.msra.mxu1 %v11277_v20  ;;  %10421 = vmatprep.subr.bf16.mxu0 %v11278_v21  ;;  %v11320_v19 = vld [vmem:[#allocation5 + $0x1510] sm:$0xff]   ;;  %v11322_v21 = vld [vmem:[#allocation5 + $0x1548] sm:$0xff]  }
 0x2e5   :  { %10443 = vmatprep.subr.bf16.mxu1 %v11279_v22  ;;  %v11321_v20 = vld [vmem:[#allocation5 + $0x1590] sm:$0xff]   ;;  %v11323_v22 = vld [vmem:[#allocation5 + $0x15c8] sm:$0xff]  }
 0x2e6   :  { %v11334_v53 = vld [vmem:[#allocation5 + $0x1670] sm:$0xff]  }
 0x2e7   :  { %10422 = vmatpush3.bf16.msra.mxu0 %v11280_v23  ;;  %v11324_v23 = vld [vmem:[#allocation5 + $0x1508] sm:$0xff]   ;;  %v11336_v55 = vld [vmem:[#allocation5 + $0x1630] sm:$0xff]  }
 0x2e8   :  { %10444 = vmatpush3.bf16.msra.mxu1 %v11281_v24  ;;  %10423 = vmatprep.subr.bf16.mxu0 %v11282_v25  ;;  %v11325_v24 = vld [vmem:[#allocation5 + $0x1588] sm:$0xff]  }
 0x2e9   :  { %10445 = vmatprep.subr.bf16.mxu1 %v11283_v26  ;;  %v11326_v26 = vld [vmem:[#allocation5 + $0x1540] sm:$0xff]  }
 0x2eb   :  { %10424 = vmatpush3.bf16.msra.mxu0 %v11284_v27 }
 0x2ec   :  { %10446 = vmatpush3.bf16.msra.mxu1 %v11285_v28  ;;  %10425 = vmatprep.subr.bf16.mxu0 %v11286_v29  ;;  %v11327_v28 = vld [vmem:[#allocation5 + $0x15c0] sm:$0xff]  }
 0x2ed   :  { %10447 = vmatprep.subr.bf16.mxu1 %v11287_v30  ;;  %v11328_v30 = vld [vmem:[#allocation5 + $0x1500] sm:$0xff]  }
 0x2ef   :  { %10426 = vmatpush3.bf16.msra.mxu0 %v11288_v31 }
 0x2f0   :  { %10448 = vmatpush3.bf16.msra.mxu1 %v11289_v32  ;;  %10427 = vmatprep.subr.bf16.mxu0 %v11290_v33  ;;  %v11329_v33 = vld [vmem:[#allocation5 + $0x1580] sm:$0xff]  }
 0x2f1   :  { %10449 = vmatprep.subr.bf16.mxu1 %v11291_v34  ;;  %v200_v34 = vld [vmem:[#allocation2 + $0x2a8] sm:$0xff] }
 0x2f3   :  { %10428 = vmatpush3.bf16.msra.mxu0 %v11292_v35  ;;  %v202_v35 = vld [vmem:[#allocation2 + $0x2b8] sm:$0xff] }
 0x2f4   :  { %10450 = vmatpush3.bf16.msra.mxu1 %v11293_v36  ;;  %10429 = vmatprep.subr.bf16.mxu0 %v11294_v37 }
 0x2f5   :  { %10451 = vmatprep.subr.bf16.mxu1 %v11295_v40  ;;  %v199_v40 = vld [vmem:[#allocation2 + $0x2a0] sm:$0xff] }
 0x2f7   :  { %10430 = vmatpush3.bf16.msra.mxu0 %v11296_v41  ;;  %v201_v41 = vld [vmem:[#allocation2 + $0x2b0] sm:$0xff] }
 0x2f8   :  { %10452 = vmatpush3.bf16.msra.mxu1 %v11297_v44  ;;  %10459 = vmatprep.subr.bf16.mxu0 %v11298_v58  ;;  %v295_v44 = vpack.c.bf16 %v199_v40, %v199_v40  ;;  %v11339_v58 = vld [vmem:[#allocation5 + $0x16e8] sm:$0xff]   ;;  %v11365_v40 = vld [vmem:[#allocation5 + $0x17b8] sm:$0xff]  }
 0x2f9   :  { %10481 = vmatprep.subr.bf16.mxu1 %v11299_v61  ;;  %v11342_v61 = vld [vmem:[#allocation5 + $0x1660] sm:$0xff]  }
 0x2fa   :  { %v10167_v38 = vpop.f32.mrf.mxu0  ;;  %8091 = vmatmul.mubr.bf16.vlgmr.msra.gmra.mxu0 %v291_v54  ;;  %v11335_v54 = vld [vmem:[#allocation5 + $0x16f0] sm:$0xff]  }
 0x2fb   :  { %v10189_v39 = vpop.f32.mrf.mxu1  ;;  %8131 = vmatmul.mubr.bf16.vlgmr.msra.gmra.mxu1 %v293_v57  ;;  %10460 = vmatpush3.bf16.msra.mxu0 %v11300_v63  ;;  %v11338_v57 = vld [vmem:[#allocation5 + $0x1668] sm:$0xff]   ;;  %v11344_v63 = vld [vmem:[#allocation5 + $0x1620] sm:$0xff]  }
 0x2fc   :  { %v10168_v42 = vpop.f32.mrf.mxu0  ;;  %10482 = vmatpush3.bf16.msra.mxu1 %v11301_v0  ;;  %10461 = vmatprep.subr.bf16.mxu0 %v11302_v1  ;;  %v11345_v0 = vld [vmem:[#allocation5 + $0x16a0] sm:$0xff]   ;;  %v11346_v1 = vld [vmem:[#allocation5 + $0x1658] sm:$0xff]  }
 0x2fd   :  { %v10190_v43 = vpop.f32.mrf.mxu1  ;;  %v10169_v45 = vadd.f32 %v10168_v42, %v10167_v38  ;;  %10483 = vmatprep.subr.bf16.mxu1 %v11303_v2  ;;  %v296_v38 = vpack.c.bf16 %v200_v34, %v200_v34  ;;  %v11347_v2 = vld [vmem:[#allocation5 + $0x16d8] sm:$0xff]  }
 0x2fe   :  { %v10191_v46 = vadd.f32 %v10190_v43, %v10189_v39  ;;  %v10170_v50 = vpop.f32.mrf.mxu0  ;;  %v298_v39 = vpack.c.bf16 %v202_v35, %v202_v35  ;;  %v11362_v34 = vld [vmem:[#allocation5 + $0x1778] sm:$0xff]  }
 0x2ff   :  { %v10192_v51 = vpop.f32.mrf.mxu1  ;;  %v7613_v56 = vadd.f32 %v10169_v45, %v11723_v9  ;;  %10462 = vmatpush3.bf16.msra.mxu0 %v11304_v3  ;;  %v11310_v9 = vld [vmem:[#allocation5 + $0x1560] sm:$0xff]   ;;  %v297_v45 = vpack.c.bf16 %v201_v41, %v201_v41  ;;  %8170 = vmatprep.mubr.bf16.mxu0 %v296_v38  ;;  %v11348_v3 = vld [vmem:[#allocation5 + $0x1618] sm:$0xff]   ;;  %v11366_v41 = vld [vmem:[#allocation5 + $0x1770] sm:$0xff]  }
 0x300   :  { %v10171_v59 = vpop.f32.mrf.mxu0  ;;  %10484 = vmatpush3.bf16.msra.mxu1 %v11305_v4  ;;  %10463 = vmatprep.subr.bf16.mxu0 %v11306_v5  ;;  %v11332_v51 = vld [vmem:[#allocation5 + $0x1638] sm:$0xff]   ;;  %v11350_v5 = vld [vmem:[#allocation5 + $0x1650] sm:$0xff]  }
 0x301   :  { %v10193_v60 = vpop.f32.mrf.mxu1  ;;  %v11726_v62 = vadd.f32 %v10191_v46, %v7613_v56  ;;  %10485 = vmatprep.subr.bf16.mxu1 %v11307_v6  ;;  %v11330_v46 = vld [vmem:[#allocation5 + $0x1678] sm:$0xff]   ;;  %8210 = vmatprep.mubr.bf16.mxu1 %v298_v39  ;;  %v11337_v56 = vld [vmem:[#allocation5 + $0x16b0] sm:$0xff]   ;;  %v11340_v59 = vld [vmem:[#allocation5 + $0x1628] sm:$0xff]  }
 0x302   :  { %v11341_v60 = vld [vmem:[#allocation5 + $0x16a8] sm:$0xff]   ;;  %v11349_v4 = vld [vmem:[#allocation5 + $0x1698] sm:$0xff]   ;;  %v11351_v6 = vld [vmem:[#allocation5 + $0x16d0] sm:$0xff]  }
 0x303   :  { %10464 = vmatpush3.bf16.msra.mxu0 %v11308_v7  ;;  %v11352_v7 = vld [vmem:[#allocation5 + $0x1610] sm:$0xff]   ;;  %v11364_v39 = vld [vmem:[#allocation5 + $0x1738] sm:$0xff]  }
 0x304   :  { %10486 = vmatpush3.bf16.msra.mxu1 %v11309_v8  ;;  %10465 = vmatprep.subr.bf16.mxu0 %v11310_v9  ;;  %v11353_v8 = vld [vmem:[#allocation5 + $0x1690] sm:$0xff]   ;;  %v11354_v9 = vld [vmem:[#allocation5 + $0x1648] sm:$0xff]  }
 0x305   :  { %10487 = vmatprep.subr.bf16.mxu1 %v11311_v10  ;;  %v11355_v10 = vld [vmem:[#allocation5 + $0x16c8] sm:$0xff]  }
 0x307   :  { %10466 = vmatpush3.bf16.msra.mxu0 %v11312_v11  ;;  %v11356_v11 = vld [vmem:[#allocation5 + $0x1608] sm:$0xff]  }
 0x308   :  { %10488 = vmatpush3.bf16.msra.mxu1 %v11313_v12  ;;  %10467 = vmatprep.subr.bf16.mxu0 %v11314_v13  ;;  %v11357_v12 = vld [vmem:[#allocation5 + $0x1688] sm:$0xff]  }
 0x309   :  { %10489 = vmatprep.subr.bf16.mxu1 %v11315_v14  ;;  %v11358_v14 = vld [vmem:[#allocation5 + $0x1640] sm:$0xff]  }
 0x30b   :  { %10468 = vmatpush3.bf16.msra.mxu0 %v11316_v15 }
 0x30c   :  { %10490 = vmatpush3.bf16.msra.mxu1 %v11317_v16  ;;  %10469 = vmatprep.subr.bf16.mxu0 %v11318_v17  ;;  %v11359_v16 = vld [vmem:[#allocation5 + $0x16c0] sm:$0xff]  }
 0x30d   :  { %10491 = vmatprep.subr.bf16.mxu1 %v11319_v18  ;;  %v11360_v18 = vld [vmem:[#allocation5 + $0x1600] sm:$0xff]  }
 0x30f   :  { %10470 = vmatpush3.bf16.msra.mxu0 %v11320_v19 }
 0x310   :  { %10492 = vmatpush3.bf16.msra.mxu1 %v11321_v20  ;;  %10471 = vmatprep.subr.bf16.mxu0 %v11322_v21  ;;  %v11361_v21 = vld [vmem:[#allocation5 + $0x1680] sm:$0xff]  }
 0x311   :  { %10493 = vmatprep.subr.bf16.mxu1 %v11323_v22  ;;  %v204_v22 = vld [vmem:[#allocation2 + $0x2c8] sm:$0xff] }
 0x313   :  { %10472 = vmatpush3.bf16.msra.mxu0 %v11324_v23 }
 0x314   :  { %10494 = vmatpush3.bf16.msra.mxu1 %v11325_v24  ;;  %10473 = vmatprep.subr.bf16.mxu0 %v11326_v26  ;;  %v206_v26 = vld [vmem:[#allocation2 + $0x2d8] sm:$0xff] }
 0x315   :  { %10495 = vmatprep.subr.bf16.mxu1 %v11327_v28  ;;  %v205_v28 = vld [vmem:[#allocation2 + $0x2d0] sm:$0xff] }
 0x317   :  { %10474 = vmatpush3.bf16.msra.mxu0 %v11328_v30 }
 0x318   :  { %10496 = vmatpush3.bf16.msra.mxu1 %v11329_v33  ;;  %10503 = vmatprep.subr.bf16.mxu0 %v11330_v46  ;;  %v301_v33 = vpack.c.bf16 %v205_v28, %v205_v28  ;;  %v11371_v46 = vld [vmem:[#allocation5 + $0x17e8] sm:$0xff]  }
 0x319   :  { %10525 = vmatprep.subr.bf16.mxu1 %v11331_v48  ;;  %v11373_v48 = vld [vmem:[#allocation5 + $0x17a8] sm:$0xff]  }
 0x31a   :  { %v10211_v25 = vpop.f32.mrf.mxu0  ;;  %8171 = vmatmul.mubr.bf16.vlgmr.msra.gmra.mxu0 %v295_v44  ;;  %v11369_v44 = vld [vmem:[#allocation5 + $0x17b0] sm:$0xff]  }
 0x31b   :  { %v10233_v27 = vpop.f32.mrf.mxu1  ;;  %8211 = vmatmul.mubr.bf16.vlgmr.msra.gmra.mxu1 %v297_v45  ;;  %10504 = vmatpush3.bf16.msra.mxu0 %v11332_v51  ;;  %v11370_v45 = vld [vmem:[#allocation5 + $0x1768] sm:$0xff]   ;;  %v11376_v51 = vld [vmem:[#allocation5 + $0x1720] sm:$0xff]  }
 0x31c   :  { %v10212_v29 = vpop.f32.mrf.mxu0  ;;  %10526 = vmatpush3.bf16.msra.mxu1 %v11333_v52  ;;  %10505 = vmatprep.subr.bf16.mxu0 %v11334_v53  ;;  %v11377_v52 = vld [vmem:[#allocation5 + $0x17a0] sm:$0xff]   ;;  %v11378_v53 = vld [vmem:[#allocation5 + $0x1758] sm:$0xff]  }
 0x31d   :  { %v10213_v31 = vadd.f32 %v10212_v29, %v10211_v25  ;;  %v10234_v32 = vpop.f32.mrf.mxu1  ;;  %10527 = vmatprep.subr.bf16.mxu1 %v11335_v54  ;;  %v300_v25 = vpack.c.bf16 %v204_v22, %v204_v22  ;;  %v11379_v54 = vld [vmem:[#allocation5 + $0x17d8] sm:$0xff]  }
 0x31e   :  { %v10235_v36 = vadd.f32 %v10234_v32, %v10233_v27  ;;  %v10214_v37 = vpop.f32.mrf.mxu0  ;;  %v203_v27 = vld [vmem:[#allocation2 + $0x2c0] sm:$0xff] }
 0x31f   :  { %v7693_v42 = vadd.f32 %v10213_v31, %v11726_v62  ;;  %v10236_v43 = vpop.f32.mrf.mxu1  ;;  %10506 = vmatpush3.bf16.msra.mxu0 %v11336_v55  ;;  %v11343_v62 = vld [vmem:[#allocation5 + $0x16e0] sm:$0xff]   ;;  %v302_v31 = vpack.c.bf16 %v206_v26, %v206_v26  ;;  %v299_v32 = vpack.c.bf16 %v203_v27, %v203_v27  ;;  %8250 = vmatprep.mubr.bf16.mxu0 %v300_v25  ;;  %v11380_v55 = vld [vmem:[#allocation5 + $0x1718] sm:$0xff]  }
 0x320   :  { %v10215_v47 = vpop.f32.mrf.mxu0  ;;  %10528 = vmatpush3.bf16.msra.mxu1 %v11337_v56  ;;  %10507 = vmatprep.subr.bf16.mxu0 %v11338_v57  ;;  %v11368_v43 = vld [vmem:[#allocation5 + $0x1730] sm:$0xff]   ;;  %v11381_v56 = vld [vmem:[#allocation5 + $0x1798] sm:$0xff]  }
 0x321   :  { %v11729_v49 = vadd.f32 %v10235_v36, %v7693_v42  ;;  %v10237_v50 = vpop.f32.mrf.mxu1  ;;  %10529 = vmatprep.subr.bf16.mxu1 %v11339_v58  ;;  %v11363_v36 = vld [vmem:[#allocation5 + $0x17f8] sm:$0xff]   ;;  %8290 = vmatprep.mubr.bf16.mxu1 %v302_v31  ;;  %v11367_v42 = vld [vmem:[#allocation5 + $0x17f0] sm:$0xff]   ;;  %v11372_v47 = vld [vmem:[#allocation5 + $0x1728] sm:$0xff]  }
 0x322   :  { %v11375_v50 = vld [vmem:[#allocation5 + $0x17e0] sm:$0xff]   ;;  %v11382_v57 = vld [vmem:[#allocation5 + $0x1750] sm:$0xff]  }
 0x323   :  { %10508 = vmatpush3.bf16.msra.mxu0 %v11340_v59  ;;  %v11383_v58 = vld [vmem:[#allocation5 + $0x17d0] sm:$0xff]  }
 0x324   :  { %10530 = vmatpush3.bf16.msra.mxu1 %v11341_v60  ;;  %10509 = vmatprep.subr.bf16.mxu0 %v11342_v61  ;;  %v11384_v59 = vld [vmem:[#allocation5 + $0x1710] sm:$0xff]   ;;  %v11386_v61 = vld [vmem:[#allocation5 + $0x1748] sm:$0xff]  }
 0x325   :  { %10531 = vmatprep.subr.bf16.mxu1 %v11343_v62  ;;  %v11385_v60 = vld [vmem:[#allocation5 + $0x1790] sm:$0xff]   ;;  %v11387_v62 = vld [vmem:[#allocation5 + $0x17c8] sm:$0xff]  }
 0x327   :  { %10510 = vmatpush3.bf16.msra.mxu0 %v11344_v63  ;;  %v11388_v63 = vld [vmem:[#allocation5 + $0x1708] sm:$0xff]  }
 0x328   :  { %10532 = vmatpush3.bf16.msra.mxu1 %v11345_v0  ;;  %10511 = vmatprep.subr.bf16.mxu0 %v11346_v1  ;;  %v11389_v0 = vld [vmem:[#allocation5 + $0x1788] sm:$0xff]   ;;  %v11390_v1 = vld [vmem:[#allocation5 + $0x1740] sm:$0xff]  }
 0x329   :  { %10533 = vmatprep.subr.bf16.mxu1 %v11347_v2 }
 0x32b   :  { %10512 = vmatpush3.bf16.msra.mxu0 %v11348_v3 }
 0x32c   :  { %10534 = vmatpush3.bf16.msra.mxu1 %v11349_v4  ;;  %10513 = vmatprep.subr.bf16.mxu0 %v11350_v5  ;;  %v11391_v4 = vld [vmem:[#allocation5 + $0x17c0] sm:$0xff]  }
 0x32d   :  { %10535 = vmatprep.subr.bf16.mxu1 %v11351_v6  ;;  %v11392_v5 = vld [vmem:[#allocation5 + $0x1700] sm:$0xff]  }
 0x32f   :  { %10514 = vmatpush3.bf16.msra.mxu0 %v11352_v7 }
 0x330   :  { %10536 = vmatpush3.bf16.msra.mxu1 %v11353_v8  ;;  %10515 = vmatprep.subr.bf16.mxu0 %v11354_v9  ;;  %v11393_v8 = vld [vmem:[#allocation5 + $0x1780] sm:$0xff]  }
 0x331   :  { %10537 = vmatprep.subr.bf16.mxu1 %v11355_v10 }
 0x333   :  { %10516 = vmatpush3.bf16.msra.mxu0 %v11356_v11  ;;  %v208_v11 = vld [vmem:[#allocation2 + $0x2e8] sm:$0xff] }
 0x334   :  { %10538 = vmatpush3.bf16.msra.mxu1 %v11357_v12  ;;  %10517 = vmatprep.subr.bf16.mxu0 %v11358_v14  ;;  %v210_v12 = vld [vmem:[#allocation2 + $0x2f8] sm:$0xff] }
 0x335   :  { %10539 = vmatprep.subr.bf16.mxu1 %v11359_v16  ;;  %v304_v16 = vpack.c.bf16 %v208_v11, %v208_v11 }
 0x337   :  { %10518 = vmatpush3.bf16.msra.mxu0 %v11360_v18 }
 0x338   :  { %10540 = vmatpush3.bf16.msra.mxu1 %v11361_v21  ;;  %10547 = vmatprep.subr.bf16.mxu0 %v11362_v34 }
 0x339   :  { %10569 = vmatprep.subr.bf16.mxu1 %v11363_v36 }
 0x33a   :  { %v10255_v13 = vpop.f32.mrf.mxu0  ;;  %8251 = vmatmul.mubr.bf16.vlgmr.msra.gmra.mxu0 %v299_v32 }
 0x33b   :  { %v10277_v15 = vpop.f32.mrf.mxu1  ;;  %8291 = vmatmul.mubr.bf16.vlgmr.msra.gmra.mxu1 %v301_v33  ;;  %10548 = vmatpush3.bf16.msra.mxu0 %v11364_v39  ;;  %v11399_v39 = vld [vmem:[#allocation8 + $0x64] ss:$8 sps:$4 sm:$0xff]  }
 0x33c   :  { %v10256_v17 = vpop.f32.mrf.mxu0  ;;  %10570 = vmatpush3.bf16.msra.mxu1 %v11365_v40  ;;  %10549 = vmatprep.subr.bf16.mxu0 %v11366_v41  ;;  %v11397_v40 = vld [vmem:[#allocation8 + $0x60] ss:$8 sps:$4 sm:$0xff]   ;;  %v11402_v41 = vld [vmem:[#allocation8 + $0x54] ss:$8 sps:$4 sm:$0xff]  }
 0x33d   :  { %v10257_v19 = vadd.f32 %v10256_v17, %v10255_v13  ;;  %v10278_v20 = vpop.f32.mrf.mxu1  ;;  %10571 = vmatprep.subr.bf16.mxu1 %v11367_v42  ;;  %v207_v13 = vld [vmem:[#allocation2 + $0x2e0] sm:$0xff]  ;;  %v306_v17 = vpack.c.bf16 %v210_v12, %v210_v12  ;;  %8330 = vmatprep.mubr.bf16.mxu0 %v304_v16  ;;  %v11400_v42 = vld [vmem:[#allocation8 + $0x50] ss:$8 sps:$4 sm:$0xff]  }
 0x33e   :  { %v10279_v23 = vadd.f32 %v10278_v20, %v10277_v15  ;;  %v10258_v24 = vpop.f32.mrf.mxu0  ;;  %v303_v18 = vpack.c.bf16 %v207_v13, %v207_v13  ;;  %v11427_v13 = vld [vmem:[#allocation11 + $0x18] sm:$0xff]   ;;  %v11428_v16 = vld [vmem:[#allocation11 + $0x50] sm:$0xff]  }
 0x33f   :  { %v7773_v29 = vadd.f32 %v10257_v19, %v11729_v49  ;;  %v10280_v30 = vpop.f32.mrf.mxu1  ;;  %10550 = vmatpush3.bf16.msra.mxu0 %v11368_v43  ;;  %v11374_v49 = vld [vmem:[#allocation5 + $0x1760] sm:$0xff]   ;;  %v209_v19 = vld [vmem:[#allocation2 + $0x2f0] sm:$0xff]  ;;  %8370 = vmatprep.mubr.bf16.mxu1 %v306_v17 }
 0x340   :  { %v10259_v35 = vpop.f32.mrf.mxu0  ;;  %10572 = vmatpush3.bf16.msra.mxu1 %v11369_v44  ;;  %10551 = vmatprep.subr.bf16.mxu0 %v11370_v45  ;;  %v305_v21 = vpack.c.bf16 %v209_v19, %v209_v19  ;;  %v11405_v43 = vld [vmem:[#allocation8 + $0x44] ss:$8 sps:$4 sm:$0xff]   ;;  %v11403_v44 = vld [vmem:[#allocation8 + $0x40] ss:$8 sps:$4 sm:$0xff]   ;;  %v11408_v45 = vld [vmem:[#allocation8 + $0x34] ss:$8 sps:$4 sm:$0xff]  }
 0x341   :  { %v11732_v37 = vadd.f32 %v10279_v23, %v7773_v29  ;;  %v10281_v38 = vpop.f32.mrf.mxu1  ;;  %10573 = vmatprep.subr.bf16.mxu1 %v11371_v46  ;;  %v11406_v46 = vld [vmem:[#allocation8 + $0x30] ss:$8 sps:$4 sm:$0xff]  }
 0x342   :  { %v11396_v38 = vld [vmem:[#allocation8 + $0x74] ss:$8 sps:$4 sm:$0xff]  }
 0x343   :  { %10552 = vmatpush3.bf16.msra.mxu0 %v11372_v47 }
 0x344   :  { %10574 = vmatpush3.bf16.msra.mxu1 %v11373_v48  ;;  %10553 = vmatprep.subr.bf16.mxu0 %v11374_v49 }
 0x345   :  { %10575 = vmatprep.subr.bf16.mxu1 %v11375_v50 }
 0x347   :  { %10554 = vmatpush3.bf16.msra.mxu0 %v11376_v51 }
 0x348   :  { %10576 = vmatpush3.bf16.msra.mxu1 %v11377_v52  ;;  %10555 = vmatprep.subr.bf16.mxu0 %v11378_v53 }
 0x349   :  { %10577 = vmatprep.subr.bf16.mxu1 %v11379_v54 }
 0x34b   :  { %10556 = vmatpush3.bf16.msra.mxu0 %v11380_v55 }
 0x34c   :  { %10578 = vmatpush3.bf16.msra.mxu1 %v11381_v56  ;;  %10557 = vmatprep.subr.bf16.mxu0 %v11382_v57  ;;  %v11411_v57 = vld [vmem:[#allocation8 + $0x24] ss:$8 sps:$4 sm:$0xff]  }
 0x34d   :  { %10579 = vmatprep.subr.bf16.mxu1 %v11383_v58 }
 0x34f   :  { %10558 = vmatpush3.bf16.msra.mxu0 %v11384_v59 }
 0x350   :  { %10580 = vmatpush3.bf16.msra.mxu1 %v11385_v60  ;;  %10559 = vmatprep.subr.bf16.mxu0 %v11386_v61  ;;  %v11409_v60 = vld [vmem:[#allocation8 + $0x20] ss:$8 sps:$4 sm:$0xff]   ;;  %v11414_v61 = vld [vmem:[#allocation8 + $0x14] ss:$8 sps:$4 sm:$0xff]  }
 0x351   :  { %10581 = vmatprep.subr.bf16.mxu1 %v11387_v62  ;;  %v11412_v62 = vld [vmem:[#allocation8 + $0x10] ss:$8 sps:$4 sm:$0xff]  }
 0x353   :  { %10560 = vmatpush3.bf16.msra.mxu0 %v11388_v63  ;;  %v11417_v63 = vld [vmem:[#allocation8 + $0x4] ss:$8 sps:$4 sm:$0xff]  }
 0x354   :  { %10582 = vmatpush3.bf16.msra.mxu1 %v11389_v0  ;;  %10561 = vmatprep.subr.bf16.mxu0 %v11390_v1  ;;  %v11415_v0 = vld [vmem:[#allocation8] ss:$8 sps:$4 sm:$0xff]   ;;  %v11615_v1 = vmov 0  }
 0x355   :  { %10583 = vmatprep.subr.bf16.mxu1 %v11391_v4  ;;  %v11420_v4 = vld [vmem:[#allocation11 + $0x70] sm:$0xff]  }
 0x357   :  { %10562 = vmatpush3.bf16.msra.mxu0 %v11392_v5  ;;  %v11421_v5 = vld [vmem:[#allocation11 + $0x30] sm:$0xff]  }
 0x358   :  { %10584 = vmatpush3.bf16.msra.mxu1 %v11393_v8  ;;  %8490 = vmatprep.subr.bf16.mxu0 %v11396_v38  ;;  %v11424_v8 = vld [vmem:[#allocation11 + $0x60] sm:$0xff]  }
 0x35a   :  { %v10299_v2 = vpop.f32.mrf.mxu0  ;;  %8331 = vmatmul.mubr.bf16.vlgmr.msra.gmra.mxu0 %v303_v18 }
 0x35b   :  { %v10321_v3 = vpop.f32.mrf.mxu1  ;;  %8371 = vmatmul.mubr.bf16.vlgmr.msra.gmra.mxu1 %v305_v21  ;;  %8522 = vmatprep.mubr.bf16.mxu0 %v11615_v1  ;;  %v11430_v1 = vld [vmem:[#allocation11 + $0x48] sm:$0xff]  }
 0x35c   :  { %v10300_v6 = vpop.f32.mrf.mxu0 }
 0x35d   :  { %v10322_v7 = vpop.f32.mrf.mxu1  ;;  %v10301_v9 = vadd.f32 %v10300_v6, %v10299_v2  ;;  %v11418_v2 = vld [vmem:[#allocation11 + $0x78] sm:$0xff]   ;;  %v11422_v6 = vld [vmem:[#allocation11 + $0x68] sm:$0xff]  }
 0x35e   :  { %v10323_v10 = vadd.f32 %v10322_v7, %v10321_v3  ;;  %v10302_v14 = vpop.f32.mrf.mxu0  ;;  %v11419_v3 = vld [vmem:[#allocation11 + $0x38] sm:$0xff]   ;;  %10591 = vmatprep.subr.bf16.mxu1 %v11418_v2  ;;  %v11423_v7 = vld [vmem:[#allocation11 + $0x28] sm:$0xff]  }
 0x35f   :  { %v10324_v15 = vpop.f32.mrf.mxu1  ;;  %v7853_v20 = vadd.f32 %v10301_v9, %v11732_v37  ;;  %v11394_v37 = vld [vmem:[#allocation8 + $0x70] ss:$8 sps:$4 sm:$0xff]   ;;  %10592 = vmatpush3.bf16.msra.mxu1 %v11419_v3  ;;  %v11425_v9 = vld [vmem:[#allocation11 + $0x20] sm:$0xff]  }
 0x360   :  { %v10303_v22 = vpop.f32.mrf.mxu0  ;;  %8491 = vmatpush1.bf16.msra.mxu0 %v11394_v37  ;;  %10593 = vmatprep.subr.bf16.mxu1 %v11420_v4  ;;  %v11431_v2 = vld [vmem:[#allocation11 + $0x8] sm:$0xff]   ;;  %v11432_v3 = vld [vmem:[#allocation11 + $0x40] sm:$0xff]  }
 0x361   :  { %v10325_v23 = vpop.f32.mrf.mxu1  ;;  %v7893_v24 = vadd.f32 %v10323_v10, %v7853_v20  ;;  %8492 = vmatprep.subr.bf16.mxu0 %v11399_v39  ;;  %v11426_v10 = vld [vmem:[#allocation11 + $0x58] sm:$0xff]   ;;  %v11433_v4 = vld [vmem:[#allocation11] sm:$0xff]  }
 0x363   :  { %10594 = vmatpush3.bf16.msra.mxu1 %v11421_v5  ;;  %v8400_v5 = vlaneseq }
 0x364   :  { %8493 = vmatpush1.bf16.msra.mxu0 %v11397_v40  ;;  %10595 = vmatprep.subr.bf16.mxu1 %v11422_v6 }
 0x365   :  { %8494 = vmatprep.subr.bf16.mxu0 %v11402_v41  ;;  %v8401_v6 = vshrl.u32 %v8400_v5, 7 }
 0x367   :  { %10596 = vmatpush3.bf16.msra.mxu1 %v11423_v7  ;;  %v8402_v7 = vsub.s32 0, %v8401_v6 }
 0x368   :  { %8495 = vmatpush1.bf16.msra.mxu0 %v11400_v42  ;;  %10597 = vmatprep.subr.bf16.mxu1 %v11424_v8  ;;  %v8398_v8 = vld [vmem:[#allocation10] sm:$0x3] }
 0x369   :  { %8496 = vmatprep.subr.bf16.mxu0 %v11405_v43 }
 0x36b   :  { %10598 = vmatpush3.bf16.msra.mxu1 %v11425_v9  ;;  %v8406_v9 = vsub.s32 1, %v8401_v6 }
 0x36c   :  { %8497 = vmatpush1.bf16.msra.mxu0 %v11403_v44  ;;  %10599 = vmatprep.subr.bf16.mxu1 %v11426_v10  ;;  %v8403_v10 = vrot.slane %v8398_v8, %v8402_v7 }
 0x36d   :  { %8498 = vmatprep.subr.bf16.mxu0 %v11408_v45 }
 0x36f   :  { %10600 = vmatpush3.bf16.msra.mxu1 %v11427_v13 }
 0x370   :  { %8499 = vmatpush1.bf16.msra.mxu0 %v11406_v46  ;;  %10601 = vmatprep.subr.bf16.mxu1 %v11428_v16 }
 0x371   :  { %8500 = vmatprep.subr.bf16.mxu0 %v11411_v57 }
 0x374   :  { %8501 = vmatpush1.bf16.msra.mxu0 %v11409_v60 }
 0x375   :  { %8502 = vmatprep.subr.bf16.mxu0 %v11414_v61 }
 0x378   :  { %8503 = vmatpush1.bf16.msra.mxu0 %v11412_v62 }
 0x379   :  { %8504 = vmatprep.subr.bf16.mxu0 %v11417_v63 }
 0x37a   :  { %v10343_v25 = vpop.f32.mrf.mxu0 }
 0x37b   :  { %v10365_v26 = vpop.f32.mrf.mxu1 }
 0x37c   :  { %v10344_v27 = vpop.f32.mrf.mxu0  ;;  %8505 = vmatpush1.bf16.msra.mxu0 %v11415_v0  ;;  %v11429_v0 = vld [vmem:[#allocation11 + $0x10] sm:$0xff]  }
 0x37d   :  { %v10345_v28 = vadd.f32 %v10344_v27, %v10343_v25  ;;  %v10366_v29 = vpop.f32.mrf.mxu1  ;;  %10602 = vmatpush3.bf16.msra.mxu1 %v11429_v0 }
 0x37e   :  { %v10367_v30 = vadd.f32 %v10366_v29, %v10365_v26  ;;  %v10346_v31 = vpop.f32.mrf.mxu0  ;;  %10603 = vmatprep.subr.bf16.mxu1 %v11430_v1 }
 0x37f   :  { %v7933_v32 = vadd.f32 %v10345_v28, %v7893_v24  ;;  %v10368_v33 = vpop.f32.mrf.mxu1 }
 0x380   :  { %v10347_v34 = vpop.f32.mrf.mxu0 }
 0x381   :  { %v7973_v35 = vadd.f32 %v10367_v30, %v7933_v32  ;;  %v10369_v36 = vpop.f32.mrf.mxu1  ;;  %10604 = vmatpush3.bf16.msra.mxu1 %v11431_v2 }
 0x382   :  { %10605 = vmatprep.subr.bf16.mxu1 %v11432_v3 }
 0x385   :  { %10606 = vmatpush3.bf16.msra.mxu1 %v11433_v4 }
 0x39a   :  { %v10387_v47 = vpop.f32.mrf.mxu0 }
 0x39b   :  { %v10409_v48 = vpop.f32.mrf.mxu1 }
 0x39c   :  { %v10388_v49 = vpop.f32.mrf.mxu0 }
 0x39d   :  { %v10389_v50 = vadd.f32 %v10388_v49, %v10387_v47  ;;  %v10410_v51 = vpop.f32.mrf.mxu1 }
 0x39e   :  { %v10411_v52 = vadd.f32 %v10410_v51, %v10409_v48  ;;  %v10390_v53 = vpop.f32.mrf.mxu0 }
 0x39f   :  { %v8013_v54 = vadd.f32 %v10389_v50, %v7973_v35  ;;  %v10412_v55 = vpop.f32.mrf.mxu1 }
 0x3a0   :  { %v10391_v56 = vpop.f32.mrf.mxu0 }
 0x3a1   :  { %v8053_v58 = vadd.f32 %v10411_v52, %v8013_v54  ;;  %v10413_v59 = vpop.f32.mrf.mxu1 }
 0x3ba   :  { %v10431_v11 = vpop.f32.mrf.mxu0 }
 0x3bb   :  { %v10453_v12 = vpop.f32.mrf.mxu1 }
 0x3bc   :  { %v10432_v14 = vpop.f32.mrf.mxu0 }
 0x3bd   :  { %v10454_v15 = vpop.f32.mrf.mxu1  ;;  %v10433_v17 = vadd.f32 %v10432_v14, %v10431_v11  ;;  %v8407_v11 = vrot.slane %v8398_v8, %v8406_v9 }
 0x3be   :  { %v10455_v18 = vadd.f32 %v10454_v15, %v10453_v12  ;;  %v10434_v19 = vpop.f32.mrf.mxu0 }
 0x3bf   :  { %v10456_v20 = vpop.f32.mrf.mxu1  ;;  %v8093_v21 = vadd.f32 %v10433_v17, %v8053_v58 }
 0x3c0   :  { %v10435_v22 = vpop.f32.mrf.mxu0 }
 0x3c1   :  { %v10457_v23 = vpop.f32.mrf.mxu1  ;;  %v8133_v24 = vadd.f32 %v10455_v18, %v8093_v21 }
 0x3da   :  { %v10475_v25 = vpop.f32.mrf.mxu0 }
 0x3db   :  { %v10497_v26 = vpop.f32.mrf.mxu1 }
 0x3dc   :  { %v10476_v27 = vpop.f32.mrf.mxu0 }
 0x3dd   :  { %v10498_v28 = vpop.f32.mrf.mxu1  ;;  %v10477_v41 = vadd.f32 %v10476_v27, %v10475_v25  ;;  %v9518_v25 = vld [vmem:[#allocation13] ss:$0 sm:$0xff] }
 0x3de   :  { %v10478_v29 = vpop.f32.mrf.mxu0  ;;  %v10499_v43 = vadd.f32 %v10498_v28, %v10497_v26 }
 0x3df   :  { %v10500_v30 = vpop.f32.mrf.mxu1  ;;  %v8173_v42 = vadd.f32 %v10477_v41, %v8133_v24 }
 0x3e0   :  { %v10479_v31 = vpop.f32.mrf.mxu0 }
 0x3e1   :  { %v10501_v32 = vpop.f32.mrf.mxu1  ;;  %v8213_v45 = vadd.f32 %v10499_v43, %v8173_v42 }
 0x3fa   :  { %v10519_v33 = vpop.f32.mrf.mxu0 }
 0x3fb   :  { %v10541_v34 = vpop.f32.mrf.mxu1 }
 0x3fc   :  { %v10520_v35 = vpop.f32.mrf.mxu0 }
 0x3fd   :  { %v10542_v36 = vpop.f32.mrf.mxu1  ;;  %v10521_v44 = vadd.f32 %v10520_v35, %v10519_v33 }
 0x3fe   :  { %v10522_v37 = vpop.f32.mrf.mxu0  ;;  %v10543_v47 = vadd.f32 %v10542_v36, %v10541_v34 }
 0x3ff   :  { %v10544_v38 = vpop.f32.mrf.mxu1  ;;  %v8253_v46 = vadd.f32 %v10521_v44, %v8213_v45 }
 0x400   :  { %v10523_v39 = vpop.f32.mrf.mxu0 }
 0x401   :  { %v10545_v40 = vpop.f32.mrf.mxu1  ;;  %v8293_v52 = vadd.f32 %v10543_v47, %v8253_v46 }
 0x41a   :  { %v10563_v48 = vpop.f32.mrf.mxu0 }
 0x41b   :  { %v10585_v49 = vpop.f32.mrf.mxu1 }
 0x41c   :  { %v10564_v50 = vpop.f32.mrf.mxu0 }
 0x41d   :  { %v10586_v51 = vpop.f32.mrf.mxu1  ;;  %v10565_v53 = vadd.f32 %v10564_v50, %v10563_v48 }
 0x41e   :  { %v10566_v54 = vpop.f32.mrf.mxu0  ;;  %v10587_v57 = vadd.f32 %v10586_v51, %v10585_v49 }
 0x41f   :  { %v10588_v55 = vpop.f32.mrf.mxu1  ;;  %v8333_v56 = vadd.f32 %v10565_v53, %v8293_v52 }
 0x420   :  { %v10567_v58 = vpop.f32.mrf.mxu0 }
 0x421   :  { %v10589_v59 = vpop.f32.mrf.mxu1  ;;  %v8373_v60 = vadd.f32 %v10587_v57, %v8333_v56 }
 0x423   :  { %vm8378_vm0 = vcmp.gt.f32.partialorder %v8373_v60, 0.0  ;;  %v8379_v61 = vmul.f32 0.01, %v8373_v60 }
 0x425   :  { %v8380_v62 = vsel %vm8378_vm0, %v8373_v60, %v8379_v61 }
 0x426   :  { %v8381_v63 = vpack.c.bf16 %v8380_v62, %v8380_v62 }
 0x428   :  { %8523 = vmatmul.mubr.bf16.vlgmr.msra.gmra.mxu0 %v8381_v63 }
 0x4e8   :  { %v8524_v12 = vpop.f32.mrf.mxu0 }
 0x4e9   :  { %v8525_v13 = vadd.f32 %v8524_v12, %v8403_v10 }
 0x4ea   :  { %v8526_v14 = vpop.f32.mrf.mxu0 }
 0x4eb   :  { %vm8531_vm1 = vcmp.gt.f32.partialorder %v8525_v13, 0.0  ;;  %v8533_v15 = vmul.f32 0.01, %v8525_v13  ;;  %v8527_v16 = vadd.f32 %v8526_v14, %v8407_v11 }
 0x4ec   :  { %v8528_v17 = vpop.f32.mrf.mxu0 }
 0x4ed   :  { %vm8532_vm2 = vcmp.gt.f32.partialorder %v8527_v16, 0.0  ;;  %v8534_v18 = vmul.f32 0.01, %v8527_v16  ;;  %v8535_v19 = vsel %vm8531_vm1, %v8525_v13, %v8533_v15 }
 0x4ee   :  { %v8529_v20 = vpop.f32.mrf.mxu0  ;;  %v8537_v23 = vpack.c.bf16 %v8535_v19, %v8535_v19 }
 0x4ef   :  { %v8536_v21 = vsel %vm8532_vm2, %v8527_v16, %v8534_v18 }
 0x4f0   :  { %v8538_v22 = vpack.c.bf16 %v8536_v21, %v8536_v21 }
 0x4f2   :  { %8706 = vmatprep.mubr.bf16.mxu1 %v8538_v22 }
 0x4f3   :  { %8707 = vmatmul.mubr.bf16.vlgmr.msra.gmra.mxu1 %v8537_v23 }
 0x5b3   :  { %v10607_v24 = vpop.f32.mrf.mxu1 }
 0x5b5   :  { %v10608_v26 = vpop.f32.mrf.mxu1 }
 0x5b6   :  { %v10609_v27 = vadd.f32 %v10608_v26, %v10607_v24 }
 0x5b7   :  { %v10610_v28 = vpop.f32.mrf.mxu1 }
 0x5b8   :  { %v8709_v29 = vadd.f32 %v10609_v27, %v9518_v25 }
 0x5b9   :  { %v10611_v30 = vpop.f32.mrf.mxu1 }
 0x5ba   :  { %8714 = vst [vmem:[#allocation14] sm:$0xff] %v8709_v29 }
 0x5bb   :  { %11585 = shalt.err (!%p11582_p11)
}
 0x5bc   :  { %8724 = dma.vmem_to_hbm [thread:$0]  %s8722_s6, 128, %s11745_s7, [#allocation4]  }
 0x5bd   :  { %11602 = dma.done.wait [#allocation4], 128  }
 0x5be   :  { %11603 = vsyncadd [#allocation4], 4294967168 }
 0x5bf   :  { %8728 = vsyncpa [#allocation3], 1 }
 0x5c0   :  { %8729 = vsyncpa [#allocation6], 1 }
 0x5c1   :  { %8730 = vsyncpa [#allocation9], 1 }
 0x5c2   :  { %8731 = vsyncpa [#allocation12], 1 }
 0x5c3   :  { %8732 = vsyncpa [#allocation4], 1 }

</bundles_post_ra>
